<compile_context>
chip_gen: v7x
topology: tpu7x:2x2x1
jax: 0.10.0
libtpu: 0.0.40
codegen_flags: <defaults>
</compile_context>

<pallas_src>
import jax
import jax.numpy as jnp
from jax.experimental import pallas as pl
from jax.experimental.pallas import tpu as pltpu


# ============================================================================
# Fused forward-pass kernel: one grid step == one batch element.
# ============================================================================
def _pvnet_kernel(x_ref,                      # (H, W, 4)         f32
                  w1_ref, b1_ref,             # (9, 4, 32)  bf16, (1, 32)  f32
                  w2_ref, b2_ref,             # (9, 32, 64) bf16, (1, 64)  f32
                  w3_ref, b3_ref,             # (9, 64,128) bf16, (1, 128) f32
                  wh_ref, bh_ref,             # (128, 6)    bf16, (1, 6)   f32
                  wp_ref, bp_ref,             # (4, HW, HW) f32,  (1, HW)  f32
                  wv1_ref, bv1_ref,           # (2, HW, 64) f32,  (1, 64)  f32
                  wv2_ref, bv2_ref,           # (1, 64)     f32,  (1, 1)   f32
                  act_ref, val_ref,           # (1, HW) f32, (1, 1) f32
                  pad0, pad1, pad2):          # zero-padded NHWC VMEM scratch (f32)
    H, W, _ = x_ref.shape
    HW = H * W

    def fill_padded(pad_ref, val_hwc):
        # Zero border + interior write; everything stays in VMEM.
        pad_ref[...] = jnp.zeros_like(pad_ref)
        pad_ref[1:1 + H, 1:1 + W, :] = val_hwc.astype(pad_ref.dtype)

    def conv3x3_relu(pad_ref, w_ref, b_ref):
        # 3x3 / pad=1 conv as 9 accumulated shifted matmuls (bf16 MXU, f32 acc).
        cout = w_ref.shape[-1]
        acc = jnp.zeros((HW, cout), jnp.float32)
        for t in range(9):
            dy, dx = divmod(t, 3)
            tap = pad_ref[dy:dy + H, dx:dx + W, :].reshape(HW, -1)
            acc += jnp.dot(tap.astype(jnp.bfloat16), w_ref[t],
                           preferred_element_type=jnp.float32)
        return jnp.maximum(acc + b_ref[...], 0.0)             # (HW, cout) f32

    # ---- conv trunk ---------------------------------------------------------
    fill_padded(pad0, x_ref[...])
    y1 = conv3x3_relu(pad0, w1_ref, b1_ref)
    fill_padded(pad1, y1.reshape(H, W, -1))
    y2 = conv3x3_relu(pad1, w2_ref, b2_ref)
    fill_padded(pad2, y2.reshape(H, W, -1))
    y3 = conv3x3_relu(pad2, w3_ref, b3_ref)                    # (HW, 128) f32

    # ---- merged policy/value 1x1 head conv ----------------------------------
    yh = jnp.dot(y3.astype(jnp.bfloat16), wh_ref[...],
                 preferred_element_type=jnp.float32) + bh_ref[...]
    yh = jnp.maximum(yh, 0.0)                                  # (HW, 4+2) f32

    # ---- policy head: FC + log_softmax --------------------------------------
    # logits[o] = sum_{hw,c} yh[hw,c] * act_fc1_w[o, c*HW + hw]  (PyTorch view
    # order), expressed without reshapes via per-channel weight blocks.
    n_pol = wp_ref.shape[0]
    n_out = act_ref.shape[-1]
    z = jnp.zeros((HW, n_out), jnp.float32)
    for c in range(n_pol):
        z = z + yh[:, c:c + 1] * wp_ref[c]
    logits = jnp.sum(z, axis=0, keepdims=True) + bp_ref[...]   # (1, n_out)
    m = jnp.max(logits, axis=-1, keepdims=True)
    s = logits - m
    lse = jnp.log(jnp.sum(jnp.exp(s), axis=-1, keepdims=True))
    act_ref[...] = (s - lse).astype(act_ref.dtype)

    # ---- value head: FC(64)+relu, FC(1)+tanh ---------------------------------
    n_val = wv1_ref.shape[0]
    n_hid = wv1_ref.shape[-1]
    zv = jnp.zeros((HW, n_hid), jnp.float32)
    for c in range(n_val):
        zv = zv + yh[:, n_pol + c:n_pol + c + 1] * wv1_ref[c]
    v1 = jnp.maximum(jnp.sum(zv, axis=0, keepdims=True) + bv1_ref[...], 0.0)
    v = jnp.tanh(jnp.sum(v1 * wv2_ref[...], axis=-1, keepdims=True) + bv2_ref[...])
    val_ref[...] = v.astype(val_ref.dtype)


# ============================================================================
# Parameter init (PyTorch layouts) + one-time layout prep + forward wrapper.
# ============================================================================
def init_params(board_width, board_height, key):
    """Deterministic parameters in the original PyTorch layouts."""
    W, H = board_width, board_height
    ks = jax.random.split(key, 16)

    def conv_w(k, cout, cin, kh, kw):
        fan_in = cin * kh * kw
        return jax.random.normal(k, (cout, cin, kh, kw), jnp.float32) / jnp.sqrt(fan_in)

    def lin_w(k, cout, cin):
        return jax.random.normal(k, (cout, cin), jnp.float32) / jnp.sqrt(cin)

    def bias(k, n):
        return 0.01 * jax.random.normal(k, (n,), jnp.float32)

    return {
        "conv1_w": conv_w(ks[0], 32, 4, 3, 3),   "conv1_b": bias(ks[1], 32),
        "conv2_w": conv_w(ks[2], 64, 32, 3, 3),  "conv2_b": bias(ks[3], 64),
        "conv3_w": conv_w(ks[4], 128, 64, 3, 3), "conv3_b": bias(ks[5], 128),
        "act_conv1_w": conv_w(ks[6], 4, 128, 1, 1), "act_conv1_b": bias(ks[7], 4),
        "act_fc1_w": lin_w(ks[8], W * H, 4 * W * H), "act_fc1_b": bias(ks[9], W * H),
        "val_conv1_w": conv_w(ks[10], 2, 128, 1, 1), "val_conv1_b": bias(ks[11], 2),
        "val_fc1_w": lin_w(ks[12], 64, 2 * W * H),   "val_fc1_b": bias(ks[13], 64),
        "val_fc2_w": lin_w(ks[14], 1, 64),           "val_fc2_b": bias(ks[15], 1),
    }


def prepare_params(params):
    """One-time weight layout transforms so the hot path does zero re-layout."""
    def conv_tap_major(w):   # OIHW -> (kh*kw, Cin, Cout), bf16 MXU operand
        co, ci, kh, kw = w.shape
        return jnp.transpose(w, (2, 3, 1, 0)).reshape(kh * kw, ci, co).astype(jnp.bfloat16)

    n_out = params["act_fc1_w"].shape[0]          # board_w * board_h
    n_pol = params["act_conv1_w"].shape[0]        # 4
    n_val = params["val_conv1_w"].shape[0]        # 2
    n_hid = params["val_fc1_w"].shape[0]          # 64
    trunk_c = params["act_conv1_w"].shape[1]      # 128

    # Merged 1x1 head conv: output columns [0:4]=policy, [4:6]=value.
    wh = jnp.concatenate([params["act_conv1_w"].reshape(n_pol, trunk_c),
                          params["val_conv1_w"].reshape(n_val, trunk_c)],
                         axis=0).T.astype(jnp.bfloat16)
    bh = jnp.concatenate([params["act_conv1_b"],
                          params["val_conv1_b"]]).reshape(1, -1).astype(jnp.float32)

    return {
        "w1": conv_tap_major(params["conv1_w"]),
        "b1": params["conv1_b"].reshape(1, -1).astype(jnp.float32),
        "w2": conv_tap_major(params["conv2_w"]),
        "b2": params["conv2_b"].reshape(1, -1).astype(jnp.float32),
        "w3": conv_tap_major(params["conv3_w"]),
        "b3": params["conv3_b"].reshape(1, -1).astype(jnp.float32),
        "wh": wh, "bh": bh,
        # wp[c, hw, o] = act_fc1_w[o, c*HW + hw]  (PyTorch channel-major .view)
        "wp": params["act_fc1_w"].T.reshape(n_pol, n_out, n_out).astype(jnp.float32),
        "bp": params["act_fc1_b"].reshape(1, -1).astype(jnp.float32),
        "wv1": params["val_fc1_w"].T.reshape(n_val, n_out, n_hid).astype(jnp.float32),
        "bv1": params["val_fc1_b"].reshape(1, -1).astype(jnp.float32),
        "wv2": params["val_fc2_w"].reshape(1, n_hid).astype(jnp.float32),
        "bv2": params["val_fc2_b"].reshape(1, 1).astype(jnp.float32),
    }


_WEIGHT_KEYS = ("w1", "b1", "w2", "b2", "w3", "b3", "wh", "bh",
                "wp", "bp", "wv1", "bv1", "wv2", "bv2")


def _replicated_spec(shape):
    zero = (0,) * len(shape)
    return pl.BlockSpec(shape, lambda b, _z=zero: _z)


def net_forward(prep, state_input_nchw):
    """Forward pass matching PyTorch Net.forward. Input is NCHW (B, 4, H, W)."""
    x = jnp.transpose(state_input_nchw, (0, 2, 3, 1)).astype(jnp.float32)  # NHWC
    B, H, W, Cin = x.shape
    n_out = prep["wp"].shape[-1]
    c1 = prep["w1"].shape[-1]
    c2 = prep["w2"].shape[-1]

    weights = [prep[k] for k in _WEIGHT_KEYS]
    in_specs = [pl.BlockSpec((None, H, W, Cin), lambda b: (b, 0, 0, 0))]
    in_specs += [_replicated_spec(w.shape) for w in weights]

    out_shape = (jax.ShapeDtypeStruct((B, 1, n_out), jnp.float32),
                 jax.ShapeDtypeStruct((B, 1, 1), jnp.float32))
    out_specs = (pl.BlockSpec((None, 1, n_out), lambda b: (b, 0, 0)),
                 pl.BlockSpec((None, 1, 1), lambda b: (b, 0, 0)))

    act3, val3 = pl.pallas_call(
        _pvnet_kernel,
        grid=(B,),
        in_specs=in_specs,
        out_specs=out_specs,
        out_shape=out_shape,
        scratch_shapes=[
            pltpu.VMEM((H + 2, W + 2, Cin), jnp.float32),
            pltpu.VMEM((H + 2, W + 2, c1), jnp.float32),
            pltpu.VMEM((H + 2, W + 2, c2), jnp.float32),
        ],
        compiler_params=pltpu.CompilerParams(
            dimension_semantics=("parallel",)),
    )(x, *weights)

    return act3.reshape(B, n_out), val3.reshape(B, 1)


# ============================================================================
# Pure-JAX f32 reference (for correctness check only).
# ============================================================================
def _reference_forward(params, state_input_nchw):
    x = jnp.transpose(state_input_nchw, (0, 2, 3, 1)).astype(jnp.float32)

    def conv3x3_relu(x, w, b):
        B, H, W, C = x.shape
        xp = jnp.pad(x, ((0, 0), (1, 1), (1, 1), (0, 0)))
        cols = jnp.concatenate([xp[:, dy:dy + H, dx:dx + W, :]
                                for dy in range(3) for dx in range(3)], axis=-1)
        wm = jnp.transpose(w, (2, 3, 1, 0)).reshape(9 * C, -1)
        y = cols.reshape(B * H * W, 9 * C) @ wm + b
        return jax.nn.relu(y).reshape(B, H, W, -1)

    def conv1x1_relu(x, w, b):
        return jax.nn.relu(jnp.einsum("bhwc,oc->bhwo", x,
                                      w.reshape(w.shape[0], -1)) + b)

    x = conv3x3_relu(x, params["conv1_w"], params["conv1_b"])
    x = conv3x3_relu(x, params["conv2_w"], params["conv2_b"])
    x = conv3x3_relu(x, params["conv3_w"], params["conv3_b"])
    B = x.shape[0]

    xa = conv1x1_relu(x, params["act_conv1_w"], params["act_conv1_b"])
    xa = jnp.transpose(xa, (0, 3, 1, 2)).reshape(B, -1)        # PyTorch .view order
    xa = jax.nn.log_softmax(xa @ params["act_fc1_w"].T + params["act_fc1_b"], axis=-1)

    xv = conv1x1_relu(x, params["val_conv1_w"], params["val_conv1_b"])
    xv = jnp.transpose(xv, (0, 3, 1, 2)).reshape(B, -1)
    xv = jax.nn.relu(xv @ params["val_fc1_w"].T + params["val_fc1_b"])
    xv = jnp.tanh(xv @ params["val_fc2_w"].T + params["val_fc2_b"])
    return xa, xv


if __name__ == "__main__":
    board_width = board_height = 8
    batch = 2

    key = jax.random.PRNGKey(0)
    k_in, k_par = jax.random.split(key)
    state_input = jax.random.normal(
        k_in, (batch, 4, board_height, board_width), jnp.float32)  # NCHW like PyTorch

    params = init_params(board_width, board_height, k_par)
    prep = prepare_params(params)                                  # one-time layout work

    fwd = jax.jit(net_forward)
    x_act, x_val = fwd(prep, state_input)
    jax.block_until_ready((x_act, x_val))

    assert x_act.shape == (batch, board_width * board_height)
    assert x_val.shape == (batch, 1)
    # log_softmax rows must sum to ~1 in probability space; tanh bounded in [-1, 1].
    assert bool(jnp.allclose(jnp.sum(jnp.exp(x_act), axis=1), 1.0, atol=1e-4))
    assert bool(jnp.all(jnp.abs(x_val) <= 1.0))

    # Cross-check vs pure-JAX f32 reference (kernel uses bf16 MXU operands,
    # hence the loose tolerance).
    ref_act, ref_val = _reference_forward(params, state_input)
    assert bool(jnp.allclose(x_act, ref_act, atol=1e-1))
    assert bool(jnp.allclose(x_val, ref_val, atol=5e-2))

    print("KERNEL_OK")
</pallas_src>

<mosaic_0001>
module attributes {stable_mosaic.version = 11 : i64} {
  func.func @_pvnet_kernel(%arg0: i32, %arg1: memref<1x8x8x4xf32, #tpu.memory_space<vmem>>, %arg2: memref<9x4x32xbf16, #tpu.memory_space<vmem>>, %arg3: memref<1x32xf32, #tpu.memory_space<vmem>>, %arg4: memref<9x32x64xbf16, #tpu.memory_space<vmem>>, %arg5: memref<1x64xf32, #tpu.memory_space<vmem>>, %arg6: memref<9x64x128xbf16, #tpu.memory_space<vmem>>, %arg7: memref<1x128xf32, #tpu.memory_space<vmem>>, %arg8: memref<128x6xbf16, #tpu.memory_space<vmem>>, %arg9: memref<1x6xf32, #tpu.memory_space<vmem>>, %arg10: memref<4x64x64xf32, #tpu.memory_space<vmem>>, %arg11: memref<1x64xf32, #tpu.memory_space<vmem>>, %arg12: memref<2x64x64xf32, #tpu.memory_space<vmem>>, %arg13: memref<1x64xf32, #tpu.memory_space<vmem>>, %arg14: memref<1x64xf32, #tpu.memory_space<vmem>>, %arg15: memref<1x1xf32, #tpu.memory_space<vmem>>, %arg16: memref<1x1x64xf32, #tpu.memory_space<vmem>>, %arg17: memref<1x1x1xf32, #tpu.memory_space<vmem>>, %arg18: memref<10x10x4xf32, #tpu.memory_space<vmem>>, %arg19: memref<10x10x32xf32, #tpu.memory_space<vmem>>, %arg20: memref<10x10x64xf32, #tpu.memory_space<vmem>>) attributes {dimension_semantics = [#tpu.dimension_semantics<parallel>], iteration_bounds = array<i64: 2>, scalar_prefetch = 0 : i64, scratch_operands = 3 : i64, tpu.core_type = #tpu.core_type<tc>, window_params = [{transform_indices = @transform_0, window_bounds = array<i64: 1, 8, 8, 4>}, {pipeline_mode = #tpu.pipeline_mode<synchronous>, transform_indices = @transform_1, window_bounds = array<i64: 9, 4, 32>}, {pipeline_mode = #tpu.pipeline_mode<synchronous>, transform_indices = @transform_2, window_bounds = array<i64: 1, 32>}, {pipeline_mode = #tpu.pipeline_mode<synchronous>, transform_indices = @transform_3, window_bounds = array<i64: 9, 32, 64>}, {pipeline_mode = #tpu.pipeline_mode<synchronous>, transform_indices = @transform_4, window_bounds = array<i64: 1, 64>}, {pipeline_mode = #tpu.pipeline_mode<synchronous>, transform_indices = @transform_5, window_bounds = array<i64: 9, 64, 128>}, {pipeline_mode = #tpu.pipeline_mode<synchronous>, transform_indices = @transform_6, window_bounds = array<i64: 1, 128>}, {pipeline_mode = #tpu.pipeline_mode<synchronous>, transform_indices = @transform_7, window_bounds = array<i64: 128, 6>}, {pipeline_mode = #tpu.pipeline_mode<synchronous>, transform_indices = @transform_8, window_bounds = array<i64: 1, 6>}, {pipeline_mode = #tpu.pipeline_mode<synchronous>, transform_indices = @transform_9, window_bounds = array<i64: 4, 64, 64>}, {pipeline_mode = #tpu.pipeline_mode<synchronous>, transform_indices = @transform_10, window_bounds = array<i64: 1, 64>}, {pipeline_mode = #tpu.pipeline_mode<synchronous>, transform_indices = @transform_11, window_bounds = array<i64: 2, 64, 64>}, {pipeline_mode = #tpu.pipeline_mode<synchronous>, transform_indices = @transform_12, window_bounds = array<i64: 1, 64>}, {pipeline_mode = #tpu.pipeline_mode<synchronous>, transform_indices = @transform_13, window_bounds = array<i64: 1, 64>}, {pipeline_mode = #tpu.pipeline_mode<synchronous>, transform_indices = @transform_14, window_bounds = array<i64: 1, 1>}, {transform_indices = @transform_15, window_bounds = array<i64: 1, 1, 64>}, {transform_indices = @transform_16, window_bounds = array<i64: 1, 1, 1>}]} {
    %c0 = arith.constant 0 : index
    %c0_0 = arith.constant 0 : index
    %c0_1 = arith.constant 0 : index
    %c0_2 = arith.constant 0 : index
    %0 = vector.load %arg1[%c0, %c0_0, %c0_1, %c0_2] : memref<1x8x8x4xf32, #tpu.memory_space<vmem>>, vector<1x8x8x4xf32>
    %1 = vector.shape_cast %0 : vector<1x8x8x4xf32> to vector<8x8x4xf32>
    %cst = arith.constant 0.000000e+00 : f32
    %2 = vector.broadcast %cst : f32 to vector<10x10x4xf32>
    %c0_3 = arith.constant 0 : index
    %c0_4 = arith.constant 0 : index
    %c0_5 = arith.constant 0 : index
    %3 = vector.load %arg18[%c0_3, %c0_4, %c0_5] : memref<10x10x4xf32, #tpu.memory_space<vmem>>, vector<10x10x4xf32>
    tpu.vector_store %arg18[%c0_3, %c0_4, %c0_5], %2 {strides = array<i32>} : memref<10x10x4xf32, #tpu.memory_space<vmem>>, vector<10x10x4xf32>,
    %c1 = arith.constant 1 : index
    %c1_6 = arith.constant 1 : index
    %c0_7 = arith.constant 0 : index
    %4 = vector.load %arg18[%c1, %c1_6, %c0_7] : memref<10x10x4xf32, #tpu.memory_space<vmem>>, vector<8x8x4xf32>
    tpu.vector_store %arg18[%c1, %c1_6, %c0_7], %1 {strides = array<i32>} : memref<10x10x4xf32, #tpu.memory_space<vmem>>, vector<8x8x4xf32>,
    %cst_8 = arith.constant 0.000000e+00 : f32
    %5 = vector.broadcast %cst_8 : f32 to vector<64x32xf32>
    %c0_9 = arith.constant 0 : index
    %c0_10 = arith.constant 0 : index
    %c0_11 = arith.constant 0 : index
    %6 = vector.load %arg18[%c0_9, %c0_10, %c0_11] : memref<10x10x4xf32, #tpu.memory_space<vmem>>, vector<8x8x4xf32>
    %7 = vector.shape_cast %6 : vector<8x8x4xf32> to vector<64x4xf32>
    %8 = arith.truncf %7 : vector<64x4xf32> to vector<64x4xbf16>
    %c0_12 = arith.constant 0 : index
    %c0_13 = arith.constant 0 : index
    %c0_14 = arith.constant 0 : index
    %9 = vector.load %arg2[%c0_12, %c0_13, %c0_14] : memref<9x4x32xbf16, #tpu.memory_space<vmem>>, vector<1x4x32xbf16>
    %10 = vector.shape_cast %9 : vector<1x4x32xbf16> to vector<4x32xbf16>
    %cst_15 = arith.constant dense<0.000000e+00> : vector<64x32xf32>
    %11 = tpu.matmul %8, %10, %cst_15 {dimension_numbers = #tpu.dot_dimension_numbers<[1], [0], [0], [1], [0, 0, 1, 1], [], []>} : vector<64x4xbf16>, vector<4x32xbf16>, vector<64x32xf32> -> vector<64x32xf32>
    %12 = arith.addf %5, %11 : vector<64x32xf32>
    %c0_16 = arith.constant 0 : index
    %c1_17 = arith.constant 1 : index
    %c0_18 = arith.constant 0 : index
    %13 = vector.load %arg18[%c0_16, %c1_17, %c0_18] : memref<10x10x4xf32, #tpu.memory_space<vmem>>, vector<8x8x4xf32>
    %14 = vector.shape_cast %13 : vector<8x8x4xf32> to vector<64x4xf32>
    %15 = arith.truncf %14 : vector<64x4xf32> to vector<64x4xbf16>
    %c1_19 = arith.constant 1 : index
    %c0_20 = arith.constant 0 : index
    %c0_21 = arith.constant 0 : index
    %16 = vector.load %arg2[%c1_19, %c0_20, %c0_21] : memref<9x4x32xbf16, #tpu.memory_space<vmem>>, vector<1x4x32xbf16>
    %17 = vector.shape_cast %16 : vector<1x4x32xbf16> to vector<4x32xbf16>
    %cst_22 = arith.constant dense<0.000000e+00> : vector<64x32xf32>
    %18 = tpu.matmul %15, %17, %cst_22 {dimension_numbers = #tpu.dot_dimension_numbers<[1], [0], [0], [1], [0, 0, 1, 1], [], []>} : vector<64x4xbf16>, vector<4x32xbf16>, vector<64x32xf32> -> vector<64x32xf32>
    %19 = arith.addf %12, %18 : vector<64x32xf32>
    %c0_23 = arith.constant 0 : index
    %c2 = arith.constant 2 : index
    %c0_24 = arith.constant 0 : index
    %20 = vector.load %arg18[%c0_23, %c2, %c0_24] : memref<10x10x4xf32, #tpu.memory_space<vmem>>, vector<8x8x4xf32>
    %21 = vector.shape_cast %20 : vector<8x8x4xf32> to vector<64x4xf32>
    %22 = arith.truncf %21 : vector<64x4xf32> to vector<64x4xbf16>
    %c2_25 = arith.constant 2 : index
    %c0_26 = arith.constant 0 : index
    %c0_27 = arith.constant 0 : index
    %23 = vector.load %arg2[%c2_25, %c0_26, %c0_27] : memref<9x4x32xbf16, #tpu.memory_space<vmem>>, vector<1x4x32xbf16>
    %24 = vector.shape_cast %23 : vector<1x4x32xbf16> to vector<4x32xbf16>
    %cst_28 = arith.constant dense<0.000000e+00> : vector<64x32xf32>
    %25 = tpu.matmul %22, %24, %cst_28 {dimension_numbers = #tpu.dot_dimension_numbers<[1], [0], [0], [1], [0, 0, 1, 1], [], []>} : vector<64x4xbf16>, vector<4x32xbf16>, vector<64x32xf32> -> vector<64x32xf32>
    %26 = arith.addf %19, %25 : vector<64x32xf32>
    %c1_29 = arith.constant 1 : index
    %c0_30 = arith.constant 0 : index
    %c0_31 = arith.constant 0 : index
    %27 = vector.load %arg18[%c1_29, %c0_30, %c0_31] : memref<10x10x4xf32, #tpu.memory_space<vmem>>, vector<8x8x4xf32>
    %28 = vector.shape_cast %27 : vector<8x8x4xf32> to vector<64x4xf32>
    %29 = arith.truncf %28 : vector<64x4xf32> to vector<64x4xbf16>
    %c3 = arith.constant 3 : index
    %c0_32 = arith.constant 0 : index
    %c0_33 = arith.constant 0 : index
    %30 = vector.load %arg2[%c3, %c0_32, %c0_33] : memref<9x4x32xbf16, #tpu.memory_space<vmem>>, vector<1x4x32xbf16>
    %31 = vector.shape_cast %30 : vector<1x4x32xbf16> to vector<4x32xbf16>
    %cst_34 = arith.constant dense<0.000000e+00> : vector<64x32xf32>
    %32 = tpu.matmul %29, %31, %cst_34 {dimension_numbers = #tpu.dot_dimension_numbers<[1], [0], [0], [1], [0, 0, 1, 1], [], []>} : vector<64x4xbf16>, vector<4x32xbf16>, vector<64x32xf32> -> vector<64x32xf32>
    %33 = arith.addf %26, %32 : vector<64x32xf32>
    %c1_35 = arith.constant 1 : index
    %c1_36 = arith.constant 1 : index
    %c0_37 = arith.constant 0 : index
    %34 = vector.load %arg18[%c1_35, %c1_36, %c0_37] : memref<10x10x4xf32, #tpu.memory_space<vmem>>, vector<8x8x4xf32>
    %35 = vector.shape_cast %34 : vector<8x8x4xf32> to vector<64x4xf32>
    %36 = arith.truncf %35 : vector<64x4xf32> to vector<64x4xbf16>
    %c4 = arith.constant 4 : index
    %c0_38 = arith.constant 0 : index
    %c0_39 = arith.constant 0 : index
    %37 = vector.load %arg2[%c4, %c0_38, %c0_39] : memref<9x4x32xbf16, #tpu.memory_space<vmem>>, vector<1x4x32xbf16>
    %38 = vector.shape_cast %37 : vector<1x4x32xbf16> to vector<4x32xbf16>
    %cst_40 = arith.constant dense<0.000000e+00> : vector<64x32xf32>
    %39 = tpu.matmul %36, %38, %cst_40 {dimension_numbers = #tpu.dot_dimension_numbers<[1], [0], [0], [1], [0, 0, 1, 1], [], []>} : vector<64x4xbf16>, vector<4x32xbf16>, vector<64x32xf32> -> vector<64x32xf32>
    %40 = arith.addf %33, %39 : vector<64x32xf32>
    %c1_41 = arith.constant 1 : index
    %c2_42 = arith.constant 2 : index
    %c0_43 = arith.constant 0 : index
    %41 = vector.load %arg18[%c1_41, %c2_42, %c0_43] : memref<10x10x4xf32, #tpu.memory_space<vmem>>, vector<8x8x4xf32>
    %42 = vector.shape_cast %41 : vector<8x8x4xf32> to vector<64x4xf32>
    %43 = arith.truncf %42 : vector<64x4xf32> to vector<64x4xbf16>
    %c5 = arith.constant 5 : index
    %c0_44 = arith.constant 0 : index
    %c0_45 = arith.constant 0 : index
    %44 = vector.load %arg2[%c5, %c0_44, %c0_45] : memref<9x4x32xbf16, #tpu.memory_space<vmem>>, vector<1x4x32xbf16>
    %45 = vector.shape_cast %44 : vector<1x4x32xbf16> to vector<4x32xbf16>
    %cst_46 = arith.constant dense<0.000000e+00> : vector<64x32xf32>
    %46 = tpu.matmul %43, %45, %cst_46 {dimension_numbers = #tpu.dot_dimension_numbers<[1], [0], [0], [1], [0, 0, 1, 1], [], []>} : vector<64x4xbf16>, vector<4x32xbf16>, vector<64x32xf32> -> vector<64x32xf32>
    %47 = arith.addf %40, %46 : vector<64x32xf32>
    %c2_47 = arith.constant 2 : index
    %c0_48 = arith.constant 0 : index
    %c0_49 = arith.constant 0 : index
    %48 = vector.load %arg18[%c2_47, %c0_48, %c0_49] : memref<10x10x4xf32, #tpu.memory_space<vmem>>, vector<8x8x4xf32>
    %49 = vector.shape_cast %48 : vector<8x8x4xf32> to vector<64x4xf32>
    %50 = arith.truncf %49 : vector<64x4xf32> to vector<64x4xbf16>
    %c6 = arith.constant 6 : index
    %c0_50 = arith.constant 0 : index
    %c0_51 = arith.constant 0 : index
    %51 = vector.load %arg2[%c6, %c0_50, %c0_51] : memref<9x4x32xbf16, #tpu.memory_space<vmem>>, vector<1x4x32xbf16>
    %52 = vector.shape_cast %51 : vector<1x4x32xbf16> to vector<4x32xbf16>
    %cst_52 = arith.constant dense<0.000000e+00> : vector<64x32xf32>
    %53 = tpu.matmul %50, %52, %cst_52 {dimension_numbers = #tpu.dot_dimension_numbers<[1], [0], [0], [1], [0, 0, 1, 1], [], []>} : vector<64x4xbf16>, vector<4x32xbf16>, vector<64x32xf32> -> vector<64x32xf32>
    %54 = arith.addf %47, %53 : vector<64x32xf32>
    %c2_53 = arith.constant 2 : index
    %c1_54 = arith.constant 1 : index
    %c0_55 = arith.constant 0 : index
    %55 = vector.load %arg18[%c2_53, %c1_54, %c0_55] : memref<10x10x4xf32, #tpu.memory_space<vmem>>, vector<8x8x4xf32>
    %56 = vector.shape_cast %55 : vector<8x8x4xf32> to vector<64x4xf32>
    %57 = arith.truncf %56 : vector<64x4xf32> to vector<64x4xbf16>
    %c7 = arith.constant 7 : index
    %c0_56 = arith.constant 0 : index
    %c0_57 = arith.constant 0 : index
    %58 = vector.load %arg2[%c7, %c0_56, %c0_57] : memref<9x4x32xbf16, #tpu.memory_space<vmem>>, vector<1x4x32xbf16>
    %59 = vector.shape_cast %58 : vector<1x4x32xbf16> to vector<4x32xbf16>
    %cst_58 = arith.constant dense<0.000000e+00> : vector<64x32xf32>
    %60 = tpu.matmul %57, %59, %cst_58 {dimension_numbers = #tpu.dot_dimension_numbers<[1], [0], [0], [1], [0, 0, 1, 1], [], []>} : vector<64x4xbf16>, vector<4x32xbf16>, vector<64x32xf32> -> vector<64x32xf32>
    %61 = arith.addf %54, %60 : vector<64x32xf32>
    %c2_59 = arith.constant 2 : index
    %c2_60 = arith.constant 2 : index
    %c0_61 = arith.constant 0 : index
    %62 = vector.load %arg18[%c2_59, %c2_60, %c0_61] : memref<10x10x4xf32, #tpu.memory_space<vmem>>, vector<8x8x4xf32>
    %63 = vector.shape_cast %62 : vector<8x8x4xf32> to vector<64x4xf32>
    %64 = arith.truncf %63 : vector<64x4xf32> to vector<64x4xbf16>
    %c8 = arith.constant 8 : index
    %c0_62 = arith.constant 0 : index
    %c0_63 = arith.constant 0 : index
    %65 = vector.load %arg2[%c8, %c0_62, %c0_63] : memref<9x4x32xbf16, #tpu.memory_space<vmem>>, vector<1x4x32xbf16>
    %66 = vector.shape_cast %65 : vector<1x4x32xbf16> to vector<4x32xbf16>
    %cst_64 = arith.constant dense<0.000000e+00> : vector<64x32xf32>
    %67 = tpu.matmul %64, %66, %cst_64 {dimension_numbers = #tpu.dot_dimension_numbers<[1], [0], [0], [1], [0, 0, 1, 1], [], []>} : vector<64x4xbf16>, vector<4x32xbf16>, vector<64x32xf32> -> vector<64x32xf32>
    %68 = arith.addf %61, %67 : vector<64x32xf32>
    %c0_65 = arith.constant 0 : index
    %c0_66 = arith.constant 0 : index
    %69 = vector.load %arg3[%c0_65, %c0_66] : memref<1x32xf32, #tpu.memory_space<vmem>>, vector<1x32xf32>
    %70 = vector.broadcast %69 : vector<1x32xf32> to vector<64x32xf32>
    %71 = arith.addf %68, %70 : vector<64x32xf32>
    %cst_67 = arith.constant 0.000000e+00 : f32
    %72 = vector.broadcast %cst_67 : f32 to vector<64x32xf32>
    %73 = arith.maximumf %71, %72 : vector<64x32xf32>
    %74 = vector.shape_cast %73 : vector<64x32xf32> to vector<8x8x32xf32>
    %cst_68 = arith.constant 0.000000e+00 : f32
    %75 = vector.broadcast %cst_68 : f32 to vector<10x10x32xf32>
    %c0_69 = arith.constant 0 : index
    %c0_70 = arith.constant 0 : index
    %c0_71 = arith.constant 0 : index
    %76 = vector.load %arg19[%c0_69, %c0_70, %c0_71] : memref<10x10x32xf32, #tpu.memory_space<vmem>>, vector<10x10x32xf32>
    tpu.vector_store %arg19[%c0_69, %c0_70, %c0_71], %75 {strides = array<i32>} : memref<10x10x32xf32, #tpu.memory_space<vmem>>, vector<10x10x32xf32>,
    %c1_72 = arith.constant 1 : index
    %c1_73 = arith.constant 1 : index
    %c0_74 = arith.constant 0 : index
    %77 = vector.load %arg19[%c1_72, %c1_73, %c0_74] : memref<10x10x32xf32, #tpu.memory_space<vmem>>, vector<8x8x32xf32>
    tpu.vector_store %arg19[%c1_72, %c1_73, %c0_74], %74 {strides = array<i32>} : memref<10x10x32xf32, #tpu.memory_space<vmem>>, vector<8x8x32xf32>,
    %cst_75 = arith.constant 0.000000e+00 : f32
    %78 = vector.broadcast %cst_75 : f32 to vector<64x64xf32>
    %c0_76 = arith.constant 0 : index
    %c0_77 = arith.constant 0 : index
    %c0_78 = arith.constant 0 : index
    %79 = vector.load %arg19[%c0_76, %c0_77, %c0_78] : memref<10x10x32xf32, #tpu.memory_space<vmem>>, vector<8x8x32xf32>
    %80 = vector.shape_cast %79 : vector<8x8x32xf32> to vector<64x32xf32>
    %81 = arith.truncf %80 : vector<64x32xf32> to vector<64x32xbf16>
    %c0_79 = arith.constant 0 : index
    %c0_80 = arith.constant 0 : index
    %c0_81 = arith.constant 0 : index
    %82 = vector.load %arg4[%c0_79, %c0_80, %c0_81] : memref<9x32x64xbf16, #tpu.memory_space<vmem>>, vector<1x32x64xbf16>
    %83 = vector.shape_cast %82 : vector<1x32x64xbf16> to vector<32x64xbf16>
    %cst_82 = arith.constant dense<0.000000e+00> : vector<64x64xf32>
    %84 = tpu.matmul %81, %83, %cst_82 {dimension_numbers = #tpu.dot_dimension_numbers<[1], [0], [0], [1], [0, 0, 1, 1], [], []>} : vector<64x32xbf16>, vector<32x64xbf16>, vector<64x64xf32> -> vector<64x64xf32>
    %85 = arith.addf %78, %84 : vector<64x64xf32>
    %c0_83 = arith.constant 0 : index
    %c1_84 = arith.constant 1 : index
    %c0_85 = arith.constant 0 : index
    %86 = vector.load %arg19[%c0_83, %c1_84, %c0_85] : memref<10x10x32xf32, #tpu.memory_space<vmem>>, vector<8x8x32xf32>
    %87 = vector.shape_cast %86 : vector<8x8x32xf32> to vector<64x32xf32>
    %88 = arith.truncf %87 : vector<64x32xf32> to vector<64x32xbf16>
    %c1_86 = arith.constant 1 : index
    %c0_87 = arith.constant 0 : index
    %c0_88 = arith.constant 0 : index
    %89 = vector.load %arg4[%c1_86, %c0_87, %c0_88] : memref<9x32x64xbf16, #tpu.memory_space<vmem>>, vector<1x32x64xbf16>
    %90 = vector.shape_cast %89 : vector<1x32x64xbf16> to vector<32x64xbf16>
    %cst_89 = arith.constant dense<0.000000e+00> : vector<64x64xf32>
    %91 = tpu.matmul %88, %90, %cst_89 {dimension_numbers = #tpu.dot_dimension_numbers<[1], [0], [0], [1], [0, 0, 1, 1], [], []>} : vector<64x32xbf16>, vector<32x64xbf16>, vector<64x64xf32> -> vector<64x64xf32>
    %92 = arith.addf %85, %91 : vector<64x64xf32>
    %c0_90 = arith.constant 0 : index
    %c2_91 = arith.constant 2 : index
    %c0_92 = arith.constant 0 : index
    %93 = vector.load %arg19[%c0_90, %c2_91, %c0_92] : memref<10x10x32xf32, #tpu.memory_space<vmem>>, vector<8x8x32xf32>
    %94 = vector.shape_cast %93 : vector<8x8x32xf32> to vector<64x32xf32>
    %95 = arith.truncf %94 : vector<64x32xf32> to vector<64x32xbf16>
    %c2_93 = arith.constant 2 : index
    %c0_94 = arith.constant 0 : index
    %c0_95 = arith.constant 0 : index
    %96 = vector.load %arg4[%c2_93, %c0_94, %c0_95] : memref<9x32x64xbf16, #tpu.memory_space<vmem>>, vector<1x32x64xbf16>
    %97 = vector.shape_cast %96 : vector<1x32x64xbf16> to vector<32x64xbf16>
    %cst_96 = arith.constant dense<0.000000e+00> : vector<64x64xf32>
    %98 = tpu.matmul %95, %97, %cst_96 {dimension_numbers = #tpu.dot_dimension_numbers<[1], [0], [0], [1], [0, 0, 1, 1], [], []>} : vector<64x32xbf16>, vector<32x64xbf16>, vector<64x64xf32> -> vector<64x64xf32>
    %99 = arith.addf %92, %98 : vector<64x64xf32>
    %c1_97 = arith.constant 1 : index
    %c0_98 = arith.constant 0 : index
    %c0_99 = arith.constant 0 : index
    %100 = vector.load %arg19[%c1_97, %c0_98, %c0_99] : memref<10x10x32xf32, #tpu.memory_space<vmem>>, vector<8x8x32xf32>
    %101 = vector.shape_cast %100 : vector<8x8x32xf32> to vector<64x32xf32>
    %102 = arith.truncf %101 : vector<64x32xf32> to vector<64x32xbf16>
    %c3_100 = arith.constant 3 : index
    %c0_101 = arith.constant 0 : index
    %c0_102 = arith.constant 0 : index
    %103 = vector.load %arg4[%c3_100, %c0_101, %c0_102] : memref<9x32x64xbf16, #tpu.memory_space<vmem>>, vector<1x32x64xbf16>
    %104 = vector.shape_cast %103 : vector<1x32x64xbf16> to vector<32x64xbf16>
    %cst_103 = arith.constant dense<0.000000e+00> : vector<64x64xf32>
    %105 = tpu.matmul %102, %104, %cst_103 {dimension_numbers = #tpu.dot_dimension_numbers<[1], [0], [0], [1], [0, 0, 1, 1], [], []>} : vector<64x32xbf16>, vector<32x64xbf16>, vector<64x64xf32> -> vector<64x64xf32>
    %106 = arith.addf %99, %105 : vector<64x64xf32>
    %c1_104 = arith.constant 1 : index
    %c1_105 = arith.constant 1 : index
    %c0_106 = arith.constant 0 : index
    %107 = vector.load %arg19[%c1_104, %c1_105, %c0_106] : memref<10x10x32xf32, #tpu.memory_space<vmem>>, vector<8x8x32xf32>
    %108 = vector.shape_cast %107 : vector<8x8x32xf32> to vector<64x32xf32>
    %109 = arith.truncf %108 : vector<64x32xf32> to vector<64x32xbf16>
    %c4_107 = arith.constant 4 : index
    %c0_108 = arith.constant 0 : index
    %c0_109 = arith.constant 0 : index
    %110 = vector.load %arg4[%c4_107, %c0_108, %c0_109] : memref<9x32x64xbf16, #tpu.memory_space<vmem>>, vector<1x32x64xbf16>
    %111 = vector.shape_cast %110 : vector<1x32x64xbf16> to vector<32x64xbf16>
    %cst_110 = arith.constant dense<0.000000e+00> : vector<64x64xf32>
    %112 = tpu.matmul %109, %111, %cst_110 {dimension_numbers = #tpu.dot_dimension_numbers<[1], [0], [0], [1], [0, 0, 1, 1], [], []>} : vector<64x32xbf16>, vector<32x64xbf16>, vector<64x64xf32> -> vector<64x64xf32>
    %113 = arith.addf %106, %112 : vector<64x64xf32>
    %c1_111 = arith.constant 1 : index
    %c2_112 = arith.constant 2 : index
    %c0_113 = arith.constant 0 : index
    %114 = vector.load %arg19[%c1_111, %c2_112, %c0_113] : memref<10x10x32xf32, #tpu.memory_space<vmem>>, vector<8x8x32xf32>
    %115 = vector.shape_cast %114 : vector<8x8x32xf32> to vector<64x32xf32>
    %116 = arith.truncf %115 : vector<64x32xf32> to vector<64x32xbf16>
    %c5_114 = arith.constant 5 : index
    %c0_115 = arith.constant 0 : index
    %c0_116 = arith.constant 0 : index
    %117 = vector.load %arg4[%c5_114, %c0_115, %c0_116] : memref<9x32x64xbf16, #tpu.memory_space<vmem>>, vector<1x32x64xbf16>
    %118 = vector.shape_cast %117 : vector<1x32x64xbf16> to vector<32x64xbf16>
    %cst_117 = arith.constant dense<0.000000e+00> : vector<64x64xf32>
    %119 = tpu.matmul %116, %118, %cst_117 {dimension_numbers = #tpu.dot_dimension_numbers<[1], [0], [0], [1], [0, 0, 1, 1], [], []>} : vector<64x32xbf16>, vector<32x64xbf16>, vector<64x64xf32> -> vector<64x64xf32>
    %120 = arith.addf %113, %119 : vector<64x64xf32>
    %c2_118 = arith.constant 2 : index
    %c0_119 = arith.constant 0 : index
    %c0_120 = arith.constant 0 : index
    %121 = vector.load %arg19[%c2_118, %c0_119, %c0_120] : memref<10x10x32xf32, #tpu.memory_space<vmem>>, vector<8x8x32xf32>
    %122 = vector.shape_cast %121 : vector<8x8x32xf32> to vector<64x32xf32>
    %123 = arith.truncf %122 : vector<64x32xf32> to vector<64x32xbf16>
    %c6_121 = arith.constant 6 : index
    %c0_122 = arith.constant 0 : index
    %c0_123 = arith.constant 0 : index
    %124 = vector.load %arg4[%c6_121, %c0_122, %c0_123] : memref<9x32x64xbf16, #tpu.memory_space<vmem>>, vector<1x32x64xbf16>
    %125 = vector.shape_cast %124 : vector<1x32x64xbf16> to vector<32x64xbf16>
    %cst_124 = arith.constant dense<0.000000e+00> : vector<64x64xf32>
    %126 = tpu.matmul %123, %125, %cst_124 {dimension_numbers = #tpu.dot_dimension_numbers<[1], [0], [0], [1], [0, 0, 1, 1], [], []>} : vector<64x32xbf16>, vector<32x64xbf16>, vector<64x64xf32> -> vector<64x64xf32>
    %127 = arith.addf %120, %126 : vector<64x64xf32>
    %c2_125 = arith.constant 2 : index
    %c1_126 = arith.constant 1 : index
    %c0_127 = arith.constant 0 : index
    %128 = vector.load %arg19[%c2_125, %c1_126, %c0_127] : memref<10x10x32xf32, #tpu.memory_space<vmem>>, vector<8x8x32xf32>
    %129 = vector.shape_cast %128 : vector<8x8x32xf32> to vector<64x32xf32>
    %130 = arith.truncf %129 : vector<64x32xf32> to vector<64x32xbf16>
    %c7_128 = arith.constant 7 : index
    %c0_129 = arith.constant 0 : index
    %c0_130 = arith.constant 0 : index
    %131 = vector.load %arg4[%c7_128, %c0_129, %c0_130] : memref<9x32x64xbf16, #tpu.memory_space<vmem>>, vector<1x32x64xbf16>
    %132 = vector.shape_cast %131 : vector<1x32x64xbf16> to vector<32x64xbf16>
    %cst_131 = arith.constant dense<0.000000e+00> : vector<64x64xf32>
    %133 = tpu.matmul %130, %132, %cst_131 {dimension_numbers = #tpu.dot_dimension_numbers<[1], [0], [0], [1], [0, 0, 1, 1], [], []>} : vector<64x32xbf16>, vector<32x64xbf16>, vector<64x64xf32> -> vector<64x64xf32>
    %134 = arith.addf %127, %133 : vector<64x64xf32>
    %c2_132 = arith.constant 2 : index
    %c2_133 = arith.constant 2 : index
    %c0_134 = arith.constant 0 : index
    %135 = vector.load %arg19[%c2_132, %c2_133, %c0_134] : memref<10x10x32xf32, #tpu.memory_space<vmem>>, vector<8x8x32xf32>
    %136 = vector.shape_cast %135 : vector<8x8x32xf32> to vector<64x32xf32>
    %137 = arith.truncf %136 : vector<64x32xf32> to vector<64x32xbf16>
    %c8_135 = arith.constant 8 : index
    %c0_136 = arith.constant 0 : index
    %c0_137 = arith.constant 0 : index
    %138 = vector.load %arg4[%c8_135, %c0_136, %c0_137] : memref<9x32x64xbf16, #tpu.memory_space<vmem>>, vector<1x32x64xbf16>
    %139 = vector.shape_cast %138 : vector<1x32x64xbf16> to vector<32x64xbf16>
    %cst_138 = arith.constant dense<0.000000e+00> : vector<64x64xf32>
    %140 = tpu.matmul %137, %139, %cst_138 {dimension_numbers = #tpu.dot_dimension_numbers<[1], [0], [0], [1], [0, 0, 1, 1], [], []>} : vector<64x32xbf16>, vector<32x64xbf16>, vector<64x64xf32> -> vector<64x64xf32>
    %141 = arith.addf %134, %140 : vector<64x64xf32>
    %c0_139 = arith.constant 0 : index
    %c0_140 = arith.constant 0 : index
    %142 = vector.load %arg5[%c0_139, %c0_140] : memref<1x64xf32, #tpu.memory_space<vmem>>, vector<1x64xf32>
    %143 = vector.broadcast %142 : vector<1x64xf32> to vector<64x64xf32>
    %144 = arith.addf %141, %143 : vector<64x64xf32>
    %cst_141 = arith.constant 0.000000e+00 : f32
    %145 = vector.broadcast %cst_141 : f32 to vector<64x64xf32>
    %146 = arith.maximumf %144, %145 : vector<64x64xf32>
    %147 = vector.shape_cast %146 : vector<64x64xf32> to vector<8x8x64xf32>
    %cst_142 = arith.constant 0.000000e+00 : f32
    %148 = vector.broadcast %cst_142 : f32 to vector<10x10x64xf32>
    %c0_143 = arith.constant 0 : index
    %c0_144 = arith.constant 0 : index
    %c0_145 = arith.constant 0 : index
    %149 = vector.load %arg20[%c0_143, %c0_144, %c0_145] : memref<10x10x64xf32, #tpu.memory_space<vmem>>, vector<10x10x64xf32>
    tpu.vector_store %arg20[%c0_143, %c0_144, %c0_145], %148 {strides = array<i32>} : memref<10x10x64xf32, #tpu.memory_space<vmem>>, vector<10x10x64xf32>,
    %c1_146 = arith.constant 1 : index
    %c1_147 = arith.constant 1 : index
    %c0_148 = arith.constant 0 : index
    %150 = vector.load %arg20[%c1_146, %c1_147, %c0_148] : memref<10x10x64xf32, #tpu.memory_space<vmem>>, vector<8x8x64xf32>
    tpu.vector_store %arg20[%c1_146, %c1_147, %c0_148], %147 {strides = array<i32>} : memref<10x10x64xf32, #tpu.memory_space<vmem>>, vector<8x8x64xf32>,
    %cst_149 = arith.constant 0.000000e+00 : f32
    %151 = vector.broadcast %cst_149 : f32 to vector<64x128xf32>
    %c0_150 = arith.constant 0 : index
    %c0_151 = arith.constant 0 : index
    %c0_152 = arith.constant 0 : index
    %152 = vector.load %arg20[%c0_150, %c0_151, %c0_152] : memref<10x10x64xf32, #tpu.memory_space<vmem>>, vector<8x8x64xf32>
    %153 = vector.shape_cast %152 : vector<8x8x64xf32> to vector<64x64xf32>
    %154 = arith.truncf %153 : vector<64x64xf32> to vector<64x64xbf16>
    %c0_153 = arith.constant 0 : index
    %c0_154 = arith.constant 0 : index
    %c0_155 = arith.constant 0 : index
    %155 = vector.load %arg6[%c0_153, %c0_154, %c0_155] : memref<9x64x128xbf16, #tpu.memory_space<vmem>>, vector<1x64x128xbf16>
    %156 = vector.shape_cast %155 : vector<1x64x128xbf16> to vector<64x128xbf16>
    %cst_156 = arith.constant dense<0.000000e+00> : vector<64x128xf32>
    %157 = tpu.matmul %154, %156, %cst_156 {dimension_numbers = #tpu.dot_dimension_numbers<[1], [0], [0], [1], [0, 0, 1, 1], [], []>} : vector<64x64xbf16>, vector<64x128xbf16>, vector<64x128xf32> -> vector<64x128xf32>
    %158 = arith.addf %151, %157 : vector<64x128xf32>
    %c0_157 = arith.constant 0 : index
    %c1_158 = arith.constant 1 : index
    %c0_159 = arith.constant 0 : index
    %159 = vector.load %arg20[%c0_157, %c1_158, %c0_159] : memref<10x10x64xf32, #tpu.memory_space<vmem>>, vector<8x8x64xf32>
    %160 = vector.shape_cast %159 : vector<8x8x64xf32> to vector<64x64xf32>
    %161 = arith.truncf %160 : vector<64x64xf32> to vector<64x64xbf16>
    %c1_160 = arith.constant 1 : index
    %c0_161 = arith.constant 0 : index
    %c0_162 = arith.constant 0 : index
    %162 = vector.load %arg6[%c1_160, %c0_161, %c0_162] : memref<9x64x128xbf16, #tpu.memory_space<vmem>>, vector<1x64x128xbf16>
    %163 = vector.shape_cast %162 : vector<1x64x128xbf16> to vector<64x128xbf16>
    %cst_163 = arith.constant dense<0.000000e+00> : vector<64x128xf32>
    %164 = tpu.matmul %161, %163, %cst_163 {dimension_numbers = #tpu.dot_dimension_numbers<[1], [0], [0], [1], [0, 0, 1, 1], [], []>} : vector<64x64xbf16>, vector<64x128xbf16>, vector<64x128xf32> -> vector<64x128xf32>
    %165 = arith.addf %158, %164 : vector<64x128xf32>
    %c0_164 = arith.constant 0 : index
    %c2_165 = arith.constant 2 : index
    %c0_166 = arith.constant 0 : index
    %166 = vector.load %arg20[%c0_164, %c2_165, %c0_166] : memref<10x10x64xf32, #tpu.memory_space<vmem>>, vector<8x8x64xf32>
    %167 = vector.shape_cast %166 : vector<8x8x64xf32> to vector<64x64xf32>
    %168 = arith.truncf %167 : vector<64x64xf32> to vector<64x64xbf16>
    %c2_167 = arith.constant 2 : index
    %c0_168 = arith.constant 0 : index
    %c0_169 = arith.constant 0 : index
    %169 = vector.load %arg6[%c2_167, %c0_168, %c0_169] : memref<9x64x128xbf16, #tpu.memory_space<vmem>>, vector<1x64x128xbf16>
    %170 = vector.shape_cast %169 : vector<1x64x128xbf16> to vector<64x128xbf16>
    %cst_170 = arith.constant dense<0.000000e+00> : vector<64x128xf32>
    %171 = tpu.matmul %168, %170, %cst_170 {dimension_numbers = #tpu.dot_dimension_numbers<[1], [0], [0], [1], [0, 0, 1, 1], [], []>} : vector<64x64xbf16>, vector<64x128xbf16>, vector<64x128xf32> -> vector<64x128xf32>
    %172 = arith.addf %165, %171 : vector<64x128xf32>
    %c1_171 = arith.constant 1 : index
    %c0_172 = arith.constant 0 : index
    %c0_173 = arith.constant 0 : index
    %173 = vector.load %arg20[%c1_171, %c0_172, %c0_173] : memref<10x10x64xf32, #tpu.memory_space<vmem>>, vector<8x8x64xf32>
    %174 = vector.shape_cast %173 : vector<8x8x64xf32> to vector<64x64xf32>
    %175 = arith.truncf %174 : vector<64x64xf32> to vector<64x64xbf16>
    %c3_174 = arith.constant 3 : index
    %c0_175 = arith.constant 0 : index
    %c0_176 = arith.constant 0 : index
    %176 = vector.load %arg6[%c3_174, %c0_175, %c0_176] : memref<9x64x128xbf16, #tpu.memory_space<vmem>>, vector<1x64x128xbf16>
    %177 = vector.shape_cast %176 : vector<1x64x128xbf16> to vector<64x128xbf16>
    %cst_177 = arith.constant dense<0.000000e+00> : vector<64x128xf32>
    %178 = tpu.matmul %175, %177, %cst_177 {dimension_numbers = #tpu.dot_dimension_numbers<[1], [0], [0], [1], [0, 0, 1, 1], [], []>} : vector<64x64xbf16>, vector<64x128xbf16>, vector<64x128xf32> -> vector<64x128xf32>
    %179 = arith.addf %172, %178 : vector<64x128xf32>
    %c1_178 = arith.constant 1 : index
    %c1_179 = arith.constant 1 : index
    %c0_180 = arith.constant 0 : index
    %180 = vector.load %arg20[%c1_178, %c1_179, %c0_180] : memref<10x10x64xf32, #tpu.memory_space<vmem>>, vector<8x8x64xf32>
    %181 = vector.shape_cast %180 : vector<8x8x64xf32> to vector<64x64xf32>
    %182 = arith.truncf %181 : vector<64x64xf32> to vector<64x64xbf16>
    %c4_181 = arith.constant 4 : index
    %c0_182 = arith.constant 0 : index
    %c0_183 = arith.constant 0 : index
    %183 = vector.load %arg6[%c4_181, %c0_182, %c0_183] : memref<9x64x128xbf16, #tpu.memory_space<vmem>>, vector<1x64x128xbf16>
    %184 = vector.shape_cast %183 : vector<1x64x128xbf16> to vector<64x128xbf16>
    %cst_184 = arith.constant dense<0.000000e+00> : vector<64x128xf32>
    %185 = tpu.matmul %182, %184, %cst_184 {dimension_numbers = #tpu.dot_dimension_numbers<[1], [0], [0], [1], [0, 0, 1, 1], [], []>} : vector<64x64xbf16>, vector<64x128xbf16>, vector<64x128xf32> -> vector<64x128xf32>
    %186 = arith.addf %179, %185 : vector<64x128xf32>
    %c1_185 = arith.constant 1 : index
    %c2_186 = arith.constant 2 : index
    %c0_187 = arith.constant 0 : index
    %187 = vector.load %arg20[%c1_185, %c2_186, %c0_187] : memref<10x10x64xf32, #tpu.memory_space<vmem>>, vector<8x8x64xf32>
    %188 = vector.shape_cast %187 : vector<8x8x64xf32> to vector<64x64xf32>
    %189 = arith.truncf %188 : vector<64x64xf32> to vector<64x64xbf16>
    %c5_188 = arith.constant 5 : index
    %c0_189 = arith.constant 0 : index
    %c0_190 = arith.constant 0 : index
    %190 = vector.load %arg6[%c5_188, %c0_189, %c0_190] : memref<9x64x128xbf16, #tpu.memory_space<vmem>>, vector<1x64x128xbf16>
    %191 = vector.shape_cast %190 : vector<1x64x128xbf16> to vector<64x128xbf16>
    %cst_191 = arith.constant dense<0.000000e+00> : vector<64x128xf32>
    %192 = tpu.matmul %189, %191, %cst_191 {dimension_numbers = #tpu.dot_dimension_numbers<[1], [0], [0], [1], [0, 0, 1, 1], [], []>} : vector<64x64xbf16>, vector<64x128xbf16>, vector<64x128xf32> -> vector<64x128xf32>
    %193 = arith.addf %186, %192 : vector<64x128xf32>
    %c2_192 = arith.constant 2 : index
    %c0_193 = arith.constant 0 : index
    %c0_194 = arith.constant 0 : index
    %194 = vector.load %arg20[%c2_192, %c0_193, %c0_194] : memref<10x10x64xf32, #tpu.memory_space<vmem>>, vector<8x8x64xf32>
    %195 = vector.shape_cast %194 : vector<8x8x64xf32> to vector<64x64xf32>
    %196 = arith.truncf %195 : vector<64x64xf32> to vector<64x64xbf16>
    %c6_195 = arith.constant 6 : index
    %c0_196 = arith.constant 0 : index
    %c0_197 = arith.constant 0 : index
    %197 = vector.load %arg6[%c6_195, %c0_196, %c0_197] : memref<9x64x128xbf16, #tpu.memory_space<vmem>>, vector<1x64x128xbf16>
    %198 = vector.shape_cast %197 : vector<1x64x128xbf16> to vector<64x128xbf16>
    %cst_198 = arith.constant dense<0.000000e+00> : vector<64x128xf32>
    %199 = tpu.matmul %196, %198, %cst_198 {dimension_numbers = #tpu.dot_dimension_numbers<[1], [0], [0], [1], [0, 0, 1, 1], [], []>} : vector<64x64xbf16>, vector<64x128xbf16>, vector<64x128xf32> -> vector<64x128xf32>
    %200 = arith.addf %193, %199 : vector<64x128xf32>
    %c2_199 = arith.constant 2 : index
    %c1_200 = arith.constant 1 : index
    %c0_201 = arith.constant 0 : index
    %201 = vector.load %arg20[%c2_199, %c1_200, %c0_201] : memref<10x10x64xf32, #tpu.memory_space<vmem>>, vector<8x8x64xf32>
    %202 = vector.shape_cast %201 : vector<8x8x64xf32> to vector<64x64xf32>
    %203 = arith.truncf %202 : vector<64x64xf32> to vector<64x64xbf16>
    %c7_202 = arith.constant 7 : index
    %c0_203 = arith.constant 0 : index
    %c0_204 = arith.constant 0 : index
    %204 = vector.load %arg6[%c7_202, %c0_203, %c0_204] : memref<9x64x128xbf16, #tpu.memory_space<vmem>>, vector<1x64x128xbf16>
    %205 = vector.shape_cast %204 : vector<1x64x128xbf16> to vector<64x128xbf16>
    %cst_205 = arith.constant dense<0.000000e+00> : vector<64x128xf32>
    %206 = tpu.matmul %203, %205, %cst_205 {dimension_numbers = #tpu.dot_dimension_numbers<[1], [0], [0], [1], [0, 0, 1, 1], [], []>} : vector<64x64xbf16>, vector<64x128xbf16>, vector<64x128xf32> -> vector<64x128xf32>
    %207 = arith.addf %200, %206 : vector<64x128xf32>
    %c2_206 = arith.constant 2 : index
    %c2_207 = arith.constant 2 : index
    %c0_208 = arith.constant 0 : index
    %208 = vector.load %arg20[%c2_206, %c2_207, %c0_208] : memref<10x10x64xf32, #tpu.memory_space<vmem>>, vector<8x8x64xf32>
    %209 = vector.shape_cast %208 : vector<8x8x64xf32> to vector<64x64xf32>
    %210 = arith.truncf %209 : vector<64x64xf32> to vector<64x64xbf16>
    %c8_209 = arith.constant 8 : index
    %c0_210 = arith.constant 0 : index
    %c0_211 = arith.constant 0 : index
    %211 = vector.load %arg6[%c8_209, %c0_210, %c0_211] : memref<9x64x128xbf16, #tpu.memory_space<vmem>>, vector<1x64x128xbf16>
    %212 = vector.shape_cast %211 : vector<1x64x128xbf16> to vector<64x128xbf16>
    %cst_212 = arith.constant dense<0.000000e+00> : vector<64x128xf32>
    %213 = tpu.matmul %210, %212, %cst_212 {dimension_numbers = #tpu.dot_dimension_numbers<[1], [0], [0], [1], [0, 0, 1, 1], [], []>} : vector<64x64xbf16>, vector<64x128xbf16>, vector<64x128xf32> -> vector<64x128xf32>
    %214 = arith.addf %207, %213 : vector<64x128xf32>
    %c0_213 = arith.constant 0 : index
    %c0_214 = arith.constant 0 : index
    %215 = vector.load %arg7[%c0_213, %c0_214] : memref<1x128xf32, #tpu.memory_space<vmem>>, vector<1x128xf32>
    %216 = vector.broadcast %215 : vector<1x128xf32> to vector<64x128xf32>
    %217 = arith.addf %214, %216 : vector<64x128xf32>
    %cst_215 = arith.constant 0.000000e+00 : f32
    %218 = vector.broadcast %cst_215 : f32 to vector<64x128xf32>
    %219 = arith.maximumf %217, %218 : vector<64x128xf32>
    %220 = arith.truncf %219 : vector<64x128xf32> to vector<64x128xbf16>
    %c0_216 = arith.constant 0 : index
    %c0_217 = arith.constant 0 : index
    %221 = vector.load %arg8[%c0_216, %c0_217] : memref<128x6xbf16, #tpu.memory_space<vmem>>, vector<128x6xbf16>
    %cst_218 = arith.constant dense<0.000000e+00> : vector<64x6xf32>
    %222 = tpu.matmul %220, %221, %cst_218 {dimension_numbers = #tpu.dot_dimension_numbers<[1], [0], [0], [1], [0, 0, 1, 1], [], []>} : vector<64x128xbf16>, vector<128x6xbf16>, vector<64x6xf32> -> vector<64x6xf32>
    %c0_219 = arith.constant 0 : index
    %c0_220 = arith.constant 0 : index
    %223 = vector.load %arg9[%c0_219, %c0_220] : memref<1x6xf32, #tpu.memory_space<vmem>>, vector<1x6xf32>
    %224 = vector.broadcast %223 : vector<1x6xf32> to vector<64x6xf32>
    %225 = arith.addf %222, %224 : vector<64x6xf32>
    %cst_221 = arith.constant 0.000000e+00 : f32
    %226 = vector.broadcast %cst_221 : f32 to vector<64x6xf32>
    %227 = arith.maximumf %225, %226 : vector<64x6xf32>
    %cst_222 = arith.constant 0.000000e+00 : f32
    %228 = vector.broadcast %cst_222 : f32 to vector<64x64xf32>
    %229 = vector.extract_strided_slice %227 {offsets = [0, 0], sizes = [64, 1], strides = [1, 1]} : vector<64x6xf32> to vector<64x1xf32>
    %c0_223 = arith.constant 0 : index
    %c0_224 = arith.constant 0 : index
    %c0_225 = arith.constant 0 : index
    %230 = vector.load %arg10[%c0_223, %c0_224, %c0_225] : memref<4x64x64xf32, #tpu.memory_space<vmem>>, vector<1x64x64xf32>
    %231 = vector.shape_cast %230 : vector<1x64x64xf32> to vector<64x64xf32>
    %232 = vector.broadcast %229 : vector<64x1xf32> to vector<64x64xf32>
    %233 = arith.mulf %232, %231 : vector<64x64xf32>
    %234 = arith.addf %228, %233 : vector<64x64xf32>
    %235 = vector.extract_strided_slice %227 {offsets = [0, 1], sizes = [64, 1], strides = [1, 1]} : vector<64x6xf32> to vector<64x1xf32>
    %c1_226 = arith.constant 1 : index
    %c0_227 = arith.constant 0 : index
    %c0_228 = arith.constant 0 : index
    %236 = vector.load %arg10[%c1_226, %c0_227, %c0_228] : memref<4x64x64xf32, #tpu.memory_space<vmem>>, vector<1x64x64xf32>
    %237 = vector.shape_cast %236 : vector<1x64x64xf32> to vector<64x64xf32>
    %238 = vector.broadcast %235 : vector<64x1xf32> to vector<64x64xf32>
    %239 = arith.mulf %238, %237 : vector<64x64xf32>
    %240 = arith.addf %234, %239 : vector<64x64xf32>
    %241 = vector.extract_strided_slice %227 {offsets = [0, 2], sizes = [64, 1], strides = [1, 1]} : vector<64x6xf32> to vector<64x1xf32>
    %c2_229 = arith.constant 2 : index
    %c0_230 = arith.constant 0 : index
    %c0_231 = arith.constant 0 : index
    %242 = vector.load %arg10[%c2_229, %c0_230, %c0_231] : memref<4x64x64xf32, #tpu.memory_space<vmem>>, vector<1x64x64xf32>
    %243 = vector.shape_cast %242 : vector<1x64x64xf32> to vector<64x64xf32>
    %244 = vector.broadcast %241 : vector<64x1xf32> to vector<64x64xf32>
    %245 = arith.mulf %244, %243 : vector<64x64xf32>
    %246 = arith.addf %240, %245 : vector<64x64xf32>
    %247 = vector.extract_strided_slice %227 {offsets = [0, 3], sizes = [64, 1], strides = [1, 1]} : vector<64x6xf32> to vector<64x1xf32>
    %c3_232 = arith.constant 3 : index
    %c0_233 = arith.constant 0 : index
    %c0_234 = arith.constant 0 : index
    %248 = vector.load %arg10[%c3_232, %c0_233, %c0_234] : memref<4x64x64xf32, #tpu.memory_space<vmem>>, vector<1x64x64xf32>
    %249 = vector.shape_cast %248 : vector<1x64x64xf32> to vector<64x64xf32>
    %250 = vector.broadcast %247 : vector<64x1xf32> to vector<64x64xf32>
    %251 = arith.mulf %250, %249 : vector<64x64xf32>
    %252 = arith.addf %246, %251 : vector<64x64xf32>
    %cst_235 = arith.constant dense<0.000000e+00> : vector<64xf32>
    %253 = vector.multi_reduction <add>, %252, %cst_235 [0] : vector<64x64xf32> to vector<64xf32>
    %254 = vector.shape_cast %253 : vector<64xf32> to vector<1x64xf32>
    %c0_236 = arith.constant 0 : index
    %c0_237 = arith.constant 0 : index
    %255 = vector.load %arg11[%c0_236, %c0_237] : memref<1x64xf32, #tpu.memory_space<vmem>>, vector<1x64xf32>
    %256 = arith.addf %254, %255 : vector<1x64xf32>
    %cst_238 = arith.constant dense<0xFF800000> : vector<1xf32>
    %257 = vector.multi_reduction <maximumf>, %256, %cst_238 [1] : vector<1x64xf32> to vector<1xf32>
    %258 = vector.shape_cast %257 : vector<1xf32> to vector<1x1xf32>
    %259 = vector.broadcast %258 : vector<1x1xf32> to vector<1x64xf32>
    %260 = arith.subf %256, %259 : vector<1x64xf32>
    %261 = math.exp %260 : vector<1x64xf32>
    %cst_239 = arith.constant dense<0.000000e+00> : vector<1xf32>
    %262 = vector.multi_reduction <add>, %261, %cst_239 [1] : vector<1x64xf32> to vector<1xf32>
    %263 = vector.shape_cast %262 : vector<1xf32> to vector<1x1xf32>
    %264 = math.log %263 : vector<1x1xf32>
    %265 = vector.broadcast %264 : vector<1x1xf32> to vector<1x64xf32>
    %266 = arith.subf %260, %265 : vector<1x64xf32>
    %c0_240 = arith.constant 0 : index
    %c0_241 = arith.constant 0 : index
    %c0_242 = arith.constant 0 : index
    %267 = vector.load %arg16[%c0_240, %c0_241, %c0_242] : memref<1x1x64xf32, #tpu.memory_space<vmem>>, vector<1x1x64xf32>
    %268 = vector.shape_cast %267 : vector<1x1x64xf32> to vector<1x64xf32>
    %269 = vector.shape_cast %266 : vector<1x64xf32> to vector<1x1x64xf32>
    tpu.vector_store %arg16[%c0_240, %c0_241, %c0_242], %269 {strides = array<i32>} : memref<1x1x64xf32, #tpu.memory_space<vmem>>, vector<1x1x64xf32>,
    %cst_243 = arith.constant 0.000000e+00 : f32
    %270 = vector.broadcast %cst_243 : f32 to vector<64x64xf32>
    %271 = vector.extract_strided_slice %227 {offsets = [0, 4], sizes = [64, 1], strides = [1, 1]} : vector<64x6xf32> to vector<64x1xf32>
    %c0_244 = arith.constant 0 : index
    %c0_245 = arith.constant 0 : index
    %c0_246 = arith.constant 0 : index
    %272 = vector.load %arg12[%c0_244, %c0_245, %c0_246] : memref<2x64x64xf32, #tpu.memory_space<vmem>>, vector<1x64x64xf32>
    %273 = vector.shape_cast %272 : vector<1x64x64xf32> to vector<64x64xf32>
    %274 = vector.broadcast %271 : vector<64x1xf32> to vector<64x64xf32>
    %275 = arith.mulf %274, %273 : vector<64x64xf32>
    %276 = arith.addf %270, %275 : vector<64x64xf32>
    %277 = vector.extract_strided_slice %227 {offsets = [0, 5], sizes = [64, 1], strides = [1, 1]} : vector<64x6xf32> to vector<64x1xf32>
    %c1_247 = arith.constant 1 : index
    %c0_248 = arith.constant 0 : index
    %c0_249 = arith.constant 0 : index
    %278 = vector.load %arg12[%c1_247, %c0_248, %c0_249] : memref<2x64x64xf32, #tpu.memory_space<vmem>>, vector<1x64x64xf32>
    %279 = vector.shape_cast %278 : vector<1x64x64xf32> to vector<64x64xf32>
    %280 = vector.broadcast %277 : vector<64x1xf32> to vector<64x64xf32>
    %281 = arith.mulf %280, %279 : vector<64x64xf32>
    %282 = arith.addf %276, %281 : vector<64x64xf32>
    %cst_250 = arith.constant dense<0.000000e+00> : vector<64xf32>
    %283 = vector.multi_reduction <add>, %282, %cst_250 [0] : vector<64x64xf32> to vector<64xf32>
    %284 = vector.shape_cast %283 : vector<64xf32> to vector<1x64xf32>
    %c0_251 = arith.constant 0 : index
    %c0_252 = arith.constant 0 : index
    %285 = vector.load %arg13[%c0_251, %c0_252] : memref<1x64xf32, #tpu.memory_space<vmem>>, vector<1x64xf32>
    %286 = arith.addf %284, %285 : vector<1x64xf32>
    %cst_253 = arith.constant 0.000000e+00 : f32
    %287 = vector.broadcast %cst_253 : f32 to vector<1x64xf32>
    %288 = arith.maximumf %286, %287 : vector<1x64xf32>
    %c0_254 = arith.constant 0 : index
    %c0_255 = arith.constant 0 : index
    %289 = vector.load %arg14[%c0_254, %c0_255] : memref<1x64xf32, #tpu.memory_space<vmem>>, vector<1x64xf32>
    %290 = arith.mulf %288, %289 : vector<1x64xf32>
    %cst_256 = arith.constant dense<0.000000e+00> : vector<1xf32>
    %291 = vector.multi_reduction <add>, %290, %cst_256 [1] : vector<1x64xf32> to vector<1xf32>
    %292 = vector.shape_cast %291 : vector<1xf32> to vector<1x1xf32>
    %c0_257 = arith.constant 0 : index
    %c0_258 = arith.constant 0 : index
    %293 = vector.load %arg15[%c0_257, %c0_258] : memref<1x1xf32, #tpu.memory_space<vmem>>, vector<1x1xf32>
    %294 = arith.addf %292, %293 : vector<1x1xf32>
    %295 = math.tanh %294 : vector<1x1xf32>
    %c0_259 = arith.constant 0 : index
    %c0_260 = arith.constant 0 : index
    %c0_261 = arith.constant 0 : index
    %296 = vector.load %arg17[%c0_259, %c0_260, %c0_261] : memref<1x1x1xf32, #tpu.memory_space<vmem>>, vector<1x1x1xf32>
    %297 = vector.shape_cast %296 : vector<1x1x1xf32> to vector<1x1xf32>
    %298 = vector.shape_cast %295 : vector<1x1xf32> to vector<1x1x1xf32>
    tpu.vector_store %arg17[%c0_259, %c0_260, %c0_261], %298 {strides = array<i32>} : memref<1x1x1xf32, #tpu.memory_space<vmem>>, vector<1x1x1xf32>,
    return
  }
  func.func @transform_0(%arg0: i32) -> (i32, i32, i32, i32) {
    %c0_i32 = arith.constant 0 : i32
    %c0_i32_0 = arith.constant 0 : i32
    %c0_i32_1 = arith.constant 0 : i32
    %c0_i32_2 = arith.constant 0 : i32
    return %arg0, %c0_i32, %c0_i32_0, %c0_i32_1 : i32, i32, i32, i32
  }
  func.func @transform_1(%arg0: i32) -> (i32, i32, i32) {
    %c0_i32 = arith.constant 0 : i32
    %c0_i32_0 = arith.constant 0 : i32
    %c0_i32_1 = arith.constant 0 : i32
    %c0_i32_2 = arith.constant 0 : i32
    return %c0_i32, %c0_i32_0, %c0_i32_1 : i32, i32, i32
  }
  func.func @transform_2(%arg0: i32) -> (i32, i32) {
    %c0_i32 = arith.constant 0 : i32
    %c0_i32_0 = arith.constant 0 : i32
    %c0_i32_1 = arith.constant 0 : i32
    return %c0_i32, %c0_i32_0 : i32, i32
  }
  func.func @transform_3(%arg0: i32) -> (i32, i32, i32) {
    %c0_i32 = arith.constant 0 : i32
    %c0_i32_0 = arith.constant 0 : i32
    %c0_i32_1 = arith.constant 0 : i32
    %c0_i32_2 = arith.constant 0 : i32
    return %c0_i32, %c0_i32_0, %c0_i32_1 : i32, i32, i32
  }
  func.func @transform_4(%arg0: i32) -> (i32, i32) {
    %c0_i32 = arith.constant 0 : i32
    %c0_i32_0 = arith.constant 0 : i32
    %c0_i32_1 = arith.constant 0 : i32
    return %c0_i32, %c0_i32_0 : i32, i32
  }
  func.func @transform_5(%arg0: i32) -> (i32, i32, i32) {
    %c0_i32 = arith.constant 0 : i32
    %c0_i32_0 = arith.constant 0 : i32
    %c0_i32_1 = arith.constant 0 : i32
    %c0_i32_2 = arith.constant 0 : i32
    return %c0_i32, %c0_i32_0, %c0_i32_1 : i32, i32, i32
  }
  func.func @transform_6(%arg0: i32) -> (i32, i32) {
    %c0_i32 = arith.constant 0 : i32
    %c0_i32_0 = arith.constant 0 : i32
    %c0_i32_1 = arith.constant 0 : i32
    return %c0_i32, %c0_i32_0 : i32, i32
  }
  func.func @transform_7(%arg0: i32) -> (i32, i32) {
    %c0_i32 = arith.constant 0 : i32
    %c0_i32_0 = arith.constant 0 : i32
    %c0_i32_1 = arith.constant 0 : i32
    return %c0_i32, %c0_i32_0 : i32, i32
  }
  func.func @transform_8(%arg0: i32) -> (i32, i32) {
    %c0_i32 = arith.constant 0 : i32
    %c0_i32_0 = arith.constant 0 : i32
    %c0_i32_1 = arith.constant 0 : i32
    return %c0_i32, %c0_i32_0 : i32, i32
  }
  func.func @transform_9(%arg0: i32) -> (i32, i32, i32) {
    %c0_i32 = arith.constant 0 : i32
    %c0_i32_0 = arith.constant 0 : i32
    %c0_i32_1 = arith.constant 0 : i32
    %c0_i32_2 = arith.constant 0 : i32
    return %c0_i32, %c0_i32_0, %c0_i32_1 : i32, i32, i32
  }
  func.func @transform_10(%arg0: i32) -> (i32, i32) {
    %c0_i32 = arith.constant 0 : i32
    %c0_i32_0 = arith.constant 0 : i32
    %c0_i32_1 = arith.constant 0 : i32
    return %c0_i32, %c0_i32_0 : i32, i32
  }
  func.func @transform_11(%arg0: i32) -> (i32, i32, i32) {
    %c0_i32 = arith.constant 0 : i32
    %c0_i32_0 = arith.constant 0 : i32
    %c0_i32_1 = arith.constant 0 : i32
    %c0_i32_2 = arith.constant 0 : i32
    return %c0_i32, %c0_i32_0, %c0_i32_1 : i32, i32, i32
  }
  func.func @transform_12(%arg0: i32) -> (i32, i32) {
    %c0_i32 = arith.constant 0 : i32
    %c0_i32_0 = arith.constant 0 : i32
    %c0_i32_1 = arith.constant 0 : i32
    return %c0_i32, %c0_i32_0 : i32, i32
  }
  func.func @transform_13(%arg0: i32) -> (i32, i32) {
    %c0_i32 = arith.constant 0 : i32
    %c0_i32_0 = arith.constant 0 : i32
    %c0_i32_1 = arith.constant 0 : i32
    return %c0_i32, %c0_i32_0 : i32, i32
  }
  func.func @transform_14(%arg0: i32) -> (i32, i32) {
    %c0_i32 = arith.constant 0 : i32
    %c0_i32_0 = arith.constant 0 : i32
    %c0_i32_1 = arith.constant 0 : i32
    return %c0_i32, %c0_i32_0 : i32, i32
  }
  func.func @transform_15(%arg0: i32) -> (i32, i32, i32) {
    %c0_i32 = arith.constant 0 : i32
    %c0_i32_0 = arith.constant 0 : i32
    %c0_i32_1 = arith.constant 0 : i32
    return %arg0, %c0_i32, %c0_i32_0 : i32, i32, i32
  }
  func.func @transform_16(%arg0: i32) -> (i32, i32, i32) {
    %c0_i32 = arith.constant 0 : i32
    %c0_i32_0 = arith.constant 0 : i32
    %c0_i32_1 = arith.constant 0 : i32
    return %arg0, %c0_i32, %c0_i32_0 : i32, i32, i32
  }
}

</mosaic_0001>

<bundles_post_ra>
// kernel: net_forward.1
= control target key start
LH: loop header
LB: loop body
LE: loop exit
PB: predicated region body
PF: predicated region fallthrough
CT: control target
= control target key end

     0   :  { %s6985_s0 = inlined_call_operand.vmem [shape: f32[2,8,8,4], index: 0, kind: input, shape index: {}]   ;;  %s6986_s1 = inlined_call_operand.hbm [shape: bf16[9,4,32], index: 1, kind: input, shape index: {}]   ;;  %s6987_s2 = inlined_call_operand.vmem [shape: f32[1,32], index: 2, kind: input, shape index: {}]   ;;  %s6988_s3 = inlined_call_operand.hbm [shape: bf16[9,32,64], index: 3, kind: input, shape index: {}]   ;;  %s6989_s4 = inlined_call_operand.vmem [shape: f32[1,64], index: 4, kind: input, shape index: {}]   ;;  %s6990_s5 = inlined_call_operand.vmem [shape: bf16[9,64,128], index: 5, kind: input, shape index: {}]   ;;  %s6991_s6 = inlined_call_operand.vmem [shape: f32[1,128], index: 6, kind: input, shape index: {}]   ;;  %s6992_s7 = inlined_call_operand.vmem [shape: bf16[128,6], index: 7, kind: input, shape index: {}]   ;;  %s6993_s8 = inlined_call_operand.vmem [shape: f32[1,6], index: 8, kind: input, shape index: {}]   ;;  %s6994_s9 = inlined_call_operand.hbm [shape: f32[4,64,64], index: 9, kind: input, shape index: {}]   ;;  %s6995_s10 = inlined_call_operand.vmem [shape: f32[1,64], index: 10, kind: input, shape index: {}]   ;;  %s6996_s11 = inlined_call_operand.hbm [shape: f32[2,64,64], index: 11, kind: input, shape index: {}]   ;;  %s6997_s12 = inlined_call_operand.vmem [shape: f32[1,64], index: 12, kind: input, shape index: {}]   ;;  %s6998_s13 = inlined_call_operand.vmem [shape: f32[1,64], index: 13, kind: input, shape index: {}]   ;;  %s6999_s14 = inlined_call_operand.<no memory space> [shape: f32[1,1], index: 14, kind: input, shape index: {}]   ;;  %s7000_s15 = inlined_call_operand.hbm [shape: f32[2,1,64], index: 15, kind: output, shape index: {0}]   ;;  %s7001_s16 = inlined_call_operand.vmem [shape: f32[2,1,1], index: 16, kind: output, shape index: {1}]  }
   0x1   :  { %7014 = sst [smem:[#allocation26_spill]] %s6985_s0  ;;  %v22_v0 = vstv %s6999_s14 }
   0x2   :  { %7015 = sst [smem:[#allocation27_spill]] %s6988_s3  ;;  %23 = vst [vmem:[#allocation5] sm:$0x1] %v22_v0 }
   0x3   :  { %7016 = sst [smem:[#allocation28_spill]] %s7000_s15 }
   0x4   :  { %7017 = sst [smem:[#allocation29_spill]] %s7001_s16 }
   0x5   :  { %24 = vsyncpa [#allocation7], 0 }
   0x6   :  { %25 = vsyncpa [#allocation10], 0 }
   0x7   :  { %26 = vsyncpa [#allocation13], 0 }
   0x8   :  { %27 = vsyncpa [#allocation8], 0 }
   0x9   :  { %29 = vsyncpa [#allocation8 + $0x1], 0  ;;  %s6028_s23 = smov 0   ;;  %s6030_s24 = smov 0  }
   0xa   :  { %s6032_s25 = smov 0   ;;  %s6034_s26 = smov 0  }
   0xb LB: > { %7018 = sst [smem:[#allocation19_spill]] %s5908_s23  ;;  %s6049_s14 = sadd.s32 4294967295, %s5920_s26   ;;  %s5920_s26 = sphi %s6034_s26, %s7048_s26   ;;  %s5916_s25 = sphi %s6032_s25, %s7050_s25   ;;  %s5912_s24 = sphi %s6030_s24, %s7052_s24   ;;  %s5908_s23 = sphi %s6028_s23, %s7051_s23  }
   0xc   : > { %7019 = sst [smem:[#allocation20_spill]] %s5916_s25  ;;  %s4528_s27 = sadd.s32 4294967294, %s5920_s26  }
   0xd   : > { %7020 = sst [smem:[#allocation21_spill]] %s5920_s26  ;;  %s6053_s28 = sadd.s32 1, %s5920_s26  }
   0xe   : > { %7021 = sst [smem:[#allocation22_spill]] %s6053_s28  ;;  %s362_s29 = sadd.s32 1, %s5916_s25 }
   0xf   : > { %s359_s30 = ssub.s32 %s5920_s26, %s6053_s28  ;;  %p372_p0 = scmp.ne.s32.totalorder %s5916_s25, %s5912_s24 }
  0x10   : > { %p360_p1 = scmp.eq.s32.totalorder %s359_s30, 0  ;;  %p373_p2 = scmp.eq.s32.totalorder %s6049_s14, 1 }
  0x11   : > { %p378_p3 = scmp.ne.s32.totalorder %s5912_s24, %s5908_s23  ;;  %p379_p4 = scmp.eq.s32.totalorder %s4528_s27, 1 }
  0x12   : > { %s6064_s0 = scalar_select %p360_p1, %s5916_s25, %s362_s29  }
  0x13   : > { %p6066_p5 = por %p373_p2, %p372_p0  ;;  %p6070_p6 = por %p379_p4, %p378_p3 }
  0x14   : > { %7022 = sst [smem:[#allocation23_spill]] %s6064_s0  ;;  %p4529_p7 = scmp.ge.s32.totalorder %s5920_s26, 1 }
  0x15   : > { %s7023_s17 = scalar_select %p6066_p5, 1, 0 }
  0x16   : > { %s7025_s18 = scalar_select %p6070_p6, 1, 0 }
  0x17   : > { %7024 = sst [smem:[#allocation24_spill]] %s7023_s17  ;;  %p412_p8 = scmp.lt.s32.totalorder %s5920_s26, 3 }
  0x18   : > { %7026 = sst [smem:[#allocation25_spill]] %s7025_s18  ;;  %p7007_p9 = scmp.eq.s32.totalorder %s6049_s14, 0 }
  0x19   : > { %p6077_p10 = pnand %p4529_p7, %p412_p8  ;;  %s5922_s20 = smov [#allocation9]  }
  0x1a   : > { %s440_s21 = sshll.u32 %s5922_s20, 4  ;;  %s5923_s27 = smov [#allocation6]   ;;  %s441_s21 = int_to_ptr.vmem [resolvable:$true] %s440_s21 }
  0x1b   : > { %s7027_s19 = scalar_select %p6077_p10, 1, 0 }
  0x1c   : > { %p5555_p11 = pneg %p6077_p10  ;;  %s424_s29 = sshll.u32 %s5923_s27, 4  ;;  %s6089_s29 = int_to_ptr.vmem [resolvable:$true] %s424_s29 }
  0x1d   : > { %s7029_s3 = sld [smem:[#allocation27_spill]] }
  0x1e   : > { %p6085_p12 = pnand %p7007_p9, %p5555_p11 }
  0x20   : > { %p6099_p0 = pneg %p6085_p12 }
  0x23   : > { %s5734_s25 = scalar_lea.hbm %s7029_s3, 2304 }
  0x24   : > { %p5735_p13 = scmp.ne.s32.totalorder %s7029_s3, %s5734_s25  ;;  %p5741_p3 = scmp.lt.u32.totalorder %s5734_s25, %s7029_s3 }
  0x26   : > { %p5737_p1 = pnand %p6099_p0, %p5735_p13 }
  0x28   : > { %p5738_p2 = pneg %p5737_p1 }
  0x2a   : > { %p5743_p4 = pnand %p5741_p3, %p5738_p2 }
  0x2c   : > { %5746 = shalt.err (!%p5743_p4)
}
  0x2d   : > { %s5747_s0 = scalar_lea.vmem %s441_s21, 2304  ;;  %p5755_p9 = scmp.lt.s32.totalorder %s441_s21, %s441_s21 }
  0x2e   : > { %p5748_p7 = scmp.ne.s32.totalorder %s441_s21, %s5747_s0  ;;  %p5756_p6 = scmp.lt.s32.totalorder %s5747_s0, %s5747_s0 }
  0x30   : > { %p5750_p8 = pnand %p5748_p7, %p6099_p0  ;;  %p5757_p5 = por %p5756_p6, %p5755_p9 }
  0x32   : > { %p5751_p11 = pneg %p5750_p8 }
  0x34   : > { %p5758_p10 = pnand %p5757_p5, %p5751_p11 }
  0x36   : > { %5761 = shalt.err (!%p5758_p10)
}
  0x37   : > { %s5924_s28 = smov 64   ;;  %s5925_s18 = smov 4  }
  0x38   : > { %5561 = dma.hbm_to_vmem [thread:$0]  (!%p6085_p12), %s7029_s3, 2304, %s441_s21, [#allocation10], %s5924_s28, %s5924_s28, %s5925_s18  }
  0x39   : > { %s5762_s26 = scalar_lea.hbm %s6986_s1, 288 }
  0x3a   : > { %p5763_p13 = scmp.ne.s32.totalorder %s6986_s1, %s5762_s26  ;;  %p5769_p9 = scmp.lt.u32.totalorder %s5762_s26, %s6986_s1 }
  0x3c   : > { %p5765_p5 = pnand %p5763_p13, %p6099_p0 }
  0x3e   : > { %p5766_p6 = pneg %p5765_p5 }
  0x40   : > { %p5771_p10 = pnand %p5769_p9, %p5766_p6 }
  0x42   : > { %5774 = shalt.err (!%p5771_p10)
}
  0x43   : > { %s5775_s21 = scalar_lea.vmem %s6089_s29, 288  ;;  %p5783_p4 = scmp.lt.s32.totalorder %s6089_s29, %s6089_s29 }
  0x44   : > { %p5776_p1 = scmp.ne.s32.totalorder %s6089_s29, %s5775_s21  ;;  %p5784_p7 = scmp.lt.s32.totalorder %s5775_s21, %s5775_s21 }
  0x46   : > { %p5778_p2 = pnand %p5776_p1, %p6099_p0  ;;  %p5785_p8 = por %p5784_p7, %p5783_p4 }
  0x48   : > { %p5779_p3 = pneg %p5778_p2 }
  0x4a   : > { %p5786_p11 = pnand %p5785_p8, %p5779_p3 }
  0x4c   : > { %5789 = shalt.err (!%p5786_p11)
}
  0x4d   : > { %s5926_s15 = smov 32   ;;  %s5927_s16 = smov 2  }
  0x4e   : > { %5558 = dma.hbm_to_vmem [thread:$0]  (!%p6085_p12), %s6986_s1, 288, %s6089_s29, [#allocation7], %s5926_s15, %s5926_s15, %s5927_s16  }
  0x4f   : > { %s5928_s28 = smov [#allocation11]   ;;  %s5790_s30 = scalar_lea.hbm %s6994_s9, 4096 }
  0x50   : > { %s468_s18 = sshll.u32 %s5928_s28, 4  ;;  %p5791_p13 = scmp.ne.s32.totalorder %s6994_s9, %s5790_s30  ;;  %s469_s18 = int_to_ptr.vmem [resolvable:$true] %s468_s18 }
  0x51   : > { %p5797_p9 = scmp.lt.u32.totalorder %s5790_s30, %s6994_s9 }
  0x52   : > { %p5793_p5 = pnand %p5791_p13, %p6099_p0 }
  0x54   : > { %p5794_p6 = pneg %p5793_p5 }
  0x56   : > { %p5799_p10 = pnand %p5797_p9, %p5794_p6 }
  0x58   : > { %5802 = shalt.err (!%p5799_p10)
}
  0x59   : > { %s5803_s29 = scalar_lea.vmem %s469_s18, 4096  ;;  %p5811_p4 = scmp.lt.s32.totalorder %s469_s18, %s469_s18 }
  0x5a   : > { %p5804_p1 = scmp.ne.s32.totalorder %s469_s18, %s5803_s29  ;;  %p5812_p7 = scmp.lt.s32.totalorder %s5803_s29, %s5803_s29 }
  0x5c   : > { %p5806_p2 = pnand %p5804_p1, %p6099_p0  ;;  %p5813_p8 = por %p5812_p7, %p5811_p4 }
  0x5e   : > { %p5807_p3 = pneg %p5806_p2 }
  0x60   : > { %p5814_p11 = pnand %p5813_p8, %p5807_p3 }
  0x62   : > { %5817 = shalt.err (!%p5814_p11)
}
  0x63   : > { %s5929_s15 = smov 128   ;;  %s5930_s16 = smov 8  }
  0x64   : > { %5564 = dma.hbm_to_vmem [thread:$0]  (!%p6085_p12), %s6994_s9, 4096, %s469_s18, [#allocation10], %s5929_s15, %s5929_s15, %s5930_s16  }
  0x65   : > { %s5931_s17 = smov [#allocation12]   ;;  %s5818_s30 = scalar_lea.hbm %s6996_s11, 2048 }
  0x66   : > { %s484_s28 = sshll.u32 %s5931_s17, 4  ;;  %p5819_p13 = scmp.ne.s32.totalorder %s6996_s11, %s5818_s30  ;;  %s485_s28 = int_to_ptr.vmem [resolvable:$true] %s484_s28 }
  0x67   : > { %p5825_p9 = scmp.lt.u32.totalorder %s5818_s30, %s6996_s11 }
  0x68   : > { %p5821_p5 = pnand %p5819_p13, %p6099_p0 }
  0x6a   : > { %p5822_p6 = pneg %p5821_p5 }
  0x6c   : > { %p5827_p10 = pnand %p5825_p9, %p5822_p6 }
  0x6e   : > { %5830 = shalt.err (!%p5827_p10)
}
  0x6f   : > { %s5831_s18 = scalar_lea.vmem %s485_s28, 2048  ;;  %p5839_p4 = scmp.lt.s32.totalorder %s485_s28, %s485_s28 }
  0x70   : > { %p5832_p1 = scmp.ne.s32.totalorder %s485_s28, %s5831_s18  ;;  %p5840_p7 = scmp.lt.s32.totalorder %s5831_s18, %s5831_s18 }
  0x72   : > { %p5834_p2 = pnand %p5832_p1, %p6099_p0  ;;  %p5841_p8 = por %p5840_p7, %p5839_p4 }
  0x74   : > { %p5835_p3 = pneg %p5834_p2 }
  0x76   : > { %p5842_p11 = pnand %p5841_p8, %p5835_p3 }
  0x78   : > { %5845 = shalt.err (!%p5842_p11)
}
  0x79   : > { %5567 = dma.hbm_to_vmem [thread:$0]  (!%p6085_p12), %s6996_s11, 2048, %s485_s28, [#allocation13], %s5929_s15, %s5929_s15, %s5930_s16  }
  0x7a   : > { %p7031_p13 = scmp.ne.s32.totalorder %s7027_s19, 0 }
  0x7b   : > { %p7032_p5 = scmp.eq.s32.totalorder (!%p7031_p13), %s6049_s14, 0 }
  0x7c   : > { %517 = sbr.rel (%p7031_p13) target bundleno = 1966 (0x7ae), region = 80 }
  0x83   : > { %5891 = dma.done.wait (%p7032_p5), [#allocation7], 288   ;;  %p7033_p0 = pmov %p7032_p5 }
  0x85   : > { %5893 = vsyncadd (%p7033_p0), [#allocation7], 4294967008  ;;  %p7034_p6 = pmov %p7033_p0 }
  0x86   : > { %p7035_p9 = pmov %p7033_p0 }
  0x87   : > { %5895 = dma.done.wait (%p7034_p6), [#allocation10], 6400  }
  0x88   : > { %5897 = vsyncadd (%p7035_p9), [#allocation10], 4294960896  ;;  %p7036_p10 = pmov %p7033_p0 }
  0x89   : > { %p7037_p12 = pmov %p7033_p0 }
  0x8a   : > { %5899 = dma.done.wait (%p7036_p10), [#allocation13], 2048  }
  0x8b   : > { %5901 = vsyncadd (%p7037_p12), [#allocation13], 4294965248  ;;  %p581_p1 = scmp.lt.s32.totalorder %s6049_s14, 1  ;;  %vm598_vm0 = vcmask 31744   ;;  %v5932_v1 = vmov 0.0   ;;  %vm600_vm1 = vcmask 25600  }
  0x8c   : > { %599 = vst.msk [vmem:[#allocation2] sm:$0xff] %vm598_vm0, %v5932_v1  ;;  %602 = vst.msk [vmem:[#allocation2 + $0x10] sm:$0xff] %vm598_vm0, %v5932_v1  ;;  %vm668_vm2 = vcmask 1041408   ;;  %s7038_s16 = sld [smem:[#allocation26_spill]]  ;;  %v6238_v2 = vld [vmem:[#allocation6 + $0x6] sm:$0x3] }
  0x8d   : > { %604 = vst.msk [vmem:[#allocation2 + $0x20] sm:$0xff] %vm598_vm0, %v5932_v1  ;;  %606 = vst.msk [vmem:[#allocation2 + $0x30] sm:$0xff] %vm598_vm0, %v5932_v1  ;;  %s6212_s19 = scalar_select %p581_p1, %s6049_s14, 1  ;;  %v655_v3 = vld [vmem:[#allocation6 + $0x2] sm:$0x3]  ;;  %5530 = vmatprep.subr.msk.bf16.mxu0 %vm668_vm2, %v6238_v2  ;;  %v6245_v5 = vsel %vm668_vm2, %v6238_v2, 0 }
  0x8e   : > { %608 = vst.msk [vmem:[#allocation2 + $0x40] sm:$0xff] %vm598_vm0, %v5932_v1  ;;  %610 = vst.msk [vmem:[#allocation2 + $0x50] sm:$0xff] %vm598_vm0, %v5932_v1  ;;  %5527 = vmatprep.subr.msk.bf16.mxu1 %vm668_vm2, %v655_v3  ;;  %v670_v6 = vsel %vm668_vm2, %v655_v3, 0  ;;  %v1034_v8 = vld [vmem:[#allocation6 + $0x8] sm:$0x3]  ;;  %4998 = vmatpush3.bf16.msra.mxu0 %v6245_v5  ;;  %vm1555_vm3 = vcmask 261120  }
  0x8f   : > { %612 = vst.msk [vmem:[#allocation2 + $0x60] sm:$0xff] %vm598_vm0, %v5932_v1  ;;  %614 = vst.msk [vmem:[#allocation2 + $0x70] sm:$0xff] %vm598_vm0, %v5932_v1  ;;  %s4783_s22 = sshll.u32 %s6212_s19, 6  ;;  %4968 = vmatpush3.bf16.msra.mxu1 %v670_v6  ;;  %5532 = vmatprep.subr.msk.bf16.mxu0 %vm668_vm2, %v1034_v8  ;;  %v641_v14 = vld [vmem:[#allocation6] sm:$0x3]  ;;  %v1048_v30 = vsel %vm668_vm2, %v1034_v8, 0 }
  0x90   : > { %616 = vst.msk [vmem:[#allocation2 + $0x80] sm:$0xff] %vm598_vm0, %v5932_v1  ;;  %618 = vst.msk [vmem:[#allocation2 + $0x90] sm:$0xff] %vm598_vm0, %v5932_v1  ;;  %5528 = vmatprep.subr.msk.bf16.mxu1 %vm668_vm2, %v641_v14  ;;  %v750_v28 = vsel %vm668_vm2, %v641_v14, 0  ;;  %v1136_v33 = vld [vmem:[#allocation6 + $0xa] sm:$0x3]  ;;  %vm1557_vm4 = vcmask 254976  }
  0x91   : > { %601 = vst.msk [vmem:[#allocation2 + $0x8] sm:$0x3] %vm600_vm1, %v5932_v1  ;;  %603 = vst.msk [vmem:[#allocation2 + $0x18] sm:$0x3] %vm600_vm1, %v5932_v1  ;;  %v1239_v35 = vld [vmem:[#allocation6 + $0xc] sm:$0x3] }
  0x92   : > { %605 = vst.msk [vmem:[#allocation2 + $0x28] sm:$0x3] %vm600_vm1, %v5932_v1  ;;  %607 = vst.msk [vmem:[#allocation2 + $0x38] sm:$0x3] %vm600_vm1, %v5932_v1  ;;  %s585_s17 = scalar_lea.vmem %s7038_s16, %s4783_s22  ;;  %v830_v36 = vld [vmem:[#allocation6 + $0x4] sm:$0x3] }
  0x93   : > { %609 = vst.msk [vmem:[#allocation2 + $0x48] sm:$0x3] %vm600_vm1, %v5932_v1  ;;  %611 = vst.msk [vmem:[#allocation2 + $0x58] sm:$0x3] %vm600_vm1, %v5932_v1  ;;  %v590_v4 = vld [vmem:[%s585_s17] sm:$0xff]  ;;  %v591_v7 = vld [vmem:[%s585_s17 + $0x8] sm:$0xff] }
  0x94   : > { %613 = vst.msk [vmem:[#allocation2 + $0x68] sm:$0x3] %vm600_vm1, %v5932_v1  ;;  %615 = vst.msk [vmem:[#allocation2 + $0x78] sm:$0x3] %vm600_vm1, %v5932_v1  ;;  %v592_v9 = vld [vmem:[%s585_s17 + $0x10] sm:$0xff]  ;;  %v593_v10 = vld [vmem:[%s585_s17 + $0x18] sm:$0xff] }
  0x95   : > { %617 = vst.msk [vmem:[#allocation2 + $0x88] sm:$0x3] %vm600_vm1, %v5932_v1  ;;  %619 = vst.msk [vmem:[#allocation2 + $0x98] sm:$0x3] %vm600_vm1, %v5932_v1  ;;  %v594_v11 = vld [vmem:[%s585_s17 + $0x20] sm:$0xff]  ;;  %v595_v12 = vld [vmem:[%s585_s17 + $0x28] sm:$0xff] }
  0x96   : > { %621 = vst.msk [vmem:[#allocation2 + $0x11] sm:$0xff] %vm598_vm0, %v590_v4  ;;  %622 = vst.msk [vmem:[#allocation2 + $0x21] sm:$0xff] %vm598_vm0, %v591_v7  ;;  %v596_v13 = vld [vmem:[%s585_s17 + $0x30] sm:$0xff]  ;;  %v597_v15 = vld [vmem:[%s585_s17 + $0x38] sm:$0xff]  ;;  %v1150_v41 = vsel %vm668_vm2, %v1136_v33, 0  ;;  %v1253_v42 = vsel %vm668_vm2, %v1239_v35, 0 }
  0x97   : > { %623 = vst.msk [vmem:[#allocation2 + $0x31] sm:$0xff] %vm598_vm0, %v592_v9  ;;  %624 = vst.msk [vmem:[#allocation2 + $0x41] sm:$0xff] %vm598_vm0, %v593_v10  ;;  %v1341_v37 = vld [vmem:[#allocation6 + $0xe] sm:$0x3]  ;;  %v629_v40 = vld [vmem:[#allocation2] sm:$0xff]  ;;  %v844_v43 = vsel %vm668_vm2, %v830_v36, 0 }
  0x98   : > { %625 = vst.msk [vmem:[#allocation2 + $0x51] sm:$0xff] %vm598_vm0, %v594_v11  ;;  %626 = vst.msk [vmem:[#allocation2 + $0x61] sm:$0xff] %vm598_vm0, %v595_v12  ;;  %v642_v16 = vld [vmem:[#allocation2 + $0x1] sm:$0xff]  ;;  %v1355_v44 = vsel %vm668_vm2, %v1341_v37, 0  ;;  %vm2619_vm5 = vcmask 523264   ;;  %vm2621_vm6 = vcmask 517120  }
  0x99   : > { %627 = vst.msk [vmem:[#allocation2 + $0x71] sm:$0xff] %vm598_vm0, %v596_v13  ;;  %628 = vst.msk [vmem:[#allocation2 + $0x81] sm:$0xff] %vm598_vm0, %v597_v15  ;;  %v817_v57 = vld [vmem:[#allocation2 + $0x2] sm:$0xff]  ;;  %v1443_v13 = vld [vmem:[#allocation6 + $0x10] sm:$0x3]  ;;  %vm4233_vm7 = vcmask 516096  }
  0x9a   : > { %v1233_v15 = vld [vmem:[#allocation2 + $0x90] sm:$0xff]  ;;  %1563 = vst.msk [vmem:[#allocation3 + $0x30] sm:$0xff] %vm1555_vm3, %v5932_v1  ;;  %1556 = vst.msk [vmem:[#allocation3] sm:$0xff] %vm1555_vm3, %v5932_v1  ;;  %s7039_s18 = sld [smem:[#allocation29_spill]]  ;;  %vm4392_vm8 = vcmask 0   ;;  %s7040_s26 = sld [smem:[#allocation24_spill]] }
  0x9b   : > { %1564 = vst.msk [vmem:[#allocation3 + $0x38] sm:$0x3] %vm1557_vm4, %v5932_v1  ;;  %1558 = vst.msk [vmem:[#allocation3 + $0x8] sm:$0x3] %vm1557_vm4, %v5932_v1  ;;  %s574_s22 = sand.u32 1, %s5912_s24   ;;  %s4780_s20 = sshll.u32 %s6049_s14, 4 }
  0x9c   : > { %1559 = vst.msk [vmem:[#allocation3 + $0x10] sm:$0xff] %vm1555_vm3, %v5932_v1  ;;  %1561 = vst.msk [vmem:[#allocation3 + $0x20] sm:$0xff] %vm1555_vm3, %v5932_v1  ;;  %s575_s15 = scalar_lea.vmem [#allocation14], %s574_s22  ;;  %s7041_s23 = sld [smem:[#allocation28_spill]] }
  0x9d   : > { %v643_v17 = vld [vmem:[#allocation2 + $0x11] sm:$0xff]  ;;  %v920_v20 = vld [vmem:[#allocation2 + $0x20] sm:$0xff]  ;;  %1560 = vst.msk [vmem:[#allocation3 + $0x18] sm:$0x3] %vm1557_vm4, %v5932_v1  ;;  %1562 = vst.msk [vmem:[#allocation3 + $0x28] sm:$0x3] %vm1557_vm4, %v5932_v1 }
  0x9e   : > { %v919_v18 = vld [vmem:[#allocation2 + $0x10] sm:$0xff]  ;;  %v650_v19 = vpack.c.bf16 %v643_v17, %v642_v16  ;;  %v644_v21 = vld [vmem:[#allocation2 + $0x21] sm:$0xff]  ;;  %1565 = vst.msk [vmem:[#allocation3 + $0x40] sm:$0xff] %vm1555_vm3, %v5932_v1  ;;  %1567 = vst.msk [vmem:[#allocation3 + $0x50] sm:$0xff] %vm1555_vm3, %v5932_v1  ;;  %s4410_s16 = sshll.u32 %s575_s15, 4  ;;  %s5939_s14 = smov [#allocation14]   ;;  %s6944_s16 = int_to_ptr.vmem [resolvable:$true] %s4410_s16 }
  0x9f   : > { %v645_v22 = vld [vmem:[#allocation2 + $0x31] sm:$0xff]  ;;  %v927_v23 = vpack.c.bf16 %v920_v20, %v919_v18  ;;  %v922_v26 = vld [vmem:[#allocation2 + $0x40] sm:$0xff]  ;;  %v1029_v32 = vpack.c.bf16 %v644_v21, %v643_v17  ;;  %v637_v46 = vpack.c.bf16 %v919_v18, %v629_v40  ;;  %v1457_v17 = vsel %vm668_vm2, %v1443_v13, 0  ;;  %1566 = vst.msk [vmem:[#allocation3 + $0x48] sm:$0x3] %vm1557_vm4, %v5932_v1  ;;  %s5846_s27 = scalar_lea.vmem %s6944_s16, 16 }
  0xa0   : > { %v6259_v24 = vpack.c.bf16 %v645_v22, %v644_v21  ;;  %v921_v25 = vld [vmem:[#allocation2 + $0x30] sm:$0xff]  ;;  %v646_v27 = vld [vmem:[#allocation2 + $0x41] sm:$0xff]  ;;  %4969 = vmatprep.mubr.msk.bf16.mxu1 %vm598_vm0, %v650_v19  ;;  %1568 = vst.msk [vmem:[#allocation3 + $0x58] sm:$0x3] %vm1557_vm4, %v5932_v1  ;;  %1570 = vst.msk [vmem:[#allocation3 + $0x68] sm:$0x3] %vm1557_vm4, %v5932_v1  ;;  %s588_s3 = scalar_lea.vmem %s7039_s18, %s6212_s19  ;;  %p5847_p2 = scmp.ne.s32.totalorder %s6944_s16, %s5846_s27 }
  0xa1   : > { %v928_v29 = vpack.c.bf16 %v922_v26, %v921_v25  ;;  %v647_v31 = vld [vmem:[#allocation2 + $0x51] sm:$0xff]  ;;  %4999 = vmatprep.mubr.msk.bf16.mxu0 %vm598_vm0, %v927_v23  ;;  %v648_v38 = vld [vmem:[#allocation2 + $0x61] sm:$0xff]  ;;  %v1030_v48 = vpack.c.bf16 %v646_v27, %v645_v22  ;;  %v638_v50 = vpack.c.bf16 %v921_v25, %v920_v20  ;;  %1569 = vst.msk [vmem:[#allocation3 + $0x60] sm:$0xff] %vm1555_vm3, %v5932_v1  ;;  %1571 = vst.msk [vmem:[#allocation3 + $0x70] sm:$0xff] %vm1555_vm3, %v5932_v1  ;;  %s4395_s19 = scalar_lea.sflag [#allocation8], %s574_s22  ;;  %p7043_p3 = scmp.ne.s32.totalorder %s7040_s26, 0 }
  0xa2   : > { %4970 = vmatmul.mubr.msk.bf16.vlgmr.msra.gmra.mrb[0].mxu1 %vm598_vm0, %v6259_v24  ;;  %v6267_v34 = vpack.c.bf16 %v647_v31, %v646_v27  ;;  %v649_v39 = vld [vmem:[#allocation2 + $0x71] sm:$0xff]  ;;  %v1031_v49 = vpack.c.bf16 %v648_v38, %v647_v31  ;;  %v6284_v51 = vld [vmem:[#allocation2 + $0x81] sm:$0xff]  ;;  %1572 = vst.msk [vmem:[#allocation3 + $0x78] sm:$0x3] %vm1557_vm4, %v5932_v1  ;;  %1574 = vst.msk [vmem:[#allocation3 + $0x88] sm:$0x3] %vm1557_vm4, %v5932_v1  ;;  %s7042_s30 = smov %s7041_s23  ;;  %s6942_s25 = scalar_lea.hbm %s7041_s23, %s4780_s20 }
  0xa3   : > { %5000 = vmatmul.mubr.msk.bf16.vlgmr.msra.gmra.mrb[0].mxu0 %vm598_vm0, %v928_v29  ;;  %4978 = vmatpush3.bf16.msra.mxu1 %v750_v28  ;;  %v6278_v45 = vpack.c.bf16 %v649_v39, %v648_v38  ;;  %v634_v47 = vld [vmem:[#allocation2 + $0x50] sm:$0xff]  ;;  %v1124_v54 = vld [vmem:[#allocation2 + $0x22] sm:$0xff]  ;;  %v1032_v58 = vpack.c.bf16 %v6284_v51, %v649_v39  ;;  %1573 = vst.msk [vmem:[#allocation3 + $0x80] sm:$0xff] %vm1555_vm3, %v5932_v1  ;;  %1575 = vst.msk [vmem:[#allocation3 + $0x90] sm:$0xff] %vm1555_vm3, %v5932_v1  ;;  %p5848_p4 = pnand %p5847_p2, %p7043_p3  ;;  %s5850_s0 = sshll.u32 %s5939_s14, 4  ;;  %s5851_s0 = int_to_ptr.vmem [resolvable:$false] %s5850_s0 }
  0xa4   : > { %5008 = vmatpush3.bf16.msra.mxu0 %v1048_v30  ;;  %4973 = vmatprep.mubr.msk.bf16.mxu1 %vm598_vm0, %v6267_v34  ;;  %v639_v52 = vpack.c.bf16 %v634_v47, %v922_v26  ;;  %v1123_v53 = vld [vmem:[#allocation2 + $0x12] sm:$0xff]  ;;  %v635_v55 = vld [vmem:[#allocation2 + $0x60] sm:$0xff]  ;;  %1576 = vst.msk [vmem:[#allocation3 + $0x98] sm:$0x3] %vm1557_vm4, %v5932_v1  ;;  %s5852_s21 = scalar_lea.vmem %s5851_s0, 32  ;;  %p5853_p8 = scmp.lt.s32.totalorder %s6944_s16, %s5851_s0 }
  0xa5   : > { %5009 = vmatprep.mubr.msk.bf16.mxu0 %vm598_vm0, %v1029_v32  ;;  %5533 = vmatprep.subr.msk.bf16.mxu0 %vm668_vm2, %v1136_v33  ;;  %v636_v56 = vld [vmem:[#allocation2 + $0x70] sm:$0xff]  ;;  %v1131_v59 = vpack.c.bf16 %v1124_v54, %v1123_v53  ;;  %v1126_v62 = vld [vmem:[#allocation2 + $0x42] sm:$0xff]  ;;  %v825_v63 = vpack.c.bf16 %v1123_v53, %v817_v57  ;;  %v929_v12 = vpack.c.bf16 %v635_v55, %v634_v47  ;;  %p5849_p7 = pneg %p5848_p4  ;;  %p5854_p11 = scmp.lt.s32.totalorder %s5852_s21, %s5846_s27 }
  0xa6   : > { %5529 = vmatprep.subr.msk.bf16.mxu1 %vm668_vm2, %v830_v36  ;;  %v640_v60 = vpack.c.bf16 %v636_v56, %v635_v55  ;;  %v1125_v61 = vld [vmem:[#allocation2 + $0x32] sm:$0xff]  ;;  %v1128_v3 = vld [vmem:[#allocation2 + $0x62] sm:$0xff]  ;;  %2627 = vst.msk [vmem:[#allocation4 + $0x30] sm:$0xff] %vm2619_vm5, %v5932_v1  ;;  %2620 = vst.msk [vmem:[#allocation4] sm:$0xff] %vm2619_vm5, %v5932_v1 }
  0xa7   : > { %v1127_v0 = vld [vmem:[#allocation2 + $0x52] sm:$0xff]  ;;  %v1132_v4 = vpack.c.bf16 %v1126_v62, %v1125_v61  ;;  %v826_v7 = vpack.c.bf16 %v1125_v61, %v1124_v54  ;;  %v1130_v9 = vld [vmem:[#allocation2 + $0x82] sm:$0xff]  ;;  %2628 = vst.msk [vmem:[#allocation4 + $0x38] sm:$0x3] %vm2621_vm6, %v5932_v1  ;;  %2622 = vst.msk [vmem:[#allocation4 + $0x8] sm:$0x3] %vm2621_vm6, %v5932_v1  ;;  %p5855_p13 = por %p5854_p11, %p5853_p8 }
  0xa8   : > { %v1133_v6 = vpack.c.bf16 %v1128_v3, %v1127_v0  ;;  %v1129_v8 = vld [vmem:[#allocation2 + $0x72] sm:$0xff]  ;;  %v926_v14 = vld [vmem:[#allocation2 + $0x80] sm:$0xff]  ;;  %2623 = vst.msk [vmem:[#allocation4 + $0x10] sm:$0xff] %vm2619_vm5, %v5932_v1  ;;  %2625 = vst.msk [vmem:[#allocation4 + $0x20] sm:$0xff] %vm2619_vm5, %v5932_v1 }
  0xa9   : > { %v1134_v10 = vpack.c.bf16 %v1130_v9, %v1129_v8  ;;  %v828_v11 = vpack.c.bf16 %v1129_v8, %v1128_v3  ;;  %v1237_v16 = vpack.c.bf16 %v1233_v15, %v926_v14  ;;  %v1335_v18 = vld [vmem:[#allocation2 + $0x91] sm:$0xff]  ;;  %v5666_v22 = vld [vmem:[#allocation9 + $0x10] sm:$0xff]   ;;  %2624 = vst.msk [vmem:[#allocation4 + $0x18] sm:$0x3] %vm2621_vm6, %v5932_v1  ;;  %2626 = vst.msk [vmem:[#allocation4 + $0x28] sm:$0x3] %vm2621_vm6, %v5932_v1  ;;  %p5856_p5 = pnand %p5855_p13, %p5849_p7 }
  0xaa   : > { %4974 = vmatmul.mubr.msk.bf16.gmra.mrb[4].mxu1 %vm598_vm0, %v6278_v45  ;;  %v1339_v19 = vpack.c.bf16 %v1335_v18, %v6284_v51  ;;  %v1437_v20 = vld [vmem:[#allocation2 + $0x92] sm:$0xff]  ;;  %v1586_v15 = vld [vmem:[#allocation3] sm:$0xff]  ;;  %2629 = vst.msk [vmem:[#allocation4 + $0x40] sm:$0xff] %vm2619_vm5, %v5932_v1  ;;  %2631 = vst.msk [vmem:[#allocation4 + $0x50] sm:$0xff] %vm2619_vm5, %v5932_v1 }
  0xab   : > { %4979 = vmatprep.mubr.msk.bf16.mxu1 %vm598_vm0, %v637_v46  ;;  %v1441_v21 = vpack.c.bf16 %v1437_v20, %v1130_v9  ;;  %v5667_v23 = vld [vmem:[#allocation9 + $0x18] sm:$0xff]   ;;  %2630 = vst.msk [vmem:[#allocation4 + $0x48] sm:$0x3] %vm2621_vm6, %v5932_v1  ;;  %2632 = vst.msk [vmem:[#allocation4 + $0x58] sm:$0x3] %vm2621_vm6, %v5932_v1 }
  0xac   : > { %2633 = vst.msk [vmem:[#allocation4 + $0x60] sm:$0xff] %vm2619_vm5, %v5932_v1  ;;  %2635 = vst.msk [vmem:[#allocation4 + $0x70] sm:$0xff] %vm2619_vm5, %v5932_v1 }
  0xad   : > { %2634 = vst.msk [vmem:[#allocation4 + $0x68] sm:$0x3] %vm2621_vm6, %v5932_v1  ;;  %2636 = vst.msk [vmem:[#allocation4 + $0x78] sm:$0x3] %vm2621_vm6, %v5932_v1 }
  0xae   : > { %2637 = vst.msk [vmem:[#allocation4 + $0x80] sm:$0xff] %vm2619_vm5, %v5932_v1  ;;  %2639 = vst.msk [vmem:[#allocation4 + $0x90] sm:$0xff] %vm2619_vm5, %v5932_v1 }
  0xaf   : > { %5010 = vmatmul.mubr.msk.bf16.vlgmr.msra.gmra.mrb[0].mxu0 %vm598_vm0, %v1030_v48  ;;  %2638 = vst.msk [vmem:[#allocation4 + $0x88] sm:$0x3] %vm2621_vm6, %v5932_v1  ;;  %2640 = vst.msk [vmem:[#allocation4 + $0x98] sm:$0x3] %vm2621_vm6, %v5932_v1  ;;  %v5688_v1 = vld [vmem:[%s6990_s5] sm:$0xff]  }
  0xb0   : > { %5018 = vmatpush3.bf16.msra.mxu0 %v1150_v41  ;;  %5013 = vmatprep.mubr.msk.bf16.mxu0 %vm598_vm0, %v1031_v49 }
  0xb1   : > { %5534 = vmatprep.subr.msk.bf16.mxu0 %vm668_vm2, %v1239_v35 }
  0xb2   : > { %4980 = vmatmul.mubr.msk.bf16.vlgmr.msra.gmra.mrb[0].mxu1 %vm598_vm0, %v638_v50 }
  0xb3   : > { %4983 = vmatprep.mubr.msk.bf16.mxu1 %vm598_vm0, %v639_v52  ;;  %4988 = vmatpush3.bf16.msra.mxu1 %v844_v43 }
  0xb4   : > { %5531 = vmatprep.subr.msk.bf16.mxu1 %vm668_vm2, %v6238_v2  ;;  %v827_v2 = vpack.c.bf16 %v1127_v0, %v1126_v62  ;;  %v1602_v62 = vld [vmem:[#allocation3 + $0x1] sm:$0xff] }
  0xb7   : > { %5014 = vmatmul.mubr.msk.bf16.gmra.mrb[4].mxu0 %vm598_vm0, %v1032_v58 }
  0xb8   : > { %5019 = vmatprep.mubr.msk.bf16.mxu0 %vm598_vm0, %v1131_v59 }
  0xba   : > { %4984 = vmatmul.mubr.msk.bf16.gmra.mrb[4].mxu1 %vm598_vm0, %v640_v60 }
  0xbb   : > { %4989 = vmatprep.mubr.msk.bf16.mxu1 %vm598_vm0, %v825_v63 }
  0xbf   : > { %5020 = vmatmul.mubr.msk.bf16.vlgmr.msra.gmra.mrb[0].mxu0 %vm598_vm0, %v1132_v4 }
  0xc0   : > { %5028 = vmatpush3.bf16.msra.mxu0 %v1253_v42  ;;  %5023 = vmatprep.mubr.msk.bf16.mxu0 %vm598_vm0, %v1133_v6 }
  0xc1   : > { %5535 = vmatprep.subr.msk.bf16.mxu0 %vm668_vm2, %v1341_v37 }
  0xc2   : > { %4990 = vmatmul.mubr.msk.bf16.vlgmr.msra.gmra.mrb[0].mxu1 %vm598_vm0, %v826_v7 }
  0xc3   : > { %4993 = vmatprep.mubr.msk.bf16.mxu1 %vm598_vm0, %v827_v2  ;;  %5334 = vmatpush3.bf16.msra.mxu1 %v6245_v5  ;;  %v930_v5 = vpack.c.bf16 %v926_v14, %v636_v56 }
  0xc4   : > { %5057 = vmatprep.subr.bf16.mxu1 %v5666_v22 }
  0xc7   : > { %5024 = vmatmul.mubr.msk.bf16.gmra.mrb[4].mxu0 %vm598_vm0, %v1134_v10  ;;  %v5669_v10 = vld [vmem:[#allocation9 + $0x8] sm:$0xff]  }
  0xc8   : > { %5029 = vmatprep.mubr.msk.bf16.mxu0 %vm598_vm0, %v638_v50 }
  0xca   : > { %4994 = vmatmul.mubr.msk.bf16.gmra.mrb[4].mxu1 %vm598_vm0, %v828_v11 }
  0xcb   : > { %5003 = vmatprep.mubr.msk.bf16.mxu1 %vm598_vm0, %v929_v12 }
  0xcf   : > { %5030 = vmatmul.mubr.msk.bf16.vlgmr.msra.gmra.mrb[0].mxu0 %vm598_vm0, %v639_v52 }
  0xd0   : > { %5038 = vmatpush3.bf16.msra.mxu0 %v1355_v44  ;;  %5033 = vmatprep.mubr.msk.bf16.mxu0 %vm598_vm0, %v640_v60 }
  0xd1   : > { %5536 = vmatprep.subr.msk.bf16.mxu0 %vm668_vm2, %v1443_v13 }
  0xd6   : > { %5004 = vmatmul.mubr.msk.bf16.vlgmr.msra.gmra.mrb[4].mxu1 %vm598_vm0, %v930_v5 }
  0xd7   : > { %5034 = vmatmul.mubr.msk.bf16.gmra.mrb[4].mxu0 %vm598_vm0, %v1237_v16  ;;  %5058 = vmatpush3.bf16.msra.mxu1 %v5666_v22 }
  0xd8   : > { %5039 = vmatprep.mubr.msk.bf16.mxu0 %vm598_vm0, %v6259_v24  ;;  %5059 = vmatprep.subr.bf16.mxu1 %v5667_v23  ;;  %v5668_v24 = vld [vmem:[#allocation9] sm:$0xff]  }
  0xdb   : > { %5060 = vmatpush3.bf16.msra.mxu1 %v5667_v23 }
  0xdc   : > { %5069 = vmatprep.subr.bf16.mxu1 %v5668_v24 }
  0xdf   : > { %5040 = vmatmul.mubr.msk.bf16.vlgmr.msra.gmra.mrb[0].mxu0 %vm598_vm0, %v6267_v34  ;;  %v4578_v34 = vld [vmem:[%s6987_s2] ss:$0 sm:$0xff] }
  0xe0   : > { %5048 = vmatpush3.bf16.msra.mxu0 %v1457_v17  ;;  %5043 = vmatprep.mubr.msk.bf16.mxu0 %vm598_vm0, %v6278_v45 }
  0xe7   : > { %5044 = vmatmul.mubr.msk.bf16.gmra.mrb[4].mxu0 %vm598_vm0, %v1339_v19 }
  0xe8   : > { %5049 = vmatprep.mubr.msk.bf16.mxu0 %vm598_vm0, %v826_v7 }
  0xef   : > { %5050 = vmatmul.mubr.msk.bf16.vlgmr.msra.gmra.mrb[0].mxu0 %vm598_vm0, %v827_v2 }
  0xf0   : > { %5053 = vmatprep.mubr.msk.bf16.mxu0 %vm598_vm0, %v828_v11  ;;  %v5670_v11 = vld [vmem:[#allocation9 + $0x20] sm:$0xff]  }
  0xf7   : > { %5054 = vmatmul.mubr.msk.bf16.gmra.mrb[4].mxu0 %vm598_vm0, %v1441_v21 }
 0x195   : > { %v4991_v25 = vpop.f32.mrb[0].mxu1 }
 0x196   : > { %v880_v26 = vpop.f32.mrb[1].mxu1 }
 0x197   : > { %v4992_v27 = vpop.f32.mrb[2].mxu1 }
 0x198   : > { %v883_v28 = vpop.f32.mrb[3].mxu1 }
 0x1a9   : > { %v5005_v29 = vpop.f32.mrb[4].mxu1 }
 0x1aa   : > { %v998_v30 = vpop.f32.mrb[5].mxu1 }
 0x1ab   : > { %v5006_v31 = vpop.f32.mrb[6].mxu1 }
 0x1ac   : > { %v1001_v32 = vpop.f32.mrb[7].mxu1 }
 0x1c2   : > { %v5051_v33 = vpop.f32.mrb[0].mxu0 }
 0x1c3   : > { %v5335_v35 = vadd.f32 %v5051_v33, %v4991_v25  ;;  %v1493_v36 = vpop.f32.mrb[1].mxu0  ;;  %v5671_v25 = vld [vmem:[#allocation9 + $0x28] sm:$0xff]  }
 0x1c4   : > { %v5336_v37 = vadd.f32 %v1493_v36, %v880_v26  ;;  %v5052_v38 = vpop.f32.mrb[2].mxu0 }
 0x1c5   : > { %v1541_v39 = vadd.f32 %v5335_v35, %v4578_v34  ;;  %v5337_v40 = vadd.f32 %v5052_v38, %v4992_v27  ;;  %v1496_v41 = vpop.f32.mrb[3].mxu0  ;;  %v5672_v27 = vld [vmem:[#allocation9 + $0x30] sm:$0xff]  }
 0x1c6   : > { %v1539_v42 = vadd.f32 %v5336_v37, %v4578_v34  ;;  %v5338_v43 = vadd.f32 %v1496_v41, %v883_v28  ;;  %v5674_v41 = vld [vmem:[#allocation9 + $0x40] sm:$0xff]  }
 0x1c7   : > { %v1549_v44 = vmax.f32 %v1541_v39, 0.0  ;;  %v1542_v45 = vadd.f32 %v5337_v40, %v4578_v34  ;;  %v5673_v39 = vld [vmem:[#allocation9 + $0x38] sm:$0xff]  }
 0x1c8   : > { %v1547_v46 = vmax.f32 %v1539_v42, 0.0  ;;  %v1540_v47 = vadd.f32 %v5338_v43, %v4578_v34 }
 0x1c9   : > { %1580 = vst.msk [vmem:[#allocation3 + $0x31] sm:$0xff] %vm1555_vm3, %v1549_v44  ;;  %v1550_v48 = vmax.f32 %v1542_v45, 0.0 }
 0x1ca   : > { %1578 = vst.msk [vmem:[#allocation3 + $0x11] sm:$0xff] %vm1555_vm3, %v1547_v46  ;;  %v1548_v49 = vmax.f32 %v1540_v47, 0.0  ;;  %v5055_v50 = vpop.f32.mrb[4].mxu0  ;;  %v5675_v47 = vld [vmem:[#allocation9 + $0x48] sm:$0xff]  }
 0x1cb   : > { %1581 = vst.msk [vmem:[#allocation3 + $0x41] sm:$0xff] %vm1555_vm3, %v1550_v48  ;;  %v5339_v51 = vadd.f32 %v5055_v50, %v5005_v29  ;;  %v1509_v52 = vpop.f32.mrb[5].mxu0  ;;  %v1797_v29 = vld [vmem:[#allocation3 + $0x2] sm:$0xff] }
 0x1cc   : > { %1579 = vst.msk [vmem:[#allocation3 + $0x21] sm:$0xff] %vm1555_vm3, %v1548_v49  ;;  %v5340_v53 = vadd.f32 %v1509_v52, %v998_v30  ;;  %v5056_v54 = vpop.f32.mrb[6].mxu0  ;;  %v5676_v49 = vld [vmem:[#allocation9 + $0x50] sm:$0xff]  }
 0x1cd   : > { %v1545_v55 = vadd.f32 %v5339_v51, %v4578_v34  ;;  %v5341_v56 = vadd.f32 %v5056_v54, %v5006_v31  ;;  %v1512_v57 = vpop.f32.mrb[7].mxu0  ;;  %v5677_v54 = vld [vmem:[#allocation9 + $0x58] sm:$0xff]  }
 0x1ce   : > { %v1543_v58 = vadd.f32 %v5340_v53, %v4578_v34  ;;  %v5342_v59 = vadd.f32 %v1512_v57, %v1001_v32 }
 0x1cf   : > { %v1553_v60 = vmax.f32 %v1545_v55, 0.0  ;;  %v1546_v61 = vadd.f32 %v5341_v56, %v4578_v34  ;;  %v5678_v56 = vld [vmem:[#allocation9 + $0x60] sm:$0xff]  }
 0x1d0   : > { %v1551_v63 = vmax.f32 %v1543_v58, 0.0  ;;  %v1544_v0 = vadd.f32 %v5342_v59, %v4578_v34  ;;  %v6381_v9 = vld [vmem:[#allocation3 + $0x31] sm:$0xff] }
 0x1d1   : > { %1584 = vst.msk [vmem:[#allocation3 + $0x71] sm:$0xff] %vm1555_vm3, %v1553_v60  ;;  %v1554_v3 = vmax.f32 %v1546_v61, 0.0  ;;  %v6374_v4 = vld [vmem:[#allocation3 + $0x11] sm:$0xff]  ;;  %v5679_v61 = vld [vmem:[#allocation9 + $0x68] sm:$0xff]  }
 0x1d2   : > { %1582 = vst.msk [vmem:[#allocation3 + $0x51] sm:$0xff] %vm1555_vm3, %v1551_v63  ;;  %v1552_v6 = vmax.f32 %v1544_v0, 0.0  ;;  %v1610_v7 = vpack.c.bf16 %v6374_v4, %v1602_v62  ;;  %v6391_v12 = vld [vmem:[#allocation3 + $0x41] sm:$0xff]  ;;  %v1587_v5 = vld [vmem:[#allocation3 + $0x10] sm:$0xff] }
 0x1d3   : > { %1585 = vst.msk [vmem:[#allocation3 + $0x81] sm:$0xff] %vm1555_vm3, %v1554_v3  ;;  %v6379_v8 = vld [vmem:[#allocation3 + $0x21] sm:$0xff]  ;;  %v1594_v19 = vpack.c.bf16 %v1587_v5, %v1586_v15  ;;  %v1589_v22 = vld [vmem:[#allocation3 + $0x30] sm:$0xff]  ;;  %v2034_v53 = vpack.c.bf16 %v6391_v12, %v6381_v9 }
 0x1d4   : > { %1583 = vst.msk [vmem:[#allocation3 + $0x61] sm:$0xff] %vm1555_vm3, %v1552_v6  ;;  %5061 = vmatprep.mubr.msk.bf16.mxu1 %vm1555_vm3, %v1610_v7  ;;  %v6387_v2 = vpack.c.bf16 %v6381_v9, %v6379_v8  ;;  %v1588_v20 = vld [vmem:[#allocation3 + $0x20] sm:$0xff]  ;;  %v1798_v30 = vld [vmem:[#allocation3 + $0x12] sm:$0xff]  ;;  %v2033_v52 = vpack.c.bf16 %v6379_v8, %v6374_v4 }
 0x1d5   : > { %v6412_v23 = vpack.c.bf16 %v1589_v22, %v1588_v20  ;;  %v1805_v33 = vpack.c.bf16 %v1798_v30, %v1797_v29  ;;  %v1799_v34 = vld [vmem:[#allocation3 + $0x22] sm:$0xff]  ;;  %v1800_v36 = vld [vmem:[#allocation3 + $0x32] sm:$0xff]  ;;  %v1919_v45 = vpack.c.bf16 %v1588_v20, %v1587_v5 }
 0x1d6   : > { %5062 = vmatmul.mubr.msk.bf16.vlgmr.msra.gmra.mrb[8].mxu1 %vm1555_vm3, %v6387_v2  ;;  %v6425_v37 = vpack.c.bf16 %v1800_v36, %v1799_v34  ;;  %v1801_v38 = vld [vmem:[#allocation3 + $0x42] sm:$0xff]  ;;  %v2147_v59 = vpack.c.bf16 %v1799_v34, %v1798_v30  ;;  %v5681_v4 = vld [vmem:[#allocation9 + $0x78] sm:$0xff]   ;;  %v5682_v6 = vld [vmem:[#allocation9 + $0x80] sm:$0xff]  }
 0x1d7   : > { %5070 = vmatpush3.bf16.msra.mxu1 %v5668_v24  ;;  %v1590_v24 = vld [vmem:[#allocation3 + $0x40] sm:$0xff]  ;;  %v2148_v60 = vpack.c.bf16 %v1801_v38, %v1800_v36  ;;  %v2261_v7 = vld [vmem:[#allocation3 + $0x90] sm:$0xff]  ;;  %v5687_v5 = vld [vmem:[%s6990_s5 + $0x38] sm:$0xff]  }
 0x1d8   : > { %5071 = vmatprep.subr.bf16.mxu1 %v5669_v10  ;;  %v6401_v17 = vld [vmem:[#allocation3 + $0x71] sm:$0xff]  ;;  %v1920_v46 = vpack.c.bf16 %v1590_v24, %v1589_v22  ;;  %v5680_v63 = vld [vmem:[#allocation9 + $0x70] sm:$0xff]   ;;  %v5683_v9 = vld [vmem:[#allocation9 + $0x88] sm:$0xff]  }
 0x1d9   : > { %v6393_v13 = vld [vmem:[#allocation3 + $0x51] sm:$0xff] }
 0x1da   : > { %v6397_v14 = vpack.c.bf16 %v6393_v13, %v6391_v12  ;;  %v1591_v21 = vld [vmem:[#allocation3 + $0x50] sm:$0xff]  ;;  %v1918_v50 = vld [vmem:[#allocation3 + $0x80] sm:$0xff] }
 0x1db   : > { %v6399_v16 = vld [vmem:[#allocation3 + $0x61] sm:$0xff]  ;;  %5072 = vmatpush3.bf16.msra.mxu1 %v5669_v10  ;;  %v6414_v26 = vpack.c.bf16 %v1591_v21, %v1590_v24  ;;  %v1593_v31 = vld [vmem:[#allocation3 + $0x70] sm:$0xff]  ;;  %v2265_v8 = vpack.c.bf16 %v2261_v7, %v1918_v50 }
 0x1dc   : > { %5065 = vmatprep.mubr.msk.bf16.mxu1 %vm1555_vm3, %v6397_v14  ;;  %v6407_v18 = vpack.c.bf16 %v6401_v17, %v6399_v16  ;;  %5081 = vmatprep.subr.bf16.mxu1 %v5670_v11  ;;  %v1592_v28 = vld [vmem:[#allocation3 + $0x60] sm:$0xff]  ;;  %v1802_v35 = vld [vmem:[#allocation3 + $0x52] sm:$0xff]  ;;  %v1922_v51 = vpack.c.bf16 %v1918_v50, %v1593_v31  ;;  %v2035_v55 = vpack.c.bf16 %v6399_v16, %v6393_v13  ;;  %v5693_v7 = vld [vmem:[%s6990_s5 + $0x48] sm:$0xff]  }
 0x1dd   : > { %v6420_v32 = vpack.c.bf16 %v1593_v31, %v1592_v28  ;;  %v6427_v40 = vpack.c.bf16 %v1802_v35, %v1801_v38  ;;  %v1803_v42 = vld [vmem:[#allocation3 + $0x62] sm:$0xff]  ;;  %v1804_v43 = vld [vmem:[#allocation3 + $0x72] sm:$0xff]  ;;  %v1921_v48 = vpack.c.bf16 %v1592_v28, %v1591_v21  ;;  %v4633_v16 = vld [vmem:[%s6989_s4] ss:$0 sm:$0xff] }
 0x1de   : > { %5066 = vmatmul.mubr.msk.bf16.gmra.mrb[12].mxu1 %vm1555_vm3, %v6407_v18  ;;  %v6433_v44 = vpack.c.bf16 %v1804_v43, %v1803_v42  ;;  %v2032_v57 = vld [vmem:[#allocation3 + $0x81] sm:$0xff]  ;;  %v2149_v62 = vpack.c.bf16 %v1803_v42, %v1802_v35  ;;  %v2375_v10 = vld [vmem:[#allocation3 + $0x91] sm:$0xff] }
 0x1df   : > { %5073 = vmatprep.mubr.msk.bf16.mxu1 %vm1555_vm3, %v1594_v19  ;;  %v2036_v58 = vpack.c.bf16 %v2032_v57, %v6401_v17  ;;  %v2146_v0 = vld [vmem:[#allocation3 + $0x82] sm:$0xff]  ;;  %v5686_v15 = vld [vmem:[%s6990_s5 + $0x30] sm:$0xff]  }
 0x1e0   : > { %v2150_v3 = vpack.c.bf16 %v2146_v0, %v1804_v43  ;;  %v5684_v13 = vld [vmem:[%s6990_s5 + $0x20] sm:$0xff]  }
 0x1e1   : > { %5165 = vmatprep.subr.bf16.mxu0 %v5684_v13 }
 0x1e2   : > { %5166 = vmatpush3.bf16.msra.mxu0 %v5684_v13  ;;  %v5724_v13 = vld [vmem:[%s6992_s7 + $0x20] sm:$0xff]  }
 0x1e6   : > { %5074 = vmatmul.mubr.msk.bf16.vlgmr.msra.gmra.mrb[8].mxu1 %vm1555_vm3, %v6412_v23 }
 0x1e7   : > { %5082 = vmatpush3.bf16.msra.mxu1 %v5670_v11  ;;  %5077 = vmatprep.mubr.msk.bf16.mxu1 %vm1555_vm3, %v6414_v26  ;;  %v2379_v11 = vpack.c.bf16 %v2375_v10, %v2032_v57  ;;  %v5691_v57 = vld [vmem:[%s6990_s5 + $0x18] sm:$0xff]   ;;  %v5694_v10 = vld [vmem:[%s6990_s5 + $0x50] sm:$0xff]  }
 0x1e8   : > { %5083 = vmatprep.subr.bf16.mxu1 %v5671_v25 }
 0x1eb   : > { %5084 = vmatpush3.bf16.msra.mxu1 %v5671_v25 }
 0x1ec   : > { %5093 = vmatprep.subr.bf16.mxu1 %v5672_v27 }
 0x1ee   : > { %5078 = vmatmul.mubr.msk.bf16.gmra.mrb[12].mxu1 %vm1555_vm3, %v6420_v32 }
 0x1ef   : > { %5085 = vmatprep.mubr.msk.bf16.mxu1 %vm1555_vm3, %v1805_v33 }
 0x1f6   : > { %5086 = vmatmul.mubr.msk.bf16.vlgmr.msra.gmra.mrb[8].mxu1 %vm1555_vm3, %v6425_v37 }
 0x1f7   : > { %5094 = vmatpush3.bf16.msra.mxu1 %v5672_v27  ;;  %5089 = vmatprep.mubr.msk.bf16.mxu1 %vm1555_vm3, %v6427_v40 }
 0x1f8   : > { %5095 = vmatprep.subr.bf16.mxu1 %v5673_v39 }
 0x1fb   : > { %5096 = vmatpush3.bf16.msra.mxu1 %v5673_v39 }
 0x1fc   : > { %5105 = vmatprep.subr.bf16.mxu1 %v5674_v41 }
 0x1fe   : > { %5090 = vmatmul.mubr.msk.bf16.gmra.mrb[12].mxu1 %vm1555_vm3, %v6433_v44 }
 0x1ff   : > { %5097 = vmatprep.mubr.msk.bf16.mxu1 %vm1555_vm3, %v1919_v45 }
 0x206   : > { %5098 = vmatmul.mubr.msk.bf16.vlgmr.msra.gmra.mrb[8].mxu1 %vm1555_vm3, %v1920_v46 }
 0x207   : > { %5106 = vmatpush3.bf16.msra.mxu1 %v5674_v41  ;;  %5101 = vmatprep.mubr.msk.bf16.mxu1 %vm1555_vm3, %v1921_v48  ;;  %v5690_v48 = vld [vmem:[%s6990_s5 + $0x10] sm:$0xff]  }
 0x208   : > { %5107 = vmatprep.subr.bf16.mxu1 %v5675_v47 }
 0x20b   : > { %5108 = vmatpush3.bf16.msra.mxu1 %v5675_v47  ;;  %v5689_v47 = vld [vmem:[%s6990_s5 + $0x8] sm:$0xff]  }
 0x20c   : > { %5117 = vmatprep.subr.bf16.mxu1 %v5676_v49 }
 0x20e   : > { %5102 = vmatmul.mubr.msk.bf16.gmra.mrb[12].mxu1 %vm1555_vm3, %v1922_v51 }
 0x20f   : > { %5109 = vmatprep.mubr.msk.bf16.mxu1 %vm1555_vm3, %v2033_v52  ;;  %v2650_v52 = vld [vmem:[#allocation4] sm:$0xff] }
 0x216   : > { %5110 = vmatmul.mubr.msk.bf16.vlgmr.msra.gmra.mrb[8].mxu1 %vm1555_vm3, %v2034_v53 }
 0x217   : > { %5118 = vmatpush3.bf16.msra.mxu1 %v5676_v49  ;;  %5113 = vmatprep.mubr.msk.bf16.mxu1 %vm1555_vm3, %v2035_v55 }
 0x218   : > { %5119 = vmatprep.subr.bf16.mxu1 %v5677_v54 }
 0x21b   : > { %5120 = vmatpush3.bf16.msra.mxu1 %v5677_v54 }
 0x21c   : > { %5129 = vmatprep.subr.bf16.mxu1 %v5678_v56 }
 0x21e   : > { %5114 = vmatmul.mubr.msk.bf16.gmra.mrb[12].mxu1 %vm1555_vm3, %v2036_v58 }
 0x21f   : > { %5121 = vmatprep.mubr.msk.bf16.mxu1 %vm1555_vm3, %v2147_v59  ;;  %v5720_v59 = vld [vmem:[%s6992_s7] sm:$0xff]  }
 0x226   : > { %5122 = vmatmul.mubr.msk.bf16.vlgmr.msra.gmra.mrb[8].mxu1 %vm1555_vm3, %v2148_v60  ;;  %v5721_v60 = vld [vmem:[%s6992_s7 + $0x8] sm:$0xff]  }
 0x227   : > { %5130 = vmatpush3.bf16.msra.mxu1 %v5678_v56  ;;  %5125 = vmatprep.mubr.msk.bf16.mxu1 %vm1555_vm3, %v2149_v62 }
 0x228   : > { %5131 = vmatprep.subr.bf16.mxu1 %v5679_v61 }
 0x22b   : > { %5132 = vmatpush3.bf16.msra.mxu1 %v5679_v61  ;;  %v5692_v61 = vld [vmem:[%s6990_s5 + $0x40] sm:$0xff]  }
 0x22c   : > { %5141 = vmatprep.subr.bf16.mxu1 %v5680_v63 }
 0x22e   : > { %5126 = vmatmul.mubr.msk.bf16.gmra.mrb[12].mxu1 %vm1555_vm3, %v2150_v3 }
 0x22f   : > { %5133 = vmatprep.mubr.msk.bf16.mxu1 %vm1555_vm3, %v6412_v23 }
 0x236   : > { %5134 = vmatmul.mubr.msk.bf16.vlgmr.msra.gmra.mrb[8].mxu1 %vm1555_vm3, %v6414_v26 }
 0x237   : > { %5142 = vmatpush3.bf16.msra.mxu1 %v5680_v63  ;;  %5137 = vmatprep.mubr.msk.bf16.mxu1 %vm1555_vm3, %v6420_v32 }
 0x238   : > { %5143 = vmatprep.subr.bf16.mxu1 %v5681_v4 }
 0x23b   : > { %5144 = vmatpush3.bf16.msra.mxu1 %v5681_v4 }
 0x23c   : > { %5153 = vmatprep.subr.bf16.mxu1 %v5682_v6 }
 0x23e   : > { %5138 = vmatmul.mubr.msk.bf16.gmra.mrb[12].mxu1 %vm1555_vm3, %v2265_v8 }
 0x23f   : > { %5145 = vmatprep.mubr.msk.bf16.mxu1 %vm1555_vm3, %v6387_v2  ;;  %v2489_v2 = vld [vmem:[#allocation3 + $0x92] sm:$0xff] }
 0x240   : > { %v2493_v12 = vpack.c.bf16 %v2489_v2, %v2146_v0  ;;  %v5722_v0 = vld [vmem:[%s6992_s7 + $0x10] sm:$0xff]   ;;  %v2893_v2 = vld [vmem:[#allocation4 + $0x2] sm:$0xff] }
 0x246   : > { %5146 = vmatmul.mubr.msk.bf16.vlgmr.msra.gmra.mrb[8].mxu1 %vm1555_vm3, %v6397_v14  ;;  %v5685_v14 = vld [vmem:[%s6990_s5 + $0x28] sm:$0xff]  }
 0x247   : > { %5154 = vmatpush3.bf16.msra.mxu1 %v5682_v6  ;;  %5149 = vmatprep.mubr.msk.bf16.mxu1 %vm1555_vm3, %v6407_v18 }
 0x248   : > { %5155 = vmatprep.subr.bf16.mxu1 %v5683_v9  ;;  %5167 = vmatprep.subr.bf16.mxu0 %v5685_v14 }
 0x249   : > { %5168 = vmatpush3.bf16.msra.mxu0 %v5685_v14 }
 0x24a   : > { %5169 = vmatprep.subr.bf16.mxu0 %v5686_v15 }
 0x24b   : > { %5156 = vmatpush3.bf16.msra.mxu1 %v5683_v9  ;;  %v5723_v9 = vld [vmem:[%s6992_s7 + $0x18] sm:$0xff]  }
 0x24c   : > { %5309 = vmatprep.subr.bf16.mxu1 %v5720_v59 }
 0x24d   : > { %5170 = vmatpush3.bf16.msra.mxu0 %v5686_v15 }
 0x24e   : > { %5150 = vmatmul.mubr.msk.bf16.gmra.mrb[12].mxu1 %vm1555_vm3, %v2379_v11  ;;  %5171 = vmatprep.subr.bf16.mxu0 %v5687_v5 }
 0x24f   : > { %5157 = vmatprep.mubr.msk.bf16.mxu1 %vm1555_vm3, %v6425_v37  ;;  %v2670_v37 = vld [vmem:[#allocation4 + $0x1] sm:$0xff] }
 0x251   : > { %5172 = vmatpush3.bf16.msra.mxu0 %v5687_v5  ;;  %v5695_v5 = vld [vmem:[%s6990_s5 + $0x58] sm:$0xff]  }
 0x252   : > { %5181 = vmatprep.subr.bf16.mxu0 %v5688_v1 }
 0x256   : > { %5158 = vmatmul.mubr.msk.bf16.vlgmr.msra.gmra.mrb[8].mxu1 %vm1555_vm3, %v6427_v40 }
 0x257   : > { %5161 = vmatprep.mubr.msk.bf16.mxu1 %vm1555_vm3, %v6433_v44  ;;  %5310 = vmatpush3.bf16.msra.mxu1 %v5720_v59  ;;  %v5711_v59 = vld [vmem:[%s6990_s5 + $0xd8] sm:$0xff]  }
 0x258   : > { %5311 = vmatprep.subr.bf16.mxu1 %v5721_v60 }
 0x25b   : > { %5312 = vmatpush3.bf16.msra.mxu1 %v5721_v60  ;;  %v5712_v60 = vld [vmem:[%s6990_s5 + $0xe0] sm:$0xff]  }
 0x25c   : > { %5313 = vmatprep.subr.bf16.mxu1 %v5722_v0 }
 0x25e   : > { %5162 = vmatmul.mubr.msk.bf16.gmra.mrb[12].mxu1 %vm1555_vm3, %v2493_v12 }
 0x25f   : > { %5314 = vmatpush3.bf16.msra.mxu1 %v5722_v0 }
 0x260   : > { %5315 = vmatprep.subr.bf16.mxu1 %v5723_v9 }
 0x263   : > { %5316 = vmatpush3.bf16.msra.mxu1 %v5723_v9  ;;  %v5719_v9 = vld [vmem:[%s6990_s5 + $0x118] sm:$0xff]  }
 0x264   : > { %5317 = vmatprep.subr.bf16.mxu1 %v5724_v13 }
 0x267   : > { %5318 = vmatpush3.bf16.msra.mxu1 %v5724_v13 }
 0x329   : > { %v5159_v17 = vpop.f32.mrb[8].mxu1 }
 0x32a   : > { %v2605_v18 = vadd.f32 %v5159_v17, %v4633_v16  ;;  %v2557_v19 = vpop.f32.mrb[9].mxu1  ;;  %v5696_v17 = vld [vmem:[%s6990_s5 + $0x60] sm:$0xff]  }
 0x32b   : > { %v2603_v20 = vadd.f32 %v4633_v16, %v2557_v19  ;;  %v5160_v21 = vpop.f32.mrb[10].mxu1 }
 0x32c   : > { %v2613_v22 = vmax.f32 %v2605_v18, 0.0  ;;  %v2606_v23 = vadd.f32 %v5160_v21, %v4633_v16  ;;  %v2560_v24 = vpop.f32.mrb[11].mxu1 }
 0x32d   : > { %v2611_v25 = vmax.f32 %v2603_v20, 0.0  ;;  %v2604_v26 = vadd.f32 %v4633_v16, %v2560_v24 }
 0x32e   : > { %2644 = vst.msk [vmem:[#allocation4 + $0x31] sm:$0xff] %vm2619_vm5, %v2613_v22  ;;  %v2614_v27 = vmax.f32 %v2606_v23, 0.0  ;;  %v5697_v23 = vld [vmem:[%s6990_s5 + $0x68] sm:$0xff]  }
 0x32f   : > { %2642 = vst.msk [vmem:[#allocation4 + $0x11] sm:$0xff] %vm2619_vm5, %v2611_v25  ;;  %v2612_v28 = vmax.f32 %v2604_v26, 0.0  ;;  %v5698_v25 = vld [vmem:[%s6990_s5 + $0x70] sm:$0xff]  }
 0x330   : > { %2645 = vst.msk [vmem:[#allocation4 + $0x41] sm:$0xff] %vm2619_vm5, %v2614_v27 }
 0x331   : > { %2643 = vst.msk [vmem:[#allocation4 + $0x21] sm:$0xff] %vm2619_vm5, %v2612_v28  ;;  %v5163_v29 = vpop.f32.mrb[12].mxu1 }
 0x332   : > { %v2609_v30 = vadd.f32 %v5163_v29, %v4633_v16  ;;  %v2573_v31 = vpop.f32.mrb[13].mxu1  ;;  %v5699_v29 = vld [vmem:[%s6990_s5 + $0x78] sm:$0xff]  }
 0x333   : > { %v2607_v32 = vadd.f32 %v4633_v16, %v2573_v31  ;;  %v5164_v33 = vpop.f32.mrb[14].mxu1  ;;  %v5700_v31 = vld [vmem:[%s6990_s5 + $0x80] sm:$0xff]  }
 0x334   : > { %v2617_v34 = vmax.f32 %v2609_v30, 0.0  ;;  %v2610_v35 = vadd.f32 %v5164_v33, %v4633_v16  ;;  %v2576_v36 = vpop.f32.mrb[15].mxu1  ;;  %v5701_v33 = vld [vmem:[%s6990_s5 + $0x88] sm:$0xff]  }
 0x335   : > { %v2615_v38 = vmax.f32 %v2607_v32, 0.0  ;;  %v2608_v39 = vadd.f32 %v4633_v16, %v2576_v36  ;;  %v6547_v45 = vld [vmem:[#allocation4 + $0x31] sm:$0xff]  ;;  %v5725_v16 = vld [vmem:[%s6992_s7 + $0x28] sm:$0xff]  }
 0x336   : > { %2648 = vst.msk [vmem:[#allocation4 + $0x71] sm:$0xff] %vm2619_vm5, %v2617_v34  ;;  %v2618_v40 = vmax.f32 %v2610_v35, 0.0  ;;  %v6540_v41 = vld [vmem:[#allocation4 + $0x11] sm:$0xff]  ;;  %5319 = vmatprep.subr.bf16.mxu1 %v5725_v16 }
 0x337   : > { %2646 = vst.msk [vmem:[#allocation4 + $0x51] sm:$0xff] %vm2619_vm5, %v2615_v38  ;;  %v2616_v42 = vmax.f32 %v2608_v39, 0.0  ;;  %v2678_v43 = vpack.c.bf16 %v6540_v41, %v2670_v37  ;;  %v6563_v49 = vld [vmem:[#allocation4 + $0x41] sm:$0xff]  ;;  %v6571_v53 = vld [vmem:[#allocation4 + $0x10] sm:$0xff]  ;;  %5320 = vmatpush3.bf16.msra.mxu1 %v5725_v16  ;;  %v5703_v38 = vld [vmem:[%s6990_s5 + $0x98] sm:$0xff]  }
 0x338   : > { %2649 = vst.msk [vmem:[#allocation4 + $0x81] sm:$0xff] %vm2619_vm5, %v2618_v40  ;;  %v6545_v44 = vld [vmem:[#allocation4 + $0x21] sm:$0xff]  ;;  %v2658_v58 = vpack.c.bf16 %v6571_v53, %v2650_v52  ;;  %v6606_v3 = vld [vmem:[#allocation4 + $0x30] sm:$0xff] }
 0x339   : > { %2647 = vst.msk [vmem:[#allocation4 + $0x61] sm:$0xff] %vm2619_vm5, %v2616_v42  ;;  %5173 = vmatprep.mubr.msk.bf16.mxu0 %vm2619_vm5, %v2678_v43  ;;  %v6553_v46 = vpack.c.bf16 %v6547_v45, %v6545_v44  ;;  %v6599_v62 = vld [vmem:[#allocation4 + $0x20] sm:$0xff]  ;;  %v6631_v12 = vld [vmem:[#allocation4 + $0x12] sm:$0xff]  ;;  %v3161_v39 = vpack.c.bf16 %v6545_v44, %v6540_v41  ;;  %v3162_v42 = vpack.c.bf16 %v6563_v49, %v6547_v45  ;;  %v5705_v43 = vld [vmem:[%s6990_s5 + $0xa8] sm:$0xff]  }
 0x33a   : > { %v6610_v4 = vpack.c.bf16 %v6606_v3, %v6599_v62  ;;  %v6612_v6 = vld [vmem:[#allocation4 + $0x40] sm:$0xff]  ;;  %v6655_v20 = vld [vmem:[#allocation4 + $0x32] sm:$0xff]  ;;  %v3031_v30 = vpack.c.bf16 %v6599_v62, %v6571_v53  ;;  %v5709_v53 = vld [vmem:[%s6990_s5 + $0xc8] sm:$0xff]  }
 0x33b   : > { %5174 = vmatmul.mubr.msk.bf16.vlgmr.msra.gmra.mrb[8].mxu0 %vm2619_vm5, %v6553_v46  ;;  %v6651_v18 = vld [vmem:[#allocation4 + $0x22] sm:$0xff]  ;;  %v3032_v32 = vpack.c.bf16 %v6612_v6, %v6606_v3  ;;  %v5702_v35 = vld [vmem:[%s6990_s5 + $0x90] sm:$0xff]   ;;  %v5715_v3 = vld [vmem:[%s6990_s5 + $0xf8] sm:$0xff]  }
 0x33c   : > { %5182 = vmatpush3.bf16.msra.mxu0 %v5688_v1  ;;  %v2901_v1 = vpack.c.bf16 %v6631_v12, %v2893_v2  ;;  %v6659_v21 = vpack.c.bf16 %v6655_v20, %v6651_v18  ;;  %v6661_v22 = vld [vmem:[#allocation4 + $0x42] sm:$0xff]  ;;  %v5706_v44 = vld [vmem:[%s6990_s5 + $0xb0] sm:$0xff]   ;;  %v4770_v2 = vld [vmem:[%s6991_s6] ss:$0 sm:$0xff] }
 0x33d   : > { %5183 = vmatprep.subr.bf16.mxu0 %v5689_v47  ;;  %v6575_v55 = vld [vmem:[#allocation4 + $0x71] sm:$0xff]  ;;  %v5704_v40 = vld [vmem:[%s6990_s5 + $0xa0] sm:$0xff]   ;;  %v3292_v52 = vpack.c.bf16 %v6661_v22, %v6655_v20 }
 0x33e   : > { %v6565_v50 = vld [vmem:[#allocation4 + $0x51] sm:$0xff] }
 0x33f   : > { %v6569_v51 = vpack.c.bf16 %v6565_v50, %v6563_v49  ;;  %v6601_v63 = vld [vmem:[#allocation4 + $0x50] sm:$0xff]  ;;  %v6704_v36 = vld [vmem:[#allocation4 + $0x80] sm:$0xff]  ;;  %v3291_v49 = vpack.c.bf16 %v6651_v18, %v6631_v12 }
 0x340   : > { %5184 = vmatpush3.bf16.msra.mxu0 %v5689_v47  ;;  %v6573_v54 = vld [vmem:[#allocation4 + $0x61] sm:$0xff]  ;;  %v6619_v8 = vpack.c.bf16 %v6601_v63, %v6612_v6  ;;  %v2657_v14 = vld [vmem:[#allocation4 + $0x70] sm:$0xff] }
 0x341   : > { %5177 = vmatprep.mubr.msk.bf16.mxu0 %vm2619_vm5, %v6569_v51  ;;  %5185 = vmatprep.subr.bf16.mxu0 %v5690_v48  ;;  %v6581_v56 = vpack.c.bf16 %v6575_v55, %v6573_v54  ;;  %v2656_v11 = vld [vmem:[#allocation4 + $0x60] sm:$0xff]  ;;  %v6653_v19 = vld [vmem:[#allocation4 + $0x52] sm:$0xff]  ;;  %v3034_v37 = vpack.c.bf16 %v6704_v36, %v2657_v14  ;;  %v3163_v41 = vpack.c.bf16 %v6573_v54, %v6565_v50  ;;  %v5717_v6 = vld [vmem:[%s6990_s5 + $0x108] sm:$0xff]  }
 0x342   : > { %v6636_v15 = vpack.c.bf16 %v2657_v14, %v2656_v11  ;;  %v6668_v24 = vpack.c.bf16 %v6653_v19, %v6661_v22  ;;  %v2899_v26 = vld [vmem:[#allocation4 + $0x62] sm:$0xff]  ;;  %v6677_v27 = vld [vmem:[#allocation4 + $0x72] sm:$0xff]  ;;  %v3033_v34 = vpack.c.bf16 %v2656_v11, %v6601_v63 }
 0x343   : > { %5178 = vmatmul.mubr.msk.bf16.gmra.mrb[12].mxu0 %vm2619_vm5, %v6581_v56  ;;  %v6680_v28 = vpack.c.bf16 %v6677_v27, %v2899_v26  ;;  %v6729_v47 = vld [vmem:[#allocation4 + $0x81] sm:$0xff]  ;;  %v3293_v54 = vpack.c.bf16 %v2899_v26, %v6653_v19  ;;  %v5714_v62 = vld [vmem:[%s6990_s5 + $0xf0] sm:$0xff]   ;;  %v5727_v11 = vld [vmem:[%s6992_s7 + $0x38] sm:$0xff]  }
 0x344   : > { %5186 = vmatpush3.bf16.msra.mxu0 %v5690_v48  ;;  %5189 = vmatprep.mubr.msk.bf16.mxu0 %vm2619_vm5, %v2658_v58  ;;  %v3164_v45 = vpack.c.bf16 %v6729_v47, %v6575_v55  ;;  %v5707_v48 = vld [vmem:[%s6990_s5 + $0xb8] sm:$0xff]   ;;  %v5708_v50 = vld [vmem:[%s6990_s5 + $0xc0] sm:$0xff]   ;;  %v5710_v55 = vld [vmem:[%s6990_s5 + $0xd0] sm:$0xff]  }
 0x345   : > { %5187 = vmatprep.subr.bf16.mxu0 %v5691_v57  ;;  %v3421_v63 = vld [vmem:[#allocation4 + $0x90] sm:$0xff] }
 0x346   : > { %v3425_v0 = vpack.c.bf16 %v3421_v63, %v6704_v36 }
 0x348   : > { %5188 = vmatpush3.bf16.msra.mxu0 %v5691_v57  ;;  %v3290_v57 = vld [vmem:[#allocation4 + $0x82] sm:$0xff] }
 0x349   : > { %5197 = vmatprep.subr.bf16.mxu0 %v5692_v61  ;;  %v3294_v58 = vpack.c.bf16 %v3290_v57, %v6677_v27 }
 0x34b   : > { %5190 = vmatmul.mubr.msk.bf16.vlgmr.msra.gmra.mrb[8].mxu0 %vm2619_vm5, %v6610_v4 }
 0x34c   : > { %5198 = vmatpush3.bf16.msra.mxu0 %v5692_v61  ;;  %5193 = vmatprep.mubr.msk.bf16.mxu0 %vm2619_vm5, %v6619_v8  ;;  %v5713_v61 = vld [vmem:[%s6990_s5 + $0xe8] sm:$0xff]  }
 0x34d   : > { %5199 = vmatprep.subr.bf16.mxu0 %v5693_v7 }
 0x350   : > { %5200 = vmatpush3.bf16.msra.mxu0 %v5693_v7  ;;  %v3551_v7 = vld [vmem:[#allocation4 + $0x91] sm:$0xff] }
 0x351   : > { %5201 = vmatprep.subr.bf16.mxu0 %v5694_v10 }
 0x353   : > { %5194 = vmatmul.mubr.msk.bf16.gmra.mrb[12].mxu0 %vm2619_vm5, %v6636_v15 }
 0x354   : > { %5202 = vmatpush3.bf16.msra.mxu0 %v5694_v10  ;;  %5205 = vmatprep.mubr.msk.bf16.mxu0 %vm2619_vm5, %v2901_v1  ;;  %v5726_v10 = vld [vmem:[%s6992_s7 + $0x30] sm:$0xff]  }
 0x355   : > { %5203 = vmatprep.subr.bf16.mxu0 %v5695_v5  ;;  %5321 = vmatprep.subr.bf16.mxu1 %v5726_v10 }
 0x356   : > { %5322 = vmatpush3.bf16.msra.mxu1 %v5726_v10 }
 0x357   : > { %5323 = vmatprep.subr.bf16.mxu1 %v5727_v11 }
 0x358   : > { %5204 = vmatpush3.bf16.msra.mxu0 %v5695_v5 }
 0x359   : > { %5213 = vmatprep.subr.bf16.mxu0 %v5696_v17 }
 0x35a   : > { %5324 = vmatpush3.bf16.msra.mxu1 %v5727_v11 }
 0x35b   : > { %5206 = vmatmul.mubr.msk.bf16.vlgmr.msra.gmra.mrb[8].mxu0 %vm2619_vm5, %v6659_v21 }
 0x35c   : > { %5214 = vmatpush3.bf16.msra.mxu0 %v5696_v17  ;;  %5209 = vmatprep.mubr.msk.bf16.mxu0 %vm2619_vm5, %v6668_v24 }
 0x35d   : > { %5215 = vmatprep.subr.bf16.mxu0 %v5697_v23 }
 0x360   : > { %5216 = vmatpush3.bf16.msra.mxu0 %v5697_v23 }
 0x361   : > { %5217 = vmatprep.subr.bf16.mxu0 %v5698_v25 }
 0x363   : > { %5210 = vmatmul.mubr.msk.bf16.gmra.mrb[12].mxu0 %vm2619_vm5, %v6680_v28 }
 0x364   : > { %5218 = vmatpush3.bf16.msra.mxu0 %v5698_v25  ;;  %5221 = vmatprep.mubr.msk.bf16.mxu0 %vm2619_vm5, %v3031_v30 }
 0x365   : > { %5219 = vmatprep.subr.bf16.mxu0 %v5699_v29 }
 0x368   : > { %5220 = vmatpush3.bf16.msra.mxu0 %v5699_v29 }
 0x369   : > { %5229 = vmatprep.subr.bf16.mxu0 %v5700_v31 }
 0x36b   : > { %5222 = vmatmul.mubr.msk.bf16.vlgmr.msra.gmra.mrb[8].mxu0 %vm2619_vm5, %v3032_v32 }
 0x36c   : > { %5230 = vmatpush3.bf16.msra.mxu0 %v5700_v31  ;;  %5225 = vmatprep.mubr.msk.bf16.mxu0 %vm2619_vm5, %v3033_v34 }
 0x36d   : > { %5231 = vmatprep.subr.bf16.mxu0 %v5701_v33 }
 0x370   : > { %5232 = vmatpush3.bf16.msra.mxu0 %v5701_v33 }
 0x371   : > { %5233 = vmatprep.subr.bf16.mxu0 %v5702_v35 }
 0x373   : > { %5226 = vmatmul.mubr.msk.bf16.gmra.mrb[12].mxu0 %vm2619_vm5, %v3034_v37 }
 0x374   : > { %5234 = vmatpush3.bf16.msra.mxu0 %v5702_v35  ;;  %5237 = vmatprep.mubr.msk.bf16.mxu0 %vm2619_vm5, %v3161_v39  ;;  %v5934_v39 = vmov 0  }
 0x375   : > { %5235 = vmatprep.subr.bf16.mxu0 %v5703_v38  ;;  %5630 = vset.pattern.permute.xlu0 %v5934_v39 }
 0x378   : > { %5236 = vmatpush3.bf16.msra.mxu0 %v5703_v38  ;;  %v5933_v38 = vmov 1  }
 0x379   : > { %5245 = vmatprep.subr.bf16.mxu0 %v5704_v40  ;;  %5631 = vset.pattern.permute.xlu1 %v5933_v38 }
 0x37b   : > { %5238 = vmatmul.mubr.msk.bf16.vlgmr.msra.gmra.mrb[8].mxu0 %vm2619_vm5, %v3162_v42 }
 0x37c   : > { %5246 = vmatpush3.bf16.msra.mxu0 %v5704_v40  ;;  %5241 = vmatprep.mubr.msk.bf16.mxu0 %vm2619_vm5, %v3163_v41  ;;  %v4771_v40 = vld [vmem:[%s6993_s8] ss:$0 sm:$0xff] }
 0x37d   : > { %5247 = vmatprep.subr.bf16.mxu0 %v5705_v43 }
 0x380   : > { %5248 = vmatpush3.bf16.msra.mxu0 %v5705_v43 }
 0x381   : > { %5249 = vmatprep.subr.bf16.mxu0 %v5706_v44 }
 0x383   : > { %5242 = vmatmul.mubr.msk.bf16.gmra.mrb[12].mxu0 %vm2619_vm5, %v3164_v45 }
 0x384   : > { %5250 = vmatpush3.bf16.msra.mxu0 %v5706_v44  ;;  %5253 = vmatprep.mubr.msk.bf16.mxu0 %vm2619_vm5, %v3291_v49 }
 0x385   : > { %5251 = vmatprep.subr.bf16.mxu0 %v5707_v48 }
 0x388   : > { %5252 = vmatpush3.bf16.msra.mxu0 %v5707_v48 }
 0x389   : > { %5261 = vmatprep.subr.bf16.mxu0 %v5708_v50 }
 0x38b   : > { %5254 = vmatmul.mubr.msk.bf16.vlgmr.msra.gmra.mrb[8].mxu0 %vm2619_vm5, %v3292_v52  ;;  %v5935_v52 = vmov 2  }
 0x38c   : > { %5262 = vmatpush3.bf16.msra.mxu0 %v5708_v50  ;;  %5257 = vmatprep.mubr.msk.bf16.mxu0 %vm2619_vm5, %v3293_v54 }
 0x38d   : > { %5263 = vmatprep.subr.bf16.mxu0 %v5709_v53 }
 0x390   : > { %5264 = vmatpush3.bf16.msra.mxu0 %v5709_v53 }
 0x391   : > { %5265 = vmatprep.subr.bf16.mxu0 %v5710_v55 }
 0x393   : > { %5258 = vmatmul.mubr.msk.bf16.gmra.mrb[12].mxu0 %vm2619_vm5, %v3294_v58 }
 0x394   : > { %5266 = vmatpush3.bf16.msra.mxu0 %v5710_v55  ;;  %5269 = vmatprep.mubr.msk.bf16.mxu0 %vm2619_vm5, %v6610_v4  ;;  %v5716_v4 = vld [vmem:[%s6990_s5 + $0x100] sm:$0xff]  }
 0x395   : > { %5267 = vmatprep.subr.bf16.mxu0 %v5711_v59 }
 0x398   : > { %5268 = vmatpush3.bf16.msra.mxu0 %v5711_v59  ;;  %v5936_v59 = vmov 3  }
 0x399   : > { %5277 = vmatprep.subr.bf16.mxu0 %v5712_v60 }
 0x39b   : > { %5270 = vmatmul.mubr.msk.bf16.vlgmr.msra.gmra.mrb[8].mxu0 %vm2619_vm5, %v6619_v8  ;;  %v3555_v8 = vpack.c.bf16 %v3551_v7, %v6729_v47  ;;  %v5937_v7 = vmov 4  }
 0x39c   : > { %5278 = vmatpush3.bf16.msra.mxu0 %v5712_v60  ;;  %5273 = vmatprep.mubr.msk.bf16.mxu0 %vm2619_vm5, %v6636_v15 }
 0x39d   : > { %5279 = vmatprep.subr.bf16.mxu0 %v5713_v61 }
 0x3a0   : > { %5280 = vmatpush3.bf16.msra.mxu0 %v5713_v61 }
 0x3a1   : > { %5281 = vmatprep.subr.bf16.mxu0 %v5714_v62 }
 0x3a3   : > { %5274 = vmatmul.mubr.msk.bf16.gmra.mrb[12].mxu0 %vm2619_vm5, %v3425_v0 }
 0x3a4   : > { %5282 = vmatpush3.bf16.msra.mxu0 %v5714_v62  ;;  %5285 = vmatprep.mubr.msk.bf16.mxu0 %vm2619_vm5, %v6553_v46  ;;  %v5718_v46 = vld [vmem:[%s6990_s5 + $0x110] sm:$0xff]  }
 0x3a5   : > { %5283 = vmatprep.subr.bf16.mxu0 %v5715_v3 }
 0x3a8   : > { %5284 = vmatpush3.bf16.msra.mxu0 %v5715_v3 }
 0x3a9   : > { %5293 = vmatprep.subr.bf16.mxu0 %v5716_v4 }
 0x3ab   : > { %5286 = vmatmul.mubr.msk.bf16.vlgmr.msra.gmra.mrb[8].mxu0 %vm2619_vm5, %v6569_v51  ;;  %v3681_v51 = vld [vmem:[#allocation4 + $0x92] sm:$0xff] }
 0x3ac   : > { %5294 = vmatpush3.bf16.msra.mxu0 %v5716_v4  ;;  %5289 = vmatprep.mubr.msk.bf16.mxu0 %vm2619_vm5, %v6581_v56  ;;  %v3685_v56 = vpack.c.bf16 %v3681_v51, %v3290_v57 }
 0x3ad   : > { %5295 = vmatprep.subr.bf16.mxu0 %v5717_v6 }
 0x3b0   : > { %5296 = vmatpush3.bf16.msra.mxu0 %v5717_v6 }
 0x3b1   : > { %5297 = vmatprep.subr.bf16.mxu0 %v5718_v46 }
 0x3b3   : > { %5290 = vmatmul.mubr.msk.bf16.gmra.mrb[12].mxu0 %vm2619_vm5, %v3555_v8 }
 0x3b4   : > { %5298 = vmatpush3.bf16.msra.mxu0 %v5718_v46  ;;  %5301 = vmatprep.mubr.msk.bf16.mxu0 %vm2619_vm5, %v6659_v21 }
 0x3b5   : > { %5299 = vmatprep.subr.bf16.mxu0 %v5719_v9 }
 0x3b8   : > { %5300 = vmatpush3.bf16.msra.mxu0 %v5719_v9  ;;  %v5938_v9 = vmov 5  }
 0x3bb   : > { %5302 = vmatmul.mubr.msk.bf16.vlgmr.msra.gmra.mrb[8].mxu0 %vm2619_vm5, %v6668_v24 }
 0x3bc   : > { %5305 = vmatprep.mubr.msk.bf16.mxu0 %vm2619_vm5, %v6680_v28 }
 0x3c3   : > { %5306 = vmatmul.mubr.msk.bf16.gmra.mrb[12].mxu0 %vm2619_vm5, %v3685_v56 }
 0x48e   : > { %v5303_v12 = vpop.f32.mrb[8].mxu0 }
 0x48f   : > { %v3813_v13 = vadd.f32 %v5303_v12, %v4770_v2  ;;  %v3765_v14 = vpop.f32.mrb[9].mxu0 }
 0x490   : > { %v3811_v15 = vadd.f32 %v4770_v2, %v3765_v14  ;;  %v5304_v5 = vpop.f32.mrb[10].mxu0 }
 0x491   : > { %v3814_v1 = vadd.f32 %v5304_v5, %v4770_v2  ;;  %v3768_v16 = vpop.f32.mrb[11].mxu0  ;;  %v3821_v18 = vmax.f32 %v3813_v13, 0.0 }
 0x492   : > { %v3812_v17 = vadd.f32 %v4770_v2, %v3768_v16  ;;  %v3819_v20 = vmax.f32 %v3811_v15, 0.0 }
 0x493   : > { %v3822_v19 = vmax.f32 %v3814_v1, 0.0 }
 0x494   : > { %v3820_v21 = vmax.f32 %v3812_v17, 0.0 }
 0x495   : > { %v3828_v22 = vpack.c.bf16 %v3822_v19, %v3821_v18 }
 0x496   : > { %v3827_v23 = vpack.c.bf16 %v3820_v21, %v3819_v20  ;;  %v5307_v24 = vpop.f32.mrb[12].mxu0 }
 0x497   : > { %v3817_v25 = vadd.f32 %v5307_v24, %v4770_v2  ;;  %v3781_v26 = vpop.f32.mrb[13].mxu0 }
 0x498   : > { %v3815_v27 = vadd.f32 %v4770_v2, %v3781_v26  ;;  %v5308_v28 = vpop.f32.mrb[14].mxu0  ;;  %5325 = vmatprep.mubr.bf16.mxu1 %v3827_v23  ;;  %v4040_v26 = vld [vmem:[#allocation11 + $0x40] sm:$0xff] }
 0x499   : > { %v3818_v29 = vadd.f32 %v5308_v28, %v4770_v2  ;;  %v3784_v30 = vpop.f32.mrb[15].mxu0  ;;  %5326 = vmatmul.mubr.bf16.vlgmr.msra.gmra.mrb[16].mxu1 %v3828_v22  ;;  %v3825_v32 = vmax.f32 %v3817_v25, 0.0 }
 0x49a   : > { %v3816_v31 = vadd.f32 %v4770_v2, %v3784_v30  ;;  %v3823_v34 = vmax.f32 %v3815_v27, 0.0  ;;  %v4041_v27 = vld [vmem:[#allocation11 + $0x48] sm:$0xff] }
 0x49b   : > { %v3826_v33 = vmax.f32 %v3818_v29, 0.0  ;;  %v3975_v29 = vld [vmem:[#allocation11] sm:$0xff]  ;;  %v3976_v30 = vld [vmem:[#allocation11 + $0x8] sm:$0xff] }
 0x49c   : > { %v3824_v35 = vmax.f32 %v3816_v31, 0.0  ;;  %v4098_v31 = vld [vmem:[#allocation11 + $0x88] sm:$0xff] }
 0x49d   : > { %v3830_v36 = vpack.c.bf16 %v3826_v33, %v3825_v32 }
 0x49e   : > { %v3829_v37 = vpack.c.bf16 %v3824_v35, %v3823_v34 }
 0x4a0   : > { %5329 = vmatprep.mubr.bf16.mxu1 %v3829_v37 }
 0x4a1   : > { %5330 = vmatmul.mubr.bf16.gmra.mrb[20].mxu1 %v3830_v36 }
 0x56c   : > { %v5327_v42 = vpop.f32.mrb[16].mxu1 }
 0x56d   : > { %v3945_v43 = vadd.f32 %v5327_v42, %v4771_v40  ;;  %v3936_v41 = vpop.f32.mrb[17].mxu1  ;;  %v3977_v42 = vld [vmem:[#allocation11 + $0x10] sm:$0xff] }
 0x56e   : > { %v5328_v44 = vpop.f32.mrb[18].mxu1  ;;  %v3937_v45 = vadd.f32 %v4771_v40, %v3936_v41  ;;  %v3978_v41 = vld [vmem:[#allocation11 + $0x18] sm:$0xff] }
 0x56f   : > { %v6820_v47 = vmax.f32 %v3945_v43, 0.0  ;;  %v3939_v48 = vpop.f32.mrb[19].mxu1  ;;  %v3948_v58 = vadd.f32 %v5328_v44, %v4771_v40 }
 0x570   : > { %v6824_v49 = vmax.f32 %v3937_v45, 0.0  ;;  %v3940_v61 = vadd.f32 %v4771_v40, %v3939_v48  ;;  %v4155_v45 = vld [vmem:[#allocation11 + $0xc8] sm:$0xff] }
 0x571   : > { %4057 = vperm.xlu1 %5631, %v6820_v47   ;;  %3995 = vperm.xlu0 %5630, %v6820_v47   ;;  %v6833_v60 = vmax.f32 %v3948_v58, 0.0  ;;  %v4044_v58 = vld [vmem:[#allocation11 + $0x60] sm:$0xff] }
 0x572   : > { %v6843_v62 = vmax.f32 %v3940_v61, 0.0 }
 0x574   : > { %v5331_v50 = vpop.f32.mrb[20].mxu1 }
 0x575   : > { %5632 = vset.pattern.permute.xlu1 %v5935_v52  ;;  %3985 = vperm.xlu0 %5630, %v6824_v49   ;;  %v3952_v53 = vpop.f32.mrb[21].mxu1  ;;  %v3961_v63 = vadd.f32 %v5331_v50, %v4771_v40 }
 0x576   : > { %4114 = vperm.xlu1 %5632, %v6820_v47   ;;  %v5332_v54 = vpop.f32.mrb[22].mxu1  ;;  %v3953_v3 = vadd.f32 %v4771_v40, %v3952_v53 }
 0x577   : > { %v3964_v55 = vadd.f32 %v5332_v54, %v4771_v40  ;;  %v3955_v57 = vpop.f32.mrb[23].mxu1  ;;  %v3973_v0 = vmax.f32 %v3961_v63, 0.0  ;;  %v4099_v54 = vld [vmem:[#allocation11 + $0x90] sm:$0xff] }
 0x578   : > { %v3971_v4 = vmax.f32 %v3953_v3, 0.0  ;;  %v3956_v6 = vadd.f32 %v4771_v40, %v3955_v57  ;;  %v4042_v40 = vld [vmem:[#allocation11 + $0x50] sm:$0xff]  ;;  %v3979_v3 = vld [vmem:[#allocation11 + $0x20] sm:$0xff] }
 0x579   : > { %5635 = vset.pattern.permute.xlu0 %v5935_v52  ;;  %v3974_v8 = vmax.f32 %v3964_v55, 0.0  ;;  %v4156_v63 = vld [vmem:[#allocation11 + $0xd0] sm:$0xff] }
 0x57a   : > { %5633 = vset.pattern.permute.xlu1 %v5936_v59  ;;  %4106 = vperm.xlu0 %5635, %v6824_v49   ;;  %v3972_v46 = vmax.f32 %v3956_v6, 0.0 }
 0x57b   : > { %4171 = vperm.xlu1 %5633, %v6820_v47  }
 0x57e   : > { %5638 = vset.pattern.permute.xlu0 %v5933_v38 }
 0x57f   : > { %5634 = vset.pattern.permute.xlu1 %v5933_v38  ;;  %4061 = vperm.xlu0 %5638, %v6833_v60  }
 0x580   : > { %4049 = vperm.xlu1 %5634, %v6824_v49  }
 0x583   : > { %5639 = vset.pattern.permute.xlu0 %v5935_v52 }
 0x584   : > { %5636 = vset.pattern.permute.xlu1 %v5936_v59  ;;  %4118 = vperm.xlu0 %5639, %v6833_v60  }
 0x585   : > { %4163 = vperm.xlu1 %5636, %v6824_v49  }
 0x588   : > { %5641 = vset.pattern.permute.xlu0 %v5934_v39 }
 0x589   : > { %5637 = vset.pattern.permute.xlu1 %v5934_v39  ;;  %3990 = vperm.xlu0 %5641, %v6843_v62  }
 0x58a   : > { %4000 = vperm.xlu1 %5637, %v6833_v60  }
 0x58d   : > { %5644 = vset.pattern.permute.xlu0 %v5936_v59 }
 0x58e   : > { %5640 = vset.pattern.permute.xlu1 %v5936_v59  ;;  %4167 = vperm.xlu0 %5644, %v6843_v62  }
 0x58f   : > { %4175 = vperm.xlu1 %5640, %v6833_v60  }
 0x592   : > { %5645 = vset.pattern.permute.xlu0 %v5934_v39 }
 0x593   : > { %5642 = vset.pattern.permute.xlu1 %v5933_v38  ;;  %4015 = vperm.xlu0 %5645, %v3973_v0  }
 0x594   : > { %4053 = vperm.xlu1 %5642, %v6843_v62  }
 0x597   : > { %5647 = vset.pattern.permute.xlu0 %v5935_v52 }
 0x598   : > { %5643 = vset.pattern.permute.xlu1 %v5935_v52  ;;  %4130 = vperm.xlu0 %5647, %v3973_v0  }
 0x599   : > { %4110 = vperm.xlu1 %5643, %v6843_v62  }
 0x59c   : > { %5651 = vset.pattern.permute.xlu0 %v5936_v59 }
 0x59d   : > { %5646 = vset.pattern.permute.xlu1 %v5933_v38  ;;  %4179 = vperm.xlu0 %5651, %v3971_v4  }
 0x59e   : > { %4073 = vperm.xlu1 %5646, %v3973_v0  }
 0x5a1   : > { %5656 = vset.pattern.permute.xlu0 %v5933_v38 }
 0x5a2   : > { %5648 = vset.pattern.permute.xlu1 %v5934_v39  ;;  %4069 = vperm.xlu0 %5656, %v3972_v46  }
 0x5a3   : > { %4005 = vperm.xlu1 %5648, %v3971_v4  }
 0x5a6   : > { %5657 = vset.pattern.permute.xlu0 %v5936_v59 }
 0x5a7   : > { %4187 = vperm.xlu0 %5657, %v3973_v0   ;;  %5649 = vset.pattern.permute.xlu1 %v5933_v38 }
 0x5a8   : > { %4065 = vperm.xlu1 %5649, %v3971_v4  }
 0x5ab   : > { %5661 = vset.pattern.permute.xlu0 %v5937_v7 }
 0x5ac   : > { %4260 = vperm.xlu0 %5661, %v6843_v62   ;;  %5650 = vset.pattern.permute.xlu1 %v5935_v52 }
 0x5ad   : > { %4122 = vperm.xlu1 %5650, %v3971_v4  }
 0x5b0   : > { %4264 = vperm.xlu0 %5661, %v6820_v47  }
 0x5b1   : > { %5652 = vset.pattern.permute.xlu1 %v5934_v39 }
 0x5b2   : > { %4020 = vperm.xlu1 %5652, %v3974_v8  }
 0x5b4   : > { %4268 = vperm.xlu0 %5661, %v6833_v60  }
 0x5b6   : > { %5653 = vset.pattern.permute.xlu1 %v5933_v38  ;;  %v4097_v38 = vld [vmem:[#allocation11 + $0x80] sm:$0xff] }
 0x5b7   : > { %4077 = vperm.xlu1 %5653, %v3974_v8  }
 0x5b8   : > { %4272 = vperm.xlu0 %5661, %v3971_v4  }
 0x5bb   : > { %5654 = vset.pattern.permute.xlu1 %v5935_v52 }
 0x5bc   : > { %4280 = vperm.xlu0 %5661, %v3973_v0   ;;  %4134 = vperm.xlu1 %5654, %v3974_v8  }
 0x5c0   : > { %4276 = vperm.xlu0 %5661, %v3972_v46   ;;  %5655 = vset.pattern.permute.xlu1 %v5934_v39 }
 0x5c1   : > { %4010 = vperm.xlu1 %5655, %v3972_v46  }
 0x5c4   : > { %5665 = vset.pattern.permute.xlu0 %v5938_v9 }
 0x5c5   : > { %5658 = vset.pattern.permute.xlu1 %v5935_v52 }
 0x5c6   : > { %4126 = vperm.xlu1 %5658, %v3972_v46  }
 0x5ca   : > { %5659 = vset.pattern.permute.xlu1 %v5936_v59 }
 0x5cb   : > { %4183 = vperm.xlu1 %5659, %v3972_v46  }
 0x5cf   : > { %4191 = vperm.xlu1 %5659, %v3974_v8  }
 0x5d3   : > { %5660 = vset.pattern.permute.xlu1 %v5937_v7 }
 0x5d4   : > { %4256 = vperm.xlu1 %5660, %v6824_v49  }
 0x5d8   : > { %5662 = vset.pattern.permute.xlu1 %v5938_v9 }
 0x5d9   : > { %4313 = vperm.xlu1 %5662, %v6824_v49   ;;  %v4043_v49 = vld [vmem:[#allocation11 + $0x58] sm:$0xff] }
 0x5dd   : > { %4317 = vperm.xlu1 %5662, %v6843_v62  }
 0x5e1   : > { %4321 = vperm.xlu1 %5662, %v6820_v47   ;;  %v4154_v47 = vld [vmem:[#allocation11 + $0xc0] sm:$0xff] }
 0x5e5   : > { %4325 = vperm.xlu1 %5662, %v6833_v60  }
 0x5e9   : > { %4329 = vperm.xlu1 %5662, %v3971_v4   ;;  %v4101_v4 = vld [vmem:[#allocation11 + $0xa0] sm:$0xff] }
 0x5ed   : > { %4337 = vperm.xlu1 %5662, %v3973_v0  }
 0x5f0   : > { %v4058_v51 = vpop.permute.xlu1 %4057  ;;  %v3996_v2 = vpop.permute.xlu0 %3995 }
 0x5f1   : > { %4333 = vperm.xlu1 %5662, %v3972_v46   ;;  %v4082_v52 = vmul.f32 %v4058_v51, %v4042_v40  ;;  %v4025_v53 = vmul.f32 %v3996_v2, %v3977_v42  ;;  %v4100_v46 = vld [vmem:[#allocation11 + $0x98] sm:$0xff] }
 0x5f4   : > { %v3986_v14 = vpop.permute.xlu0 %3985 }
 0x5f5   : > { %v4115_v56 = vpop.permute.xlu1 %4114  ;;  %5663 = vset.pattern.permute.xlu1 %v5937_v7  ;;  %v4023_v35 = vmul.f32 %v3986_v14, %v3975_v29  ;;  %v4046_v14 = vld [vmem:[#allocation11 + $0x70] sm:$0xff]  ;;  %v4158_v29 = vld [vmem:[#allocation11 + $0xe0] sm:$0xff] }
 0x5f6   : > { %4284 = vperm.xlu1 %5663, %v3974_v8   ;;  %v4139_v6 = vmul.f32 %v4115_v56, %v4099_v54 }
 0x5f9   : > { %v4107_v5 = vpop.permute.xlu0 %4106 }
 0x5fa   : > { %v6880_v10 = vpop.permute.xlu1 %4171  ;;  %5664 = vset.pattern.permute.xlu1 %v5938_v9  ;;  %v4137_v48 = vmul.f32 %v4107_v5, %v4097_v38  ;;  %v4090_v9 = vadd.f32 %v4082_v52, %v4025_v53  ;;  %v4104_v52 = vld [vmem:[#allocation11 + $0xb8] sm:$0xff]  ;;  %v4159_v53 = vld [vmem:[#allocation11 + $0xe8] sm:$0xff] }
 0x5fb   : > { %4341 = vperm.xlu1 %5664, %v3974_v8   ;;  %v4196_v51 = vmul.f32 %v6880_v10, %v4156_v63  ;;  %v3980_v10 = vld [vmem:[#allocation11 + $0x28] sm:$0xff] }
 0x5fe   : > { %v4062_v16 = vpop.permute.xlu0 %4061 }
 0x5ff   : > { %v4050_v11 = vpop.permute.xlu1 %4049  ;;  %v4083_v0 = vmul.f32 %v4062_v16, %v4043_v49  ;;  %v3981_v16 = vld [vmem:[#allocation11 + $0x30] sm:$0xff] }
 0x600   : > { %v4080_v32 = vmul.f32 %v4050_v11, %v4040_v26 }
 0x602   : > { %v4088_v43 = vadd.f32 %v4080_v32, %v4023_v35  ;;  %v4102_v35 = vld [vmem:[#allocation11 + $0xa8] sm:$0xff] }
 0x603   : > { %v4119_v18 = vpop.permute.xlu0 %4118 }
 0x604   : > { %v4164_v12 = vpop.permute.xlu1 %4163  ;;  %v4145_v59 = vadd.f32 %v4137_v48, %v4088_v43  ;;  %v3982_v48 = vld [vmem:[#allocation11 + $0x38] sm:$0xff] }
 0x605   : > { %v4194_v60 = vmul.f32 %v4164_v12, %v4154_v47  ;;  %v4140_v12 = vmul.f32 %v4119_v18, %v4100_v46 }
 0x607   : > { %v4202_v2 = vadd.f32 %v4194_v60, %v4145_v59 }
 0x608   : > { %v3991_v20 = vpop.permute.xlu0 %3990 }
 0x609   : > { %v4001_v13 = vpop.permute.xlu1 %4000  ;;  %v4024_v36 = vmul.f32 %v3991_v20, %v3976_v30  ;;  %v4210_v32 = vsel %vm2619_vm5, %v4202_v2, 0.0 }
 0x60a   : > { %v4026_v55 = vmul.f32 %v4001_v13, %v3978_v41  ;;  %v4157_v13 = vld [vmem:[#allocation11 + $0xd8] sm:$0xff] }
 0x60c   : > { %v4091_v11 = vadd.f32 %v4083_v0, %v4026_v55 }
 0x60d   : > { %v4168_v23 = vpop.permute.xlu0 %4167 }
 0x60e   : > { %v6882_v15 = vpop.permute.xlu1 %4175  ;;  %v4195_v61 = vmul.f32 %v4168_v23, %v4155_v45  ;;  %v4147_v23 = vadd.f32 %v4139_v6, %v4090_v9 }
 0x612   : > { %v6886_v25 = vpop.permute.xlu0 %4015 }
 0x613   : > { %v4054_v1 = vpop.permute.xlu1 %4053  ;;  %v4029_v18 = vmul.f32 %v6886_v25, %v3981_v16 }
 0x614   : > { %v4081_v33 = vmul.f32 %v4054_v1, %v4041_v27  ;;  %v4148_v27 = vadd.f32 %v4140_v12, %v4091_v11 }
 0x616   : > { %v4089_v44 = vadd.f32 %v4081_v33, %v4024_v36  ;;  %v4045_v33 = vld [vmem:[#allocation11 + $0x68] sm:$0xff]  ;;  %v4103_v36 = vld [vmem:[#allocation11 + $0xb0] sm:$0xff] }
 0x617   : > { %v6890_v34 = vpop.permute.xlu0 %4130 }
 0x618   : > { %v4111_v17 = vpop.permute.xlu1 %4110  ;;  %v4143_v25 = vmul.f32 %v6890_v34, %v4103_v36  ;;  %v4161_v34 = vld [vmem:[#allocation11 + $0xf8] sm:$0xff]  ;;  %v4248_v36 = vld [vmem:[#allocation12 + $0x8] sm:$0xff] }
 0x619   : > { %v4138_v37 = vmul.f32 %v4111_v17, %v4098_v31  ;;  %v4204_v31 = vadd.f32 %v4196_v51, %v4147_v23 }
 0x61b   : > { %v4146_v50 = vadd.f32 %v4138_v37, %v4089_v44  ;;  %v4047_v44 = vld [vmem:[#allocation11 + $0x78] sm:$0xff] }
 0x61c   : > { %v4180_v57 = vpop.permute.xlu0 %4179 }
 0x61d   : > { %v6884_v19 = vpop.permute.xlu1 %4073  ;;  %v4203_v7 = vadd.f32 %v4195_v61, %v4146_v50  ;;  %v4198_v37 = vmul.f32 %v4180_v57, %v4158_v29 }
 0x61e   : > { %v4086_v30 = vmul.f32 %v6884_v19, %v4046_v14  ;;  %v4213_v19 = vsel %vm2619_vm5, %v4204_v31, 0.0 }
 0x61f   : > { %v4211_v26 = vsel %vm2619_vm5, %v4203_v7, 0.0 }
 0x620   : > { %v4094_v43 = vadd.f32 %v4086_v30, %v4029_v18 }
 0x621   : > { %v4070_v17 = vpop.permute.xlu0 %4069 }
 0x622   : > { %v4006_v21 = vpop.permute.xlu1 %4005  ;;  %v4085_v47 = vmul.f32 %v4070_v17, %v4045_v33  ;;  %v4151_v59 = vadd.f32 %v4143_v25, %v4094_v43  ;;  %v4249_v43 = vld [vmem:[#allocation12 + $0x10] sm:$0xff] }
 0x623   : > { %v4027_v5 = vmul.f32 %v4006_v21, %v3979_v3 }
 0x626   : > { %v4188_v41 = vpop.permute.xlu0 %4187 }
 0x627   : > { %v4066_v22 = vpop.permute.xlu1 %4065 }
 0x628   : > { %v4084_v8 = vmul.f32 %v4066_v22, %v4044_v58  ;;  %v4197_v22 = vmul.f32 %v6882_v15, %v4157_v13  ;;  %v4160_v15 = vld [vmem:[#allocation11 + $0xf0] sm:$0xff] }
 0x629   : > { %v4200_v54 = vmul.f32 %v4188_v41, %v4160_v15  ;;  %v4247_v15 = vld [vmem:[#allocation12] sm:$0xff]  ;;  %v4307_v41 = vld [vmem:[#allocation12 + $0x58] sm:$0xff] }
 0x62a   : > { %v4092_v56 = vadd.f32 %v4084_v8, %v4027_v5  ;;  %v4205_v42 = vadd.f32 %v4197_v22, %v4148_v27 }
 0x62b   : > { %v4208_v46 = vadd.f32 %v4200_v54, %v4151_v59  ;;  %v4251_v54 = vld [vmem:[#allocation12 + $0x20] sm:$0xff] }
 0x62c   : > { %v4123_v24 = vpop.permute.xlu1 %4122  ;;  %v4215_v58 = vsel %vm2619_vm5, %v4205_v42, 0.0 }
 0x62d   : > { %v4141_v1 = vmul.f32 %v4123_v24, %v4101_v4  ;;  %v4212_v24 = vadd.f32 %v4211_v26, %v4210_v32 }
 0x62f   : > { %v4149_v21 = vadd.f32 %v4141_v1, %v4092_v56  ;;  %v4214_v50 = vadd.f32 %v4213_v19, %v4212_v24  ;;  %v4305_v24 = vld [vmem:[#allocation12 + $0x48] sm:$0xff] }
 0x631   : > { %v6888_v28 = vpop.permute.xlu1 %4020  ;;  %v4206_v45 = vadd.f32 %v4198_v37, %v4149_v21  ;;  %v4216_v6 = vadd.f32 %v4215_v58, %v4214_v50  ;;  %v4304_v37 = vld [vmem:[#allocation12 + $0x40] sm:$0xff]  ;;  %v4252_v58 = vld [vmem:[#allocation12 + $0x28] sm:$0xff] }
 0x632   : > { %v4030_v60 = vmul.f32 %v6888_v28, %v3982_v48  ;;  %v4221_v28 = vsel %vm2619_vm5, %v4208_v46, 0.0  ;;  %v4250_v48 = vld [vmem:[#allocation12 + $0x18] sm:$0xff] }
 0x633   : > { %v4217_v63 = vsel %vm2619_vm5, %v4206_v45, 0.0 }
 0x634   : > { %v4218_v9 = vadd.f32 %v4217_v63, %v4216_v6 }
 0x636   : > { %v6892_v39 = vpop.permute.xlu1 %4077 }
 0x637   : > { %v4087_v55 = vmul.f32 %v6892_v39, %v4047_v44  ;;  %v4261_v39 = vpop.permute.xlu0 %4260 }
 0x638   : > { %v4288_v19 = vmul.f32 %v4261_v39, %v4248_v36 }
 0x639   : > { %v4095_v7 = vadd.f32 %v4087_v55, %v4030_v60 }
 0x63b   : > { %v4135_v62 = vpop.permute.xlu1 %4134 }
 0x63c   : > { %v4144_v0 = vmul.f32 %v4135_v62, %v4104_v52 }
 0x63e   : > { %v4152_v51 = vadd.f32 %v4144_v0, %v4095_v7  ;;  %v4309_v0 = vld [vmem:[#allocation12 + $0x68] sm:$0xff] }
 0x640   : > { %v4011_v20 = vpop.permute.xlu1 %4010 }
 0x641   : > { %v4028_v38 = vmul.f32 %v4011_v20, %v3980_v10  ;;  %v4265_v20 = vpop.permute.xlu0 %4264  ;;  %v4231_v10 = vld [vmem:[%s6995_s10] sm:$0x1] }
 0x642   : > { %v4289_v25 = vmul.f32 %v4265_v20, %v4249_v43 }
 0x643   : > { %v4093_v57 = vadd.f32 %v4085_v47, %v4028_v38  ;;  %v4306_v38 = vld [vmem:[#allocation12 + $0x50] sm:$0xff] }
 0x645   : > { %v4127_v40 = vpop.permute.xlu1 %4126  ;;  %v4269_v27 = vpop.permute.xlu0 %4268 }
 0x646   : > { %v4142_v49 = vmul.f32 %v4127_v40, %v4102_v35 }
 0x648   : > { %v4150_v3 = vadd.f32 %v4142_v49, %v4093_v57  ;;  %v4308_v49 = vld [vmem:[#allocation12 + $0x60] sm:$0xff]  ;;  %v4290_v57 = vmul.f32 %v4269_v27, %v4250_v48 }
 0x649   : > { %v4273_v21 = vpop.permute.xlu0 %4272 }
 0x64a   : > { %v4184_v61 = vpop.permute.xlu1 %4183 }
 0x64b   : > { %v4199_v4 = vmul.f32 %v4184_v61, %v4159_v53 }
 0x64d   : > { %v4207_v8 = vadd.f32 %v4199_v4, %v4150_v3  ;;  %v4281_v40 = vpop.permute.xlu0 %4280  ;;  %v4291_v3 = vmul.f32 %v4273_v21, %v4251_v54 }
 0x64e   : > { %v4192_v11 = vpop.permute.xlu1 %4191 }
 0x64f   : > { %v4219_v2 = vsel %vm2619_vm5, %v4207_v8, 0.0  ;;  %v4201_v13 = vmul.f32 %v4192_v11, %v4161_v34 }
 0x650   : > { %v4220_v14 = vadd.f32 %v4219_v2, %v4218_v9 }
 0x651   : > { %v4209_v5 = vadd.f32 %v4201_v13, %v4152_v51  ;;  %v4277_v59 = vpop.permute.xlu0 %4276  ;;  %v4310_v51 = vld [vmem:[#allocation12 + $0x70] sm:$0xff] }
 0x652   : > { %v4222_v1 = vadd.f32 %v4221_v28, %v4220_v14  ;;  %v4292_v34 = vmul.f32 %v4277_v59, %v4252_v58  ;;  %v4253_v14 = vld [vmem:[#allocation12 + $0x30] sm:$0xff] }
 0x653   : > { %v4223_v62 = vsel %vm2619_vm5, %v4209_v5, 0.0  ;;  %v4257_v12 = vpop.permute.xlu1 %4256 }
 0x654   : > { %v4224_v17 = vadd.f32 %v4223_v62, %v4222_v1  ;;  %v4287_v50 = vmul.f32 %v4257_v12, %v4247_v15  ;;  %v4384_v15 = vld [vmem:[%s6998_s13] sm:$0x1] }
 0x656   : > { %v4225_v23 = vrot.slane %v4224_v17, 4 }
 0x658   : > { %v4226_v16 = vadd.f32 %v4225_v23, %v4224_v17  ;;  %v4314_v26 = vpop.permute.xlu1 %4313  ;;  %v4293_v17 = vmul.f32 %v4281_v40, %v4253_v14  ;;  %v4381_v40 = vld [vmem:[%s6997_s12] sm:$0x1] }
 0x659   : > { %v4344_v47 = vmul.f32 %v4314_v26, %v4304_v37  ;;  %v4311_v26 = vld [vmem:[#allocation12 + $0x78] sm:$0xff] }
 0x65a   : > { %v4227_v56 = vrot.slane %v4226_v16, 2 }
 0x65b   : > { %v4352_v60 = vadd.f32 %v4344_v47, %v4287_v50  ;;  %v4389_v50 = vld [vmem:[#allocation5] sm:$0x1] }
 0x65c   : > { %v4318_v22 = vpop.permute.xlu1 %4317  ;;  %v4228_v29 = vadd.f32 %v4227_v56, %v4226_v16  ;;  %v4254_v16 = vld [vmem:[#allocation12 + $0x38] sm:$0xff] }
 0x65d   : > { %v4345_v42 = vmul.f32 %v4318_v22, %v4305_v24  ;;  %v4360_v7 = vsel %vm2619_vm5, %v4352_v60, 0.0 }
 0x65e   : > { %v4229_v30 = vrot.slane %v4228_v29, 1 }
 0x65f   : > { %v4353_v52 = vadd.f32 %v4345_v42, %v4288_v19 }
 0x660   : > { %v4322_v31 = vpop.permute.xlu1 %4321  ;;  %v4230_v32 = vadd.f32 %v4229_v30, %v4228_v29 }
 0x661   : > { %v4346_v45 = vmul.f32 %v4322_v31, %v4306_v38  ;;  %v4361_v4 = vsel %vm2619_vm5, %v4353_v52, 0.0 }
 0x662   : > { %v6912_v18 = vadd.f32 %v4231_v10, %v4230_v32  ;;  %v4362_v39 = vadd.f32 %v4361_v4, %v4360_v7 }
 0x663   : > { %v4354_v61 = vadd.f32 %v4346_v45, %v4289_v25 }
 0x664   : > { %v4326_v33 = vpop.permute.xlu1 %4325  ;;  %v4234_v35 = vsel %vm4233_vm7, %v6912_v18, -inf }
 0x665   : > { %4235 = vmax.xlane.f32.xlu0 %v4234_v35  ;;  %v4347_v53 = vmul.f32 %v4326_v33, %v4307_v41  ;;  %v4363_v8 = vsel %vm2619_vm5, %v4354_v61, 0.0 }
 0x666   : > { %v4364_v28 = vadd.f32 %v4363_v8, %v4362_v39 }
 0x667   : > { %v4355_v6 = vadd.f32 %v4347_v53, %v4290_v57 }
 0x668   : > { %v4330_v44 = vpop.permute.xlu1 %4329 }
 0x669   : > { %v4348_v63 = vmul.f32 %v4330_v44, %v4308_v49  ;;  %v4365_v2 = vsel %vm2619_vm5, %v4355_v6, 0.0 }
 0x66a   : > { %v4366_v12 = vadd.f32 %v4365_v2, %v4364_v28 }
 0x66b   : > { %v4356_v9 = vadd.f32 %v4348_v63, %v4291_v3 }
 0x66c   : > { %v4338_v55 = vpop.permute.xlu1 %4337 }
 0x66d   : > { %v4367_v5 = vsel %vm2619_vm5, %v4356_v9, 0.0  ;;  %v4350_v1 = vmul.f32 %v4338_v55, %v4310_v51 }
 0x66e   : > { %v4368_v23 = vadd.f32 %v4367_v5, %v4366_v12 }
 0x66f   : > { %v4358_v56 = vadd.f32 %v4350_v1, %v4293_v17 }
 0x670   : > { %v4334_v46 = vpop.permute.xlu1 %4333 }
 0x671   : > { %v4349_v11 = vmul.f32 %v4334_v46, %v4309_v0  ;;  %v4371_v10 = vsel %vm2619_vm5, %v4358_v56, 0.0 }
 0x673   : > { %v4357_v13 = vadd.f32 %v4349_v11, %v4292_v34 }
 0x675   : > { %v4285_v62 = vpop.permute.xlu1 %4284  ;;  %v4369_v20 = vsel %vm2619_vm5, %v4357_v13, 0.0 }
 0x676   : > { %v4370_v27 = vadd.f32 %v4369_v20, %v4368_v23  ;;  %v4294_v29 = vmul.f32 %v4285_v62, %v4254_v16 }
 0x678   : > { %v4372_v32 = vadd.f32 %v4371_v10, %v4370_v27 }
 0x67a   : > { %v4342_v22 = vpop.permute.xlu1 %4341 }
 0x67b   : > { %v4351_v30 = vmul.f32 %v4342_v22, %v4311_v26 }
 0x67d   : > { %v4359_v31 = vadd.f32 %v4351_v30, %v4294_v29 }
 0x67f   : > { %v4373_v21 = vsel %vm2619_vm5, %v4359_v31, 0.0 }
 0x680   : > { %v4374_v24 = vadd.f32 %v4373_v21, %v4372_v32 }
 0x682   : > { %v4375_v33 = vrot.slane %v4374_v24, 4 }
 0x684   : > { %v4376_v35 = vadd.f32 %v4375_v33, %v4374_v24 }
 0x686   : > { %v4377_v36 = vrot.slane %v4376_v35, 2 }
 0x688   : > { %v4378_v37 = vadd.f32 %v4377_v36, %v4376_v35 }
 0x68a   : > { %v4379_v38 = vrot.slane %v4378_v37, 1 }
 0x68c   : > { %v4380_v42 = vadd.f32 %v4379_v38, %v4378_v37 }
 0x68e   : > { %v4382_v43 = vadd.f32 %v4381_v40, %v4380_v42 }
 0x690   : > { %v4383_v41 = vmax.f32 %v4382_v43, 0.0 }
 0x692   : > { %v4385_v44 = vmul.f32 %v4384_v15, %v4383_v41 }
 0x694   : > { %v4386_v19 = vsel %vm4233_vm7, %v4385_v44, 0.0 }
 0x695   : > { %4387 = vadd.xlane.f32.xlu0 %v4386_v19 }
 0x6f2   : > { %v4236_v47 = vpop.xlane.xlu0 %4235 }
 0x6f3   : > { %v4237_v45 = vsub.f32 %v6912_v18, %v4236_v47 }
 0x6f5   : > { %v4238_v48 = vmul.f32 1.442695, %v4237_v45 }
 0x6f7   : > { %5728 = vpow2.f32 %v4238_v48 }
 0x701   : > { %v5729_v49 = vpop.eup %5728 }
 0x702   : > { %v4240_v25 = vsel %vm4233_vm7, %v5729_v49, 0.0 }
 0x703   : > { %4241 = vadd.xlane.f32.xlu1 %v4240_v25 }
 0x722   : > { %v4388_v52 = vpop.xlane.xlu0 %4387 }
 0x723   : > { %v4390_v53 = vadd.f32 %v4389_v50, %v4388_v52 }
 0x725   : > { %5730 = vtanh.f32 %v4390_v53 }
 0x72f   : > { %v5731_v54 = vpop.eup %5730 }
 0x730   : > { %4393 = vst.msk [vmem:[%s588_s3] sm:$0x1] %vm4392_vm8, %v5731_v54 }
 0x790   : > { %v4242_v18 = vpop.xlane.xlu1 %4241 }
 0x791   : > { %5732 = vlog2.f32 %v4242_v18 }
 0x79b   : > { %v5733_v55 = vpop.eup %5732 }
 0x79c   : > { %v4244_v57 = vmul.f32 0.6931472, %v5733_v55 }
 0x79e   : > { %v4245_v58 = vsub.f32 %v4237_v45, %v4244_v57 }
 0x7a0   : > { %4246 = vst.msk [vmem:[%s575_s15] sm:$0x1] %vm4233_vm7, %v4245_v58 }
 0x7a1   : > { %5859 = shalt.err (!%p5856_p5)
}
 0x7a2   : > { %s5860_s29 = scalar_lea.hbm %s6942_s25, 16  ;;  %s5864_s22 = scalar_lea.hbm %s7042_s30, 32 }
 0x7a3   : > { %p5861_p0 = scmp.ne.s32.totalorder %s6942_s25, %s5860_s29  ;;  %p5865_p10 = scmp.lt.u32.totalorder %s6942_s25, %s7042_s30 }
 0x7a4   : > { %p5866_p12 = scmp.lt.u32.totalorder %s5864_s22, %s5860_s29  ;;  %p5868_p2 = scmp.lt.u32.totalorder %s5860_s29, %s6942_s25 }
 0x7a5   : > { %p5862_p6 = pnand %p5861_p0, %p7043_p3 }
 0x7a6   : > { %p5867_p1 = por %p5866_p12, %p5865_p10 }
 0x7a7   : > { %p5863_p9 = pneg %p5862_p6 }
 0x7a8   : > { %p5869_p4 = por %p5868_p2, %p5867_p1 }
 0x7aa   : > { %p5870_p7 = pnand %p5869_p4, %p5863_p9 }
 0x7ac   : > { %5873 = shalt.err (!%p5870_p7)
}
 0x7ad   : > { %5553 = dma.vmem_to_hbm [thread:$0]  (%p7043_p3), %s6944_s16, 16, %s6942_s25, %s4395_s19  }
 0x7ae PF: > { %s7044_s17 = sld [smem:[#allocation21_spill]]  ;;  %s7045_s28 = sld [smem:[#allocation19_spill]] }
 0x7af   : > { %s7046_s23 = sld [smem:[#allocation25_spill]] }
 0x7b4   : > { %p5580_p8 = scmp.ge.s32.totalorder %s7044_s17, 2  ;;  %s4425_s27 = sand.u32 1, %s7045_s28  }
 0x7b5   : > { %p7047_p11 = scmp.ne.s32.totalorder %s7046_s23, 0  ;;  %s4426_s14 = scalar_lea.sflag [#allocation8], %s4425_s27 }
 0x7b7   : > { %p5569_p13 = pnand %p5580_p8, %p7047_p11 }
 0x7b9   : > { %5903 = dma.done.wait (!%p5569_p13), %s4426_s14, 16  }
 0x7ba   : > { %5905 = vsyncadd (!%p5569_p13), %s4426_s14, 4294967280  ;;  %s7048_s26 = sld [smem:[#allocation22_spill]]  ;;  %s7049_s0 = sld [smem:[#allocation20_spill]] }
 0x7bb   : > { %s7050_s25 = sld [smem:[#allocation23_spill]]  ;;  %s7051_s23 = smov %s5912_s24 }
 0x7c0   : > { %p32_p5 = scmp.ge.s32.totalorder %s7048_s26, 4   ;;  %s7052_s24 = smov %s7049_s0 }
 0x7c2   :  { %34 = sbr.rel (!%p32_p5) target bundleno = 11 (0xb), region = 178 }
 0x7c9   :  { %4436 = vsyncpa [#allocation7], 1 }
 0x7ca   :  { %4438 = vsyncpa [#allocation7 + $0x1], 1 }
 0x7cb   :  { %4439 = vsyncpa [#allocation10], 1 }
 0x7cc   :  { %4440 = vsyncpa [#allocation13], 1 }
 0x7cd   :  { %4441 = vsyncpa [#allocation8], 1 }
 0x7ce   :  { %4443 = vsyncpa [#allocation8 + $0x1], 1 }

</bundles_post_ra>
